<compile_context>
chip_gen: v7x
topology: tpu7x:2x2x1
jax: 0.10.0
libtpu: 0.0.40
codegen_flags: <defaults>
</compile_context>

<pallas_src>
import functools

import jax
import jax.numpy as jnp
from jax import lax
from jax.experimental import pallas as pl
from jax.experimental.pallas import tpu as pltpu

EPS = 1e-5  # torch nn.LayerNorm default eps


def _round_up(n, m):
    return ((n + m - 1) // m) * m


@functools.lru_cache(maxsize=None)
def _tpu_vmem_capacity():
    try:
        return int(pltpu.get_tpu_info().vmem_capacity_bytes)
    except Exception:
        return 128 * 1024 * 1024  # v5e/v6e default


def _vmem_limit():
    cap = _tpu_vmem_capacity()
    return int(max(32 * 1024 * 1024, min(96 * 1024 * 1024, int(cap * 0.6))))


def _row_tile_cap():
    # 128 MiB VMEM chips (v5e/v6e) can afford 512-row tiles; 64 MiB (v7x) stays at 256.
    return 512 if _tpu_vmem_capacity() >= 96 * 1024 * 1024 else 256


def _row_tile(n):
    """Row tile: multiple of 8, <= cap, and small enough to give >= 2 grid steps."""
    if n <= 8:
        return 8
    half = _round_up((n + 1) // 2, 8)
    return min(_row_tile_cap(), half)


# ----------------------------- shared math ---------------------------------

def _ln_math(x, g, b):
    mean = jnp.mean(x, axis=-1, keepdims=True)
    var = jnp.mean((x - mean) ** 2, axis=-1, keepdims=True)
    return (x - mean) * lax.rsqrt(var + EPS) * g + b


def _gelu(y, kind):
    if kind == "tanh":
        # approximate GELU: tanh goes to the EUP slot (keeps VALU free on v5e)
        return 0.5 * y * (1.0 + jnp.tanh(0.7978845608028654 * (y + 0.044715 * y * y * y)))
    # exact (erf-based) GELU, matching torch.nn.GELU()
    return 0.5 * y * (1.0 + lax.erf(y * 0.7071067811865476))


# ------------------------------ kernels -------------------------------------

def layernorm_kernel(x_ref, g_ref, b_ref, o_ref):
    x = x_ref[...].astype(jnp.float32)
    o_ref[...] = _ln_math(x, g_ref[...], b_ref[...]).astype(o_ref.dtype)


def patch_embed_kernel(x_ref, g1_ref, b1_ref, w_ref, bias_ref, g2_ref, b2_ref,
                       o_ref, *, mm_dtype):
    # fused: LayerNorm(patch) -> Linear(patch_size, dim) -> LayerNorm(dim)
    x = x_ref[...].astype(jnp.float32)
    xn = _ln_math(x, g1_ref[...], b1_ref[...])
    y = jnp.dot(xn.astype(mm_dtype), w_ref[...],
                preferred_element_type=jnp.float32) + bias_ref[...]
    o_ref[...] = _ln_math(y, g2_ref[...], b2_ref[...]).astype(o_ref.dtype)


def linear_kernel(x_ref, w_ref, b_ref, o_ref, *, mm_dtype):
    y = jnp.dot(x_ref[...].astype(mm_dtype), w_ref[...],
                preferred_element_type=jnp.float32) + b_ref[...]
    o_ref[...] = y.astype(o_ref.dtype)


def token_mix_out_kernel(br1_ref, br2_ref, x_ref, g_ref, b_ref,
                         wc_ref, bc_ref, wp_ref, bp_ref, o_ref, *, mm_dtype):
    # fused: LN(x) (recompute, cheaper than an extra HBM pass) -> branch3
    #        -> ParallelSum -> projection -> residual add
    x = x_ref[...].astype(jnp.float32)
    xn = _ln_math(x, g_ref[...], b_ref[...])
    br3 = jnp.dot(xn.astype(mm_dtype), wc_ref[...],
                  preferred_element_type=jnp.float32) + bc_ref[...]
    psum = br1_ref[...].astype(jnp.float32) + br2_ref[...].astype(jnp.float32) + br3
    out = jnp.dot(psum.astype(mm_dtype), wp_ref[...],
                  preferred_element_type=jnp.float32) + bp_ref[...]
    o_ref[...] = (out + x).astype(o_ref.dtype)


def channel_mlp_kernel(x_ref, g_ref, b_ref, w1_ref, b1_ref, w2_ref, b2_ref,
                       o_ref, *, mm_dtype, gelu_kind):
    # fused: LN -> Linear+GELU -> Linear -> residual (hidden never leaves VMEM)
    x = x_ref[...].astype(jnp.float32)
    xn = _ln_math(x, g_ref[...], b_ref[...])
    h = jnp.dot(xn.astype(mm_dtype), w1_ref[...],
                preferred_element_type=jnp.float32) + b1_ref[...]
    h = _gelu(h, gelu_kind)
    out = jnp.dot(h.astype(mm_dtype), w2_ref[...],
                  preferred_element_type=jnp.float32) + b2_ref[...]
    o_ref[...] = (out + x).astype(o_ref.dtype)


def head_kernel(x_ref, g_ref, b_ref, w_ref, bias_ref, o_ref, *, mm_dtype):
    # fused: final LayerNorm -> mean pool over tokens -> Linear -> Softmax
    x = x_ref[...].astype(jnp.float32)               # (1, HW, D) per batch step
    xn = _ln_math(x, g_ref[...], b_ref[...])
    pooled = jnp.mean(xn, axis=1)                    # (1, D)
    logits = jnp.dot(pooled.astype(mm_dtype), w_ref[...],
                     preferred_element_type=jnp.float32) + bias_ref[...]
    m = jnp.max(logits, axis=-1, keepdims=True)
    e = jnp.exp(logits - m)
    probs = e / jnp.sum(e, axis=-1, keepdims=True)   # (1, ncls)
    o_ref[0] = probs.astype(o_ref.dtype)             # o_ref: (1, 1, ncls)


# --------------------------- pallas_call wrappers ----------------------------

def _run_rowwise(kernel_fn, row_inputs, param_inputs, dout, *,
                 out_dtype=jnp.float32, alias_input=None):
    """Row-gridded pallas_call: row_inputs tiled along rows, params fully resident.

    No pad/slice copies: boundary blocks are clipped by Pallas (all compute in
    these kernels is strictly per-row, so garbage rows never leak).
    """
    n = row_inputs[0].shape[0]
    tile = _row_tile(n)
    in_specs = [pl.BlockSpec((tile, a.shape[1]), lambda i: (i, 0)) for a in row_inputs]
    in_specs += [pl.BlockSpec(p.shape, lambda i: (0, 0)) for p in param_inputs]
    extra = {}
    if alias_input is not None:
        extra["input_output_aliases"] = {alias_input: 0}
    return pl.pallas_call(
        kernel_fn,
        out_shape=jax.ShapeDtypeStruct((n, dout), out_dtype),
        grid=(pl.cdiv(n, tile),),
        in_specs=in_specs,
        out_specs=pl.BlockSpec((tile, dout), lambda i: (i, 0)),
        compiler_params=pltpu.CompilerParams(
            dimension_semantics=("parallel",),
            vmem_limit_bytes=_vmem_limit()),
        **extra,
    )(*row_inputs, *param_inputs)


def _run_head(tok3, g, b, w, bias, ncls, mm):
    B, HW, D = tok3.shape
    out = pl.pallas_call(
        functools.partial(head_kernel, mm_dtype=mm),
        out_shape=jax.ShapeDtypeStruct((B, 1, ncls), jnp.float32),
        grid=(B,),
        in_specs=[pl.BlockSpec((1, HW, D), lambda i: (i, 0, 0)),
                  pl.BlockSpec(g.shape, lambda i: (0, 0)),
                  pl.BlockSpec(b.shape, lambda i: (0, 0)),
                  pl.BlockSpec(w.shape, lambda i: (0, 0)),
                  pl.BlockSpec(bias.shape, lambda i: (0, 0))],
        out_specs=pl.BlockSpec((1, 1, ncls), lambda i: (i, 0, 0)),
        compiler_params=pltpu.CompilerParams(
            dimension_semantics=("parallel",),
            vmem_limit_bytes=_vmem_limit()),
    )(tok3, g, b, w, bias)
    return out.reshape(B, ncls)


# ------------------------------- forward -------------------------------------

def prepare_params(params, cfg):
    """Cast matmul weights to the MXU operand dtype ONCE (outside the fwd pass)."""
    mm = cfg.get("matmul_dtype", jnp.float32)
    cast = lambda a: a.astype(mm)
    pe = params["patch_embed"]
    out = {
        "patch_embed": dict(pe, w=cast(pe["w"])),
        "blocks": [dict(blk,
                        w_h=cast(blk["w_h"]), w_w=cast(blk["w_w"]),
                        w_c=cast(blk["w_c"]), w_proj=cast(blk["w_proj"]),
                        w1=cast(blk["w1"]), w2=cast(blk["w2"]))
                   for blk in params["blocks"]],
        "final_ln": params["final_ln"],
        "cls": dict(params["cls"], w=cast(params["cls"]["w"])),
    }
    return out


def metap_forward(x, params, cfg):
    mm = cfg.get("matmul_dtype", jnp.float32)
    act_dtype = cfg.get("act_dtype", mm)           # residual stream storage dtype
    gelu_kind = cfg.get("gelu", "exact")
    B = x.shape[0]
    ph, pw = cfg["patch_h"], cfg["patch_w"]
    h = cfg["image_h"] // ph
    w = cfg["image_w"] // pw
    dim = cfg["dim"]
    s = cfg["segments"]
    c = dim // s

    # MetaP_SPT patch split 'b (h p1) (w p2) -> b h w (p1 p2)'
    patches = (x.reshape(B, h, ph, w, pw)
                 .transpose(0, 1, 3, 2, 4)
                 .reshape(B * h * w, ph * pw))

    pe = params["patch_embed"]
    tokens = _run_rowwise(
        functools.partial(patch_embed_kernel, mm_dtype=mm),
        [patches],
        [pe["g1"], pe["b1"], pe["w"], pe["bias"], pe["g2"], pe["b2"]],
        dim, out_dtype=act_dtype)                              # (B*h*w, dim)

    for blk in params["blocks"]:
        # ---- token-mixing PreNormResidual ----
        xn = _run_rowwise(layernorm_kernel, [tokens], [blk["tm_g"], blk["tm_b"]],
                          dim, out_dtype=act_dtype)
        xn4 = xn.reshape(B, h, w, c, s)

        # branch 1: 'b h w (c s) -> b c w (h s)' ; Linear(h*s) ; inverse rearrange
        # TODO(synk): einops transposes stay in XLA (Mosaic 5-D transposes unreliable).
        t = xn4.transpose(0, 3, 2, 1, 4).reshape(B * c * w, h * s)
        t = _run_rowwise(functools.partial(linear_kernel, mm_dtype=mm),
                         [t], [blk["w_h"], blk["b_h"]], h * s, out_dtype=act_dtype)
        br1 = t.reshape(B, c, w, h, s).transpose(0, 3, 2, 1, 4).reshape(B * h * w, dim)

        # branch 2: 'b h w (c s) -> b h c (w s)' ; Linear(w*s) ; inverse rearrange
        t = xn4.transpose(0, 1, 3, 2, 4).reshape(B * h * c, w * s)
        t = _run_rowwise(functools.partial(linear_kernel, mm_dtype=mm),
                         [t], [blk["w_w"], blk["b_w"]], w * s, out_dtype=act_dtype)
        br2 = t.reshape(B, h, c, w, s).transpose(0, 1, 3, 2, 4).reshape(B * h * w, dim)

        # branch 3 + ParallelSum + projection + residual, all fused; residual aliased
        tokens = _run_rowwise(
            functools.partial(token_mix_out_kernel, mm_dtype=mm),
            [br1, br2, tokens],
            [blk["tm_g"], blk["tm_b"],
             blk["w_c"], blk["b_c"], blk["w_proj"], blk["b_proj"]],
            dim, out_dtype=act_dtype, alias_input=2)

        # ---- channel-MLP PreNormResidual (fused; dropout p=0 is identity) ----
        tokens = _run_rowwise(
            functools.partial(channel_mlp_kernel, mm_dtype=mm, gelu_kind=gelu_kind),
            [tokens],
            [blk["ch_g"], blk["ch_b"], blk["w1"], blk["b1"], blk["w2"], blk["b2"]],
            dim, out_dtype=act_dtype, alias_input=0)

    # ---- final LN + mean pool + classifier + softmax (gridded over batch) ----
    fin, cls = params["final_ln"], params["cls"]
    tok3 = tokens.reshape(B, h * w, dim)
    return _run_head(tok3, fin["g"], fin["b"], cls["w"], cls["b"],
                     cfg["num_classes"], mm)


# -------------------------- pure-JAX reference --------------------------------

def metap_reference(x, params, cfg):
    B = x.shape[0]
    ph, pw = cfg["patch_h"], cfg["patch_w"]
    h = cfg["image_h"] // ph
    w = cfg["image_w"] // pw
    dim = cfg["dim"]
    s = cfg["segments"]
    c = dim // s

    patches = (x.reshape(B, h, ph, w, pw)
                 .transpose(0, 1, 3, 2, 4)
                 .reshape(B * h * w, ph * pw))
    pe = params["patch_embed"]
    tokens = _ln_math(_ln_math(patches, pe["g1"], pe["b1"]) @ pe["w"] + pe["bias"],
                      pe["g2"], pe["b2"])

    for blk in params["blocks"]:
        xn = _ln_math(tokens, blk["tm_g"], blk["tm_b"])
        xn4 = xn.reshape(B, h, w, c, s)
        t = xn4.transpose(0, 3, 2, 1, 4).reshape(B * c * w, h * s) @ blk["w_h"] + blk["b_h"]
        br1 = t.reshape(B, c, w, h, s).transpose(0, 3, 2, 1, 4).reshape(B * h * w, dim)
        t = xn4.transpose(0, 1, 3, 2, 4).reshape(B * h * c, w * s) @ blk["w_w"] + blk["b_w"]
        br2 = t.reshape(B, h, c, w, s).transpose(0, 1, 3, 2, 4).reshape(B * h * w, dim)
        br3 = xn @ blk["w_c"] + blk["b_c"]
        tokens = (br1 + br2 + br3) @ blk["w_proj"] + blk["b_proj"] + tokens

        xn = _ln_math(tokens, blk["ch_g"], blk["ch_b"])
        hmid = xn @ blk["w1"] + blk["b1"]
        hmid = 0.5 * hmid * (1.0 + jax.scipy.special.erf(hmid * 0.7071067811865476))
        tokens = hmid @ blk["w2"] + blk["b2"] + tokens

    fin = params["final_ln"]
    tokens = _ln_math(tokens, fin["g"], fin["b"]).reshape(B, h * w, dim)
    cls = params["cls"]
    logits = tokens.mean(axis=1) @ cls["w"] + cls["b"]
    return jax.nn.softmax(logits, axis=-1)


# ------------------------------ parameters -----------------------------------

def init_params(key, cfg):
    dim = cfg["dim"]
    s = cfg["segments"]
    ph, pw = cfg["patch_h"], cfg["patch_w"]
    h = cfg["image_h"] // ph
    w = cfg["image_w"] // pw
    patch_size = ph * pw
    hidden = int(dim * cfg["expansion_factor"])

    keys = iter(jax.random.split(key, 64))

    def dense(din, dout):
        kw, kb = jax.random.split(next(keys))
        return (0.05 * jax.random.normal(kw, (din, dout), jnp.float32),
                0.05 * jax.random.normal(kb, (1, dout), jnp.float32))

    def ln(d):
        kg, kb = jax.random.split(next(keys))
        return (1.0 + 0.1 * jax.random.normal(kg, (1, d), jnp.float32),
                0.1 * jax.random.normal(kb, (1, d), jnp.float32))

    g1, b1 = ln(patch_size)
    w_pe, bias_pe = dense(patch_size, dim)
    g2, b2 = ln(dim)
    params = {
        "patch_embed": {"g1": g1, "b1": b1, "w": w_pe, "bias": bias_pe, "g2": g2, "b2": b2},
        "blocks": [],
    }
    for _ in range(cfg["depth"]):
        tm_g, tm_b = ln(dim)
        w_h, b_h = dense(h * s, h * s)
        w_w, b_w = dense(w * s, w * s)
        w_c, b_c = dense(dim, dim)
        w_proj, b_proj = dense(dim, dim)
        ch_g, ch_b = ln(dim)
        w1, b1_ = dense(dim, hidden)
        w2, b2_ = dense(hidden, dim)
        params["blocks"].append(dict(
            tm_g=tm_g, tm_b=tm_b, w_h=w_h, b_h=b_h, w_w=w_w, b_w=b_w,
            w_c=w_c, b_c=b_c, w_proj=w_proj, b_proj=b_proj,
            ch_g=ch_g, ch_b=ch_b, w1=w1, b1=b1_, w2=w2, b2=b2_))
    fg, fb = ln(dim)
    params["final_ln"] = {"g": fg, "b": fb}
    w_cls, b_cls = dense(dim, cfg["num_classes"])
    params["cls"] = {"w": w_cls, "b": b_cls}
    return params


# --------------------------------- main ---------------------------------------

if __name__ == "__main__":
    cfg = dict(image_h=16, image_w=16, patch_h=4, patch_w=4,
               dim=32, depth=2, num_classes=10, segments=4,
               expansion_factor=4, dropout=0.0,
               matmul_dtype=jnp.float32, gelu="exact")   # f32 for strict ref check

    key = jax.random.PRNGKey(0)
    kx, kp = jax.random.split(key)
    x = jax.random.normal(kx, (2, cfg["image_h"], cfg["image_w"]), jnp.float32)
    params = init_params(kp, cfg)
    ref = metap_reference(x, params, cfg)

    # ---- f32 path (exact reference check) ----
    prepped = prepare_params(params, cfg)
    fwd = jax.jit(lambda xx, pp: metap_forward(xx, pp, cfg))
    out = jax.block_until_ready(fwd(x, prepped))

    assert out.shape == (2, cfg["num_classes"])
    assert bool(jnp.all(jnp.isfinite(out)))
    assert bool(jnp.allclose(jnp.sum(out, axis=-1), 1.0, atol=1e-5))
    assert bool(jnp.allclose(out, ref, atol=2e-4, rtol=2e-4))

    # ---- bf16 MXU path: bf16 weights + bf16 residual stream, f32 accumulate ----
    cfg_bf16 = dict(cfg, matmul_dtype=jnp.bfloat16)
    prepped_bf16 = prepare_params(params, cfg_bf16)
    fwd_bf16 = jax.jit(lambda xx, pp: metap_forward(xx, pp, cfg_bf16))
    out_bf16 = jax.block_until_ready(fwd_bf16(x, prepped_bf16))

    assert out_bf16.shape == (2, cfg["num_classes"])
    assert bool(jnp.all(jnp.isfinite(out_bf16)))
    assert bool(jnp.allclose(jnp.sum(out_bf16, axis=-1), 1.0, atol=1e-3))
    assert bool(jnp.allclose(out_bf16, ref, atol=1e-1, rtol=1e-1))

    print("KERNEL_OK")
</pallas_src>

<mosaic_0001>
module attributes {stable_mosaic.version = 11 : i64} {
  func.func @patch_embed_kernel(%arg0: i32, %arg1: memref<16x16xf32, #tpu.memory_space<vmem>>, %arg2: memref<1x16xf32, #tpu.memory_space<vmem>>, %arg3: memref<1x16xf32, #tpu.memory_space<vmem>>, %arg4: memref<16x32xf32, #tpu.memory_space<vmem>>, %arg5: memref<1x32xf32, #tpu.memory_space<vmem>>, %arg6: memref<1x32xf32, #tpu.memory_space<vmem>>, %arg7: memref<1x32xf32, #tpu.memory_space<vmem>>, %arg8: memref<16x32xf32, #tpu.memory_space<vmem>>) attributes {dimension_semantics = [#tpu.dimension_semantics<parallel>], iteration_bounds = array<i64: 2>, scalar_prefetch = 0 : i64, scratch_operands = 0 : i64, tpu.core_type = #tpu.core_type<tc>, window_params = [{transform_indices = @transform_0, window_bounds = array<i64: 16, 16>}, {pipeline_mode = #tpu.pipeline_mode<synchronous>, transform_indices = @transform_1, window_bounds = array<i64: 1, 16>}, {pipeline_mode = #tpu.pipeline_mode<synchronous>, transform_indices = @transform_2, window_bounds = array<i64: 1, 16>}, {pipeline_mode = #tpu.pipeline_mode<synchronous>, transform_indices = @transform_3, window_bounds = array<i64: 16, 32>}, {pipeline_mode = #tpu.pipeline_mode<synchronous>, transform_indices = @transform_4, window_bounds = array<i64: 1, 32>}, {pipeline_mode = #tpu.pipeline_mode<synchronous>, transform_indices = @transform_5, window_bounds = array<i64: 1, 32>}, {pipeline_mode = #tpu.pipeline_mode<synchronous>, transform_indices = @transform_6, window_bounds = array<i64: 1, 32>}, {transform_indices = @transform_7, window_bounds = array<i64: 16, 32>}]} {
    %c0 = arith.constant 0 : index
    %c0_0 = arith.constant 0 : index
    %0 = vector.load %arg1[%c0, %c0_0] : memref<16x16xf32, #tpu.memory_space<vmem>>, vector<16x16xf32>
    %c0_1 = arith.constant 0 : index
    %c0_2 = arith.constant 0 : index
    %1 = vector.load %arg2[%c0_1, %c0_2] : memref<1x16xf32, #tpu.memory_space<vmem>>, vector<1x16xf32>
    %c0_3 = arith.constant 0 : index
    %c0_4 = arith.constant 0 : index
    %2 = vector.load %arg3[%c0_3, %c0_4] : memref<1x16xf32, #tpu.memory_space<vmem>>, vector<1x16xf32>
    %cst = arith.constant dense<0.000000e+00> : vector<16xf32>
    %3 = vector.multi_reduction <add>, %0, %cst [1] : vector<16x16xf32> to vector<16xf32>
    %4 = vector.shape_cast %3 : vector<16xf32> to vector<16x1xf32>
    %cst_5 = arith.constant 1.600000e+01 : f32
    %5 = vector.broadcast %cst_5 : f32 to vector<16x1xf32>
    %6 = arith.divf %4, %5 : vector<16x1xf32>
    %7 = vector.broadcast %6 : vector<16x1xf32> to vector<16x16xf32>
    %8 = arith.subf %0, %7 : vector<16x16xf32>
    %9 = arith.mulf %8, %8 : vector<16x16xf32>
    %cst_6 = arith.constant dense<0.000000e+00> : vector<16xf32>
    %10 = vector.multi_reduction <add>, %9, %cst_6 [1] : vector<16x16xf32> to vector<16xf32>
    %11 = vector.shape_cast %10 : vector<16xf32> to vector<16x1xf32>
    %cst_7 = arith.constant 1.600000e+01 : f32
    %12 = vector.broadcast %cst_7 : f32 to vector<16x1xf32>
    %13 = arith.divf %11, %12 : vector<16x1xf32>
    %14 = vector.broadcast %6 : vector<16x1xf32> to vector<16x16xf32>
    %15 = arith.subf %0, %14 : vector<16x16xf32>
    %cst_8 = arith.constant 9.99999974E-6 : f32
    %16 = vector.broadcast %cst_8 : f32 to vector<16x1xf32>
    %17 = arith.addf %13, %16 : vector<16x1xf32>
    %18 = math.rsqrt %17 : vector<16x1xf32>
    %19 = vector.broadcast %18 : vector<16x1xf32> to vector<16x16xf32>
    %20 = arith.mulf %15, %19 : vector<16x16xf32>
    %21 = vector.broadcast %1 : vector<1x16xf32> to vector<16x16xf32>
    %22 = arith.mulf %20, %21 : vector<16x16xf32>
    %23 = vector.broadcast %2 : vector<1x16xf32> to vector<16x16xf32>
    %24 = arith.addf %22, %23 : vector<16x16xf32>
    %c0_9 = arith.constant 0 : index
    %c0_10 = arith.constant 0 : index
    %25 = vector.load %arg4[%c0_9, %c0_10] : memref<16x32xf32, #tpu.memory_space<vmem>>, vector<16x32xf32>
    %cst_11 = arith.constant dense<0.000000e+00> : vector<16x32xf32>
    %26 = tpu.matmul %24, %25, %cst_11 {dimension_numbers = #tpu.dot_dimension_numbers<[1], [0], [0], [1], [0, 0, 1, 1], [], []>} : vector<16x16xf32>, vector<16x32xf32>, vector<16x32xf32> -> vector<16x32xf32>
    %c0_12 = arith.constant 0 : index
    %c0_13 = arith.constant 0 : index
    %27 = vector.load %arg5[%c0_12, %c0_13] : memref<1x32xf32, #tpu.memory_space<vmem>>, vector<1x32xf32>
    %28 = vector.broadcast %27 : vector<1x32xf32> to vector<16x32xf32>
    %29 = arith.addf %26, %28 : vector<16x32xf32>
    %c0_14 = arith.constant 0 : index
    %c0_15 = arith.constant 0 : index
    %30 = vector.load %arg6[%c0_14, %c0_15] : memref<1x32xf32, #tpu.memory_space<vmem>>, vector<1x32xf32>
    %c0_16 = arith.constant 0 : index
    %c0_17 = arith.constant 0 : index
    %31 = vector.load %arg7[%c0_16, %c0_17] : memref<1x32xf32, #tpu.memory_space<vmem>>, vector<1x32xf32>
    %cst_18 = arith.constant dense<0.000000e+00> : vector<16xf32>
    %32 = vector.multi_reduction <add>, %29, %cst_18 [1] : vector<16x32xf32> to vector<16xf32>
    %33 = vector.shape_cast %32 : vector<16xf32> to vector<16x1xf32>
    %cst_19 = arith.constant 3.200000e+01 : f32
    %34 = vector.broadcast %cst_19 : f32 to vector<16x1xf32>
    %35 = arith.divf %33, %34 : vector<16x1xf32>
    %36 = vector.broadcast %35 : vector<16x1xf32> to vector<16x32xf32>
    %37 = arith.subf %29, %36 : vector<16x32xf32>
    %38 = arith.mulf %37, %37 : vector<16x32xf32>
    %cst_20 = arith.constant dense<0.000000e+00> : vector<16xf32>
    %39 = vector.multi_reduction <add>, %38, %cst_20 [1] : vector<16x32xf32> to vector<16xf32>
    %40 = vector.shape_cast %39 : vector<16xf32> to vector<16x1xf32>
    %cst_21 = arith.constant 3.200000e+01 : f32
    %41 = vector.broadcast %cst_21 : f32 to vector<16x1xf32>
    %42 = arith.divf %40, %41 : vector<16x1xf32>
    %43 = vector.broadcast %35 : vector<16x1xf32> to vector<16x32xf32>
    %44 = arith.subf %29, %43 : vector<16x32xf32>
    %cst_22 = arith.constant 9.99999974E-6 : f32
    %45 = vector.broadcast %cst_22 : f32 to vector<16x1xf32>
    %46 = arith.addf %42, %45 : vector<16x1xf32>
    %47 = math.rsqrt %46 : vector<16x1xf32>
    %48 = vector.broadcast %47 : vector<16x1xf32> to vector<16x32xf32>
    %49 = arith.mulf %44, %48 : vector<16x32xf32>
    %50 = vector.broadcast %30 : vector<1x32xf32> to vector<16x32xf32>
    %51 = arith.mulf %49, %50 : vector<16x32xf32>
    %52 = vector.broadcast %31 : vector<1x32xf32> to vector<16x32xf32>
    %53 = arith.addf %51, %52 : vector<16x32xf32>
    %c0_23 = arith.constant 0 : index
    %c0_24 = arith.constant 0 : index
    %54 = vector.load %arg8[%c0_23, %c0_24] : memref<16x32xf32, #tpu.memory_space<vmem>>, vector<16x32xf32>
    tpu.vector_store %arg8[%c0_23, %c0_24], %53 {strides = array<i32>} : memref<16x32xf32, #tpu.memory_space<vmem>>, vector<16x32xf32>,
    return
  }
  func.func @transform_0(%arg0: i32) -> (i32, i32) {
    %c0_i32 = arith.constant 0 : i32
    %c0_i32_0 = arith.constant 0 : i32
    return %arg0, %c0_i32 : i32, i32
  }
  func.func @transform_1(%arg0: i32) -> (i32, i32) {
    %c0_i32 = arith.constant 0 : i32
    %c0_i32_0 = arith.constant 0 : i32
    %c0_i32_1 = arith.constant 0 : i32
    return %c0_i32, %c0_i32_0 : i32, i32
  }
  func.func @transform_2(%arg0: i32) -> (i32, i32) {
    %c0_i32 = arith.constant 0 : i32
    %c0_i32_0 = arith.constant 0 : i32
    %c0_i32_1 = arith.constant 0 : i32
    return %c0_i32, %c0_i32_0 : i32, i32
  }
  func.func @transform_3(%arg0: i32) -> (i32, i32) {
    %c0_i32 = arith.constant 0 : i32
    %c0_i32_0 = arith.constant 0 : i32
    %c0_i32_1 = arith.constant 0 : i32
    return %c0_i32, %c0_i32_0 : i32, i32
  }
  func.func @transform_4(%arg0: i32) -> (i32, i32) {
    %c0_i32 = arith.constant 0 : i32
    %c0_i32_0 = arith.constant 0 : i32
    %c0_i32_1 = arith.constant 0 : i32
    return %c0_i32, %c0_i32_0 : i32, i32
  }
  func.func @transform_5(%arg0: i32) -> (i32, i32) {
    %c0_i32 = arith.constant 0 : i32
    %c0_i32_0 = arith.constant 0 : i32
    %c0_i32_1 = arith.constant 0 : i32
    return %c0_i32, %c0_i32_0 : i32, i32
  }
  func.func @transform_6(%arg0: i32) -> (i32, i32) {
    %c0_i32 = arith.constant 0 : i32
    %c0_i32_0 = arith.constant 0 : i32
    %c0_i32_1 = arith.constant 0 : i32
    return %c0_i32, %c0_i32_0 : i32, i32
  }
  func.func @transform_7(%arg0: i32) -> (i32, i32) {
    %c0_i32 = arith.constant 0 : i32
    %c0_i32_0 = arith.constant 0 : i32
    return %arg0, %c0_i32 : i32, i32
  }
}

module attributes {stable_mosaic.version = 11 : i64} {
  func.func @layernorm_kernel(%arg0: i32, %arg1: memref<16x32xf32, #tpu.memory_space<vmem>>, %arg2: memref<1x32xf32, #tpu.memory_space<vmem>>, %arg3: memref<1x32xf32, #tpu.memory_space<vmem>>, %arg4: memref<16x32xf32, #tpu.memory_space<vmem>>) attributes {dimension_semantics = [#tpu.dimension_semantics<parallel>], iteration_bounds = array<i64: 2>, scalar_prefetch = 0 : i64, scratch_operands = 0 : i64, tpu.core_type = #tpu.core_type<tc>, window_params = [{transform_indices = @transform_0, window_bounds = array<i64: 16, 32>}, {pipeline_mode = #tpu.pipeline_mode<synchronous>, transform_indices = @transform_1, window_bounds = array<i64: 1, 32>}, {pipeline_mode = #tpu.pipeline_mode<synchronous>, transform_indices = @transform_2, window_bounds = array<i64: 1, 32>}, {transform_indices = @transform_3, window_bounds = array<i64: 16, 32>}]} {
    %c0 = arith.constant 0 : index
    %c0_0 = arith.constant 0 : index
    %0 = vector.load %arg1[%c0, %c0_0] : memref<16x32xf32, #tpu.memory_space<vmem>>, vector<16x32xf32>
    %c0_1 = arith.constant 0 : index
    %c0_2 = arith.constant 0 : index
    %1 = vector.load %arg2[%c0_1, %c0_2] : memref<1x32xf32, #tpu.memory_space<vmem>>, vector<1x32xf32>
    %c0_3 = arith.constant 0 : index
    %c0_4 = arith.constant 0 : index
    %2 = vector.load %arg3[%c0_3, %c0_4] : memref<1x32xf32, #tpu.memory_space<vmem>>, vector<1x32xf32>
    %cst = arith.constant dense<0.000000e+00> : vector<16xf32>
    %3 = vector.multi_reduction <add>, %0, %cst [1] : vector<16x32xf32> to vector<16xf32>
    %4 = vector.shape_cast %3 : vector<16xf32> to vector<16x1xf32>
    %cst_5 = arith.constant 3.200000e+01 : f32
    %5 = vector.broadcast %cst_5 : f32 to vector<16x1xf32>
    %6 = arith.divf %4, %5 : vector<16x1xf32>
    %7 = vector.broadcast %6 : vector<16x1xf32> to vector<16x32xf32>
    %8 = arith.subf %0, %7 : vector<16x32xf32>
    %9 = arith.mulf %8, %8 : vector<16x32xf32>
    %cst_6 = arith.constant dense<0.000000e+00> : vector<16xf32>
    %10 = vector.multi_reduction <add>, %9, %cst_6 [1] : vector<16x32xf32> to vector<16xf32>
    %11 = vector.shape_cast %10 : vector<16xf32> to vector<16x1xf32>
    %cst_7 = arith.constant 3.200000e+01 : f32
    %12 = vector.broadcast %cst_7 : f32 to vector<16x1xf32>
    %13 = arith.divf %11, %12 : vector<16x1xf32>
    %14 = vector.broadcast %6 : vector<16x1xf32> to vector<16x32xf32>
    %15 = arith.subf %0, %14 : vector<16x32xf32>
    %cst_8 = arith.constant 9.99999974E-6 : f32
    %16 = vector.broadcast %cst_8 : f32 to vector<16x1xf32>
    %17 = arith.addf %13, %16 : vector<16x1xf32>
    %18 = math.rsqrt %17 : vector<16x1xf32>
    %19 = vector.broadcast %18 : vector<16x1xf32> to vector<16x32xf32>
    %20 = arith.mulf %15, %19 : vector<16x32xf32>
    %21 = vector.broadcast %1 : vector<1x32xf32> to vector<16x32xf32>
    %22 = arith.mulf %20, %21 : vector<16x32xf32>
    %23 = vector.broadcast %2 : vector<1x32xf32> to vector<16x32xf32>
    %24 = arith.addf %22, %23 : vector<16x32xf32>
    %c0_9 = arith.constant 0 : index
    %c0_10 = arith.constant 0 : index
    %25 = vector.load %arg4[%c0_9, %c0_10] : memref<16x32xf32, #tpu.memory_space<vmem>>, vector<16x32xf32>
    tpu.vector_store %arg4[%c0_9, %c0_10], %24 {strides = array<i32>} : memref<16x32xf32, #tpu.memory_space<vmem>>, vector<16x32xf32>,
    return
  }
  func.func @transform_0(%arg0: i32) -> (i32, i32) {
    %c0_i32 = arith.constant 0 : i32
    %c0_i32_0 = arith.constant 0 : i32
    return %arg0, %c0_i32 : i32, i32
  }
  func.func @transform_1(%arg0: i32) -> (i32, i32) {
    %c0_i32 = arith.constant 0 : i32
    %c0_i32_0 = arith.constant 0 : i32
    %c0_i32_1 = arith.constant 0 : i32
    return %c0_i32, %c0_i32_0 : i32, i32
  }
  func.func @transform_2(%arg0: i32) -> (i32, i32) {
    %c0_i32 = arith.constant 0 : i32
    %c0_i32_0 = arith.constant 0 : i32
    %c0_i32_1 = arith.constant 0 : i32
    return %c0_i32, %c0_i32_0 : i32, i32
  }
  func.func @transform_3(%arg0: i32) -> (i32, i32) {
    %c0_i32 = arith.constant 0 : i32
    %c0_i32_0 = arith.constant 0 : i32
    return %arg0, %c0_i32 : i32, i32
  }
}

module attributes {stable_mosaic.version = 11 : i64} {
  func.func @linear_kernel(%arg0: i32, %arg1: memref<32x16xf32, #tpu.memory_space<vmem>>, %arg2: memref<16x16xf32, #tpu.memory_space<vmem>>, %arg3: memref<1x16xf32, #tpu.memory_space<vmem>>, %arg4: memref<32x16xf32, #tpu.memory_space<vmem>>) attributes {dimension_semantics = [#tpu.dimension_semantics<parallel>], iteration_bounds = array<i64: 2>, scalar_prefetch = 0 : i64, scratch_operands = 0 : i64, tpu.core_type = #tpu.core_type<tc>, window_params = [{transform_indices = @transform_0, window_bounds = array<i64: 32, 16>}, {pipeline_mode = #tpu.pipeline_mode<synchronous>, transform_indices = @transform_1, window_bounds = array<i64: 16, 16>}, {pipeline_mode = #tpu.pipeline_mode<synchronous>, transform_indices = @transform_2, window_bounds = array<i64: 1, 16>}, {transform_indices = @transform_3, window_bounds = array<i64: 32, 16>}]} {
    %c0 = arith.constant 0 : index
    %c0_0 = arith.constant 0 : index
    %0 = vector.load %arg1[%c0, %c0_0] : memref<32x16xf32, #tpu.memory_space<vmem>>, vector<32x16xf32>
    %c0_1 = arith.constant 0 : index
    %c0_2 = arith.constant 0 : index
    %1 = vector.load %arg2[%c0_1, %c0_2] : memref<16x16xf32, #tpu.memory_space<vmem>>, vector<16x16xf32>
    %cst = arith.constant dense<0.000000e+00> : vector<32x16xf32>
    %2 = tpu.matmul %0, %1, %cst {dimension_numbers = #tpu.dot_dimension_numbers<[1], [0], [0], [1], [0, 0, 1, 1], [], []>} : vector<32x16xf32>, vector<16x16xf32>, vector<32x16xf32> -> vector<32x16xf32>
    %c0_3 = arith.constant 0 : index
    %c0_4 = arith.constant 0 : index
    %3 = vector.load %arg3[%c0_3, %c0_4] : memref<1x16xf32, #tpu.memory_space<vmem>>, vector<1x16xf32>
    %4 = vector.broadcast %3 : vector<1x16xf32> to vector<32x16xf32>
    %5 = arith.addf %2, %4 : vector<32x16xf32>
    %c0_5 = arith.constant 0 : index
    %c0_6 = arith.constant 0 : index
    %6 = vector.load %arg4[%c0_5, %c0_6] : memref<32x16xf32, #tpu.memory_space<vmem>>, vector<32x16xf32>
    tpu.vector_store %arg4[%c0_5, %c0_6], %5 {strides = array<i32>} : memref<32x16xf32, #tpu.memory_space<vmem>>, vector<32x16xf32>,
    return
  }
  func.func @transform_0(%arg0: i32) -> (i32, i32) {
    %c0_i32 = arith.constant 0 : i32
    %c0_i32_0 = arith.constant 0 : i32
    return %arg0, %c0_i32 : i32, i32
  }
  func.func @transform_1(%arg0: i32) -> (i32, i32) {
    %c0_i32 = arith.constant 0 : i32
    %c0_i32_0 = arith.constant 0 : i32
    %c0_i32_1 = arith.constant 0 : i32
    return %c0_i32, %c0_i32_0 : i32, i32
  }
  func.func @transform_2(%arg0: i32) -> (i32, i32) {
    %c0_i32 = arith.constant 0 : i32
    %c0_i32_0 = arith.constant 0 : i32
    %c0_i32_1 = arith.constant 0 : i32
    return %c0_i32, %c0_i32_0 : i32, i32
  }
  func.func @transform_3(%arg0: i32) -> (i32, i32) {
    %c0_i32 = arith.constant 0 : i32
    %c0_i32_0 = arith.constant 0 : i32
    return %arg0, %c0_i32 : i32, i32
  }
}

module attributes {stable_mosaic.version = 11 : i64} {
  func.func @token_mix_out_kernel(%arg0: i32, %arg1: memref<16x32xf32, #tpu.memory_space<vmem>>, %arg2: memref<16x32xf32, #tpu.memory_space<vmem>>, %arg3: memref<16x32xf32, #tpu.memory_space<vmem>>, %arg4: memref<1x32xf32, #tpu.memory_space<vmem>>, %arg5: memref<1x32xf32, #tpu.memory_space<vmem>>, %arg6: memref<32x32xf32, #tpu.memory_space<vmem>>, %arg7: memref<1x32xf32, #tpu.memory_space<vmem>>, %arg8: memref<32x32xf32, #tpu.memory_space<vmem>>, %arg9: memref<1x32xf32, #tpu.memory_space<vmem>>, %arg10: memref<16x32xf32, #tpu.memory_space<vmem>>) attributes {dimension_semantics = [#tpu.dimension_semantics<parallel>], iteration_bounds = array<i64: 2>, scalar_prefetch = 0 : i64, scratch_operands = 0 : i64, tpu.core_type = #tpu.core_type<tc>, window_params = [{transform_indices = @transform_0, window_bounds = array<i64: 16, 32>}, {transform_indices = @transform_1, window_bounds = array<i64: 16, 32>}, {transform_indices = @transform_2, window_bounds = array<i64: 16, 32>}, {pipeline_mode = #tpu.pipeline_mode<synchronous>, transform_indices = @transform_3, window_bounds = array<i64: 1, 32>}, {pipeline_mode = #tpu.pipeline_mode<synchronous>, transform_indices = @transform_4, window_bounds = array<i64: 1, 32>}, {pipeline_mode = #tpu.pipeline_mode<synchronous>, transform_indices = @transform_5, window_bounds = array<i64: 32, 32>}, {pipeline_mode = #tpu.pipeline_mode<synchronous>, transform_indices = @transform_6, window_bounds = array<i64: 1, 32>}, {pipeline_mode = #tpu.pipeline_mode<synchronous>, transform_indices = @transform_7, window_bounds = array<i64: 32, 32>}, {pipeline_mode = #tpu.pipeline_mode<synchronous>, transform_indices = @transform_8, window_bounds = array<i64: 1, 32>}, {transform_indices = @transform_9, window_bounds = array<i64: 16, 32>}]} {
    %c0 = arith.constant 0 : index
    %c0_0 = arith.constant 0 : index
    %0 = vector.load %arg3[%c0, %c0_0] : memref<16x32xf32, #tpu.memory_space<vmem>>, vector<16x32xf32>
    %c0_1 = arith.constant 0 : index
    %c0_2 = arith.constant 0 : index
    %1 = vector.load %arg4[%c0_1, %c0_2] : memref<1x32xf32, #tpu.memory_space<vmem>>, vector<1x32xf32>
    %c0_3 = arith.constant 0 : index
    %c0_4 = arith.constant 0 : index
    %2 = vector.load %arg5[%c0_3, %c0_4] : memref<1x32xf32, #tpu.memory_space<vmem>>, vector<1x32xf32>
    %cst = arith.constant dense<0.000000e+00> : vector<16xf32>
    %3 = vector.multi_reduction <add>, %0, %cst [1] : vector<16x32xf32> to vector<16xf32>
    %4 = vector.shape_cast %3 : vector<16xf32> to vector<16x1xf32>
    %cst_5 = arith.constant 3.200000e+01 : f32
    %5 = vector.broadcast %cst_5 : f32 to vector<16x1xf32>
    %6 = arith.divf %4, %5 : vector<16x1xf32>
    %7 = vector.broadcast %6 : vector<16x1xf32> to vector<16x32xf32>
    %8 = arith.subf %0, %7 : vector<16x32xf32>
    %9 = arith.mulf %8, %8 : vector<16x32xf32>
    %cst_6 = arith.constant dense<0.000000e+00> : vector<16xf32>
    %10 = vector.multi_reduction <add>, %9, %cst_6 [1] : vector<16x32xf32> to vector<16xf32>
    %11 = vector.shape_cast %10 : vector<16xf32> to vector<16x1xf32>
    %cst_7 = arith.constant 3.200000e+01 : f32
    %12 = vector.broadcast %cst_7 : f32 to vector<16x1xf32>
    %13 = arith.divf %11, %12 : vector<16x1xf32>
    %14 = vector.broadcast %6 : vector<16x1xf32> to vector<16x32xf32>
    %15 = arith.subf %0, %14 : vector<16x32xf32>
    %cst_8 = arith.constant 9.99999974E-6 : f32
    %16 = vector.broadcast %cst_8 : f32 to vector<16x1xf32>
    %17 = arith.addf %13, %16 : vector<16x1xf32>
    %18 = math.rsqrt %17 : vector<16x1xf32>
    %19 = vector.broadcast %18 : vector<16x1xf32> to vector<16x32xf32>
    %20 = arith.mulf %15, %19 : vector<16x32xf32>
    %21 = vector.broadcast %1 : vector<1x32xf32> to vector<16x32xf32>
    %22 = arith.mulf %20, %21 : vector<16x32xf32>
    %23 = vector.broadcast %2 : vector<1x32xf32> to vector<16x32xf32>
    %24 = arith.addf %22, %23 : vector<16x32xf32>
    %c0_9 = arith.constant 0 : index
    %c0_10 = arith.constant 0 : index
    %25 = vector.load %arg6[%c0_9, %c0_10] : memref<32x32xf32, #tpu.memory_space<vmem>>, vector<32x32xf32>
    %cst_11 = arith.constant dense<0.000000e+00> : vector<16x32xf32>
    %26 = tpu.matmul %24, %25, %cst_11 {dimension_numbers = #tpu.dot_dimension_numbers<[1], [0], [0], [1], [0, 0, 1, 1], [], []>} : vector<16x32xf32>, vector<32x32xf32>, vector<16x32xf32> -> vector<16x32xf32>
    %c0_12 = arith.constant 0 : index
    %c0_13 = arith.constant 0 : index
    %27 = vector.load %arg7[%c0_12, %c0_13] : memref<1x32xf32, #tpu.memory_space<vmem>>, vector<1x32xf32>
    %28 = vector.broadcast %27 : vector<1x32xf32> to vector<16x32xf32>
    %29 = arith.addf %26, %28 : vector<16x32xf32>
    %c0_14 = arith.constant 0 : index
    %c0_15 = arith.constant 0 : index
    %30 = vector.load %arg1[%c0_14, %c0_15] : memref<16x32xf32, #tpu.memory_space<vmem>>, vector<16x32xf32>
    %c0_16 = arith.constant 0 : index
    %c0_17 = arith.constant 0 : index
    %31 = vector.load %arg2[%c0_16, %c0_17] : memref<16x32xf32, #tpu.memory_space<vmem>>, vector<16x32xf32>
    %32 = arith.addf %30, %31 : vector<16x32xf32>
    %33 = arith.addf %32, %29 : vector<16x32xf32>
    %c0_18 = arith.constant 0 : index
    %c0_19 = arith.constant 0 : index
    %34 = vector.load %arg8[%c0_18, %c0_19] : memref<32x32xf32, #tpu.memory_space<vmem>>, vector<32x32xf32>
    %cst_20 = arith.constant dense<0.000000e+00> : vector<16x32xf32>
    %35 = tpu.matmul %33, %34, %cst_20 {dimension_numbers = #tpu.dot_dimension_numbers<[1], [0], [0], [1], [0, 0, 1, 1], [], []>} : vector<16x32xf32>, vector<32x32xf32>, vector<16x32xf32> -> vector<16x32xf32>
    %c0_21 = arith.constant 0 : index
    %c0_22 = arith.constant 0 : index
    %36 = vector.load %arg9[%c0_21, %c0_22] : memref<1x32xf32, #tpu.memory_space<vmem>>, vector<1x32xf32>
    %37 = vector.broadcast %36 : vector<1x32xf32> to vector<16x32xf32>
    %38 = arith.addf %35, %37 : vector<16x32xf32>
    %39 = arith.addf %38, %0 : vector<16x32xf32>
    %c0_23 = arith.constant 0 : index
    %c0_24 = arith.constant 0 : index
    %40 = vector.load %arg10[%c0_23, %c0_24] : memref<16x32xf32, #tpu.memory_space<vmem>>, vector<16x32xf32>
    tpu.vector_store %arg10[%c0_23, %c0_24], %39 {strides = array<i32>} : memref<16x32xf32, #tpu.memory_space<vmem>>, vector<16x32xf32>,
    return
  }
  func.func @transform_0(%arg0: i32) -> (i32, i32) {
    %c0_i32 = arith.constant 0 : i32
    %c0_i32_0 = arith.constant 0 : i32
    return %arg0, %c0_i32 : i32, i32
  }
  func.func @transform_1(%arg0: i32) -> (i32, i32) {
    %c0_i32 = arith.constant 0 : i32
    %c0_i32_0 = arith.constant 0 : i32
    return %arg0, %c0_i32 : i32, i32
  }
  func.func @transform_2(%arg0: i32) -> (i32, i32) {
    %c0_i32 = arith.constant 0 : i32
    %c0_i32_0 = arith.constant 0 : i32
    return %arg0, %c0_i32 : i32, i32
  }
  func.func @transform_3(%arg0: i32) -> (i32, i32) {
    %c0_i32 = arith.constant 0 : i32
    %c0_i32_0 = arith.constant 0 : i32
    %c0_i32_1 = arith.constant 0 : i32
    return %c0_i32, %c0_i32_0 : i32, i32
  }
  func.func @transform_4(%arg0: i32) -> (i32, i32) {
    %c0_i32 = arith.constant 0 : i32
    %c0_i32_0 = arith.constant 0 : i32
    %c0_i32_1 = arith.constant 0 : i32
    return %c0_i32, %c0_i32_0 : i32, i32
  }
  func.func @transform_5(%arg0: i32) -> (i32, i32) {
    %c0_i32 = arith.constant 0 : i32
    %c0_i32_0 = arith.constant 0 : i32
    %c0_i32_1 = arith.constant 0 : i32
    return %c0_i32, %c0_i32_0 : i32, i32
  }
  func.func @transform_6(%arg0: i32) -> (i32, i32) {
    %c0_i32 = arith.constant 0 : i32
    %c0_i32_0 = arith.constant 0 : i32
    %c0_i32_1 = arith.constant 0 : i32
    return %c0_i32, %c0_i32_0 : i32, i32
  }
  func.func @transform_7(%arg0: i32) -> (i32, i32) {
    %c0_i32 = arith.constant 0 : i32
    %c0_i32_0 = arith.constant 0 : i32
    %c0_i32_1 = arith.constant 0 : i32
    return %c0_i32, %c0_i32_0 : i32, i32
  }
  func.func @transform_8(%arg0: i32) -> (i32, i32) {
    %c0_i32 = arith.constant 0 : i32
    %c0_i32_0 = arith.constant 0 : i32
    %c0_i32_1 = arith.constant 0 : i32
    return %c0_i32, %c0_i32_0 : i32, i32
  }
  func.func @transform_9(%arg0: i32) -> (i32, i32) {
    %c0_i32 = arith.constant 0 : i32
    %c0_i32_0 = arith.constant 0 : i32
    return %arg0, %c0_i32 : i32, i32
  }
}

module attributes {stable_mosaic.version = 11 : i64} {
  func.func @channel_mlp_kernel(%arg0: i32, %arg1: memref<16x32xf32, #tpu.memory_space<vmem>>, %arg2: memref<1x32xf32, #tpu.memory_space<vmem>>, %arg3: memref<1x32xf32, #tpu.memory_space<vmem>>, %arg4: memref<32x128xf32, #tpu.memory_space<vmem>>, %arg5: memref<1x128xf32, #tpu.memory_space<vmem>>, %arg6: memref<128x32xf32, #tpu.memory_space<vmem>>, %arg7: memref<1x32xf32, #tpu.memory_space<vmem>>, %arg8: memref<16x32xf32, #tpu.memory_space<vmem>>) attributes {dimension_semantics = [#tpu.dimension_semantics<parallel>], iteration_bounds = array<i64: 2>, scalar_prefetch = 0 : i64, scratch_operands = 0 : i64, tpu.core_type = #tpu.core_type<tc>, window_params = [{transform_indices = @transform_0, window_bounds = array<i64: 16, 32>}, {pipeline_mode = #tpu.pipeline_mode<synchronous>, transform_indices = @transform_1, window_bounds = array<i64: 1, 32>}, {pipeline_mode = #tpu.pipeline_mode<synchronous>, transform_indices = @transform_2, window_bounds = array<i64: 1, 32>}, {pipeline_mode = #tpu.pipeline_mode<synchronous>, transform_indices = @transform_3, window_bounds = array<i64: 32, 128>}, {pipeline_mode = #tpu.pipeline_mode<synchronous>, transform_indices = @transform_4, window_bounds = array<i64: 1, 128>}, {pipeline_mode = #tpu.pipeline_mode<synchronous>, transform_indices = @transform_5, window_bounds = array<i64: 128, 32>}, {pipeline_mode = #tpu.pipeline_mode<synchronous>, transform_indices = @transform_6, window_bounds = array<i64: 1, 32>}, {transform_indices = @transform_7, window_bounds = array<i64: 16, 32>}]} {
    %c0 = arith.constant 0 : index
    %c0_0 = arith.constant 0 : index
    %0 = vector.load %arg1[%c0, %c0_0] : memref<16x32xf32, #tpu.memory_space<vmem>>, vector<16x32xf32>
    %c0_1 = arith.constant 0 : index
    %c0_2 = arith.constant 0 : index
    %1 = vector.load %arg2[%c0_1, %c0_2] : memref<1x32xf32, #tpu.memory_space<vmem>>, vector<1x32xf32>
    %c0_3 = arith.constant 0 : index
    %c0_4 = arith.constant 0 : index
    %2 = vector.load %arg3[%c0_3, %c0_4] : memref<1x32xf32, #tpu.memory_space<vmem>>, vector<1x32xf32>
    %cst = arith.constant dense<0.000000e+00> : vector<16xf32>
    %3 = vector.multi_reduction <add>, %0, %cst [1] : vector<16x32xf32> to vector<16xf32>
    %4 = vector.shape_cast %3 : vector<16xf32> to vector<16x1xf32>
    %cst_5 = arith.constant 3.200000e+01 : f32
    %5 = vector.broadcast %cst_5 : f32 to vector<16x1xf32>
    %6 = arith.divf %4, %5 : vector<16x1xf32>
    %7 = vector.broadcast %6 : vector<16x1xf32> to vector<16x32xf32>
    %8 = arith.subf %0, %7 : vector<16x32xf32>
    %9 = arith.mulf %8, %8 : vector<16x32xf32>
    %cst_6 = arith.constant dense<0.000000e+00> : vector<16xf32>
    %10 = vector.multi_reduction <add>, %9, %cst_6 [1] : vector<16x32xf32> to vector<16xf32>
    %11 = vector.shape_cast %10 : vector<16xf32> to vector<16x1xf32>
    %cst_7 = arith.constant 3.200000e+01 : f32
    %12 = vector.broadcast %cst_7 : f32 to vector<16x1xf32>
    %13 = arith.divf %11, %12 : vector<16x1xf32>
    %14 = vector.broadcast %6 : vector<16x1xf32> to vector<16x32xf32>
    %15 = arith.subf %0, %14 : vector<16x32xf32>
    %cst_8 = arith.constant 9.99999974E-6 : f32
    %16 = vector.broadcast %cst_8 : f32 to vector<16x1xf32>
    %17 = arith.addf %13, %16 : vector<16x1xf32>
    %18 = math.rsqrt %17 : vector<16x1xf32>
    %19 = vector.broadcast %18 : vector<16x1xf32> to vector<16x32xf32>
    %20 = arith.mulf %15, %19 : vector<16x32xf32>
    %21 = vector.broadcast %1 : vector<1x32xf32> to vector<16x32xf32>
    %22 = arith.mulf %20, %21 : vector<16x32xf32>
    %23 = vector.broadcast %2 : vector<1x32xf32> to vector<16x32xf32>
    %24 = arith.addf %22, %23 : vector<16x32xf32>
    %c0_9 = arith.constant 0 : index
    %c0_10 = arith.constant 0 : index
    %25 = vector.load %arg4[%c0_9, %c0_10] : memref<32x128xf32, #tpu.memory_space<vmem>>, vector<32x128xf32>
    %cst_11 = arith.constant dense<0.000000e+00> : vector<16x128xf32>
    %26 = tpu.matmul %24, %25, %cst_11 {dimension_numbers = #tpu.dot_dimension_numbers<[1], [0], [0], [1], [0, 0, 1, 1], [], []>} : vector<16x32xf32>, vector<32x128xf32>, vector<16x128xf32> -> vector<16x128xf32>
    %c0_12 = arith.constant 0 : index
    %c0_13 = arith.constant 0 : index
    %27 = vector.load %arg5[%c0_12, %c0_13] : memref<1x128xf32, #tpu.memory_space<vmem>>, vector<1x128xf32>
    %28 = vector.broadcast %27 : vector<1x128xf32> to vector<16x128xf32>
    %29 = arith.addf %26, %28 : vector<16x128xf32>
    %cst_14 = arith.constant 5.000000e-01 : f32
    %30 = vector.broadcast %cst_14 : f32 to vector<16x128xf32>
    %31 = arith.mulf %30, %29 : vector<16x128xf32>
    %cst_15 = arith.constant 0.707106769 : f32
    %32 = vector.broadcast %cst_15 : f32 to vector<16x128xf32>
    %33 = arith.mulf %29, %32 : vector<16x128xf32>
    %34 = math.erf %33 : vector<16x128xf32>
    %cst_16 = arith.constant 1.000000e+00 : f32
    %35 = vector.broadcast %cst_16 : f32 to vector<16x128xf32>
    %36 = arith.addf %35, %34 : vector<16x128xf32>
    %37 = arith.mulf %31, %36 : vector<16x128xf32>
    %c0_17 = arith.constant 0 : index
    %c0_18 = arith.constant 0 : index
    %38 = vector.load %arg6[%c0_17, %c0_18] : memref<128x32xf32, #tpu.memory_space<vmem>>, vector<128x32xf32>
    %cst_19 = arith.constant dense<0.000000e+00> : vector<16x32xf32>
    %39 = tpu.matmul %37, %38, %cst_19 {dimension_numbers = #tpu.dot_dimension_numbers<[1], [0], [0], [1], [0, 0, 1, 1], [], []>} : vector<16x128xf32>, vector<128x32xf32>, vector<16x32xf32> -> vector<16x32xf32>
    %c0_20 = arith.constant 0 : index
    %c0_21 = arith.constant 0 : index
    %40 = vector.load %arg7[%c0_20, %c0_21] : memref<1x32xf32, #tpu.memory_space<vmem>>, vector<1x32xf32>
    %41 = vector.broadcast %40 : vector<1x32xf32> to vector<16x32xf32>
    %42 = arith.addf %39, %41 : vector<16x32xf32>
    %43 = arith.addf %42, %0 : vector<16x32xf32>
    %c0_22 = arith.constant 0 : index
    %c0_23 = arith.constant 0 : index
    %44 = vector.load %arg8[%c0_22, %c0_23] : memref<16x32xf32, #tpu.memory_space<vmem>>, vector<16x32xf32>
    tpu.vector_store %arg8[%c0_22, %c0_23], %43 {strides = array<i32>} : memref<16x32xf32, #tpu.memory_space<vmem>>, vector<16x32xf32>,
    return
  }
  func.func @transform_0(%arg0: i32) -> (i32, i32) {
    %c0_i32 = arith.constant 0 : i32
    %c0_i32_0 = arith.constant 0 : i32
    return %arg0, %c0_i32 : i32, i32
  }
  func.func @transform_1(%arg0: i32) -> (i32, i32) {
    %c0_i32 = arith.constant 0 : i32
    %c0_i32_0 = arith.constant 0 : i32
    %c0_i32_1 = arith.constant 0 : i32
    return %c0_i32, %c0_i32_0 : i32, i32
  }
  func.func @transform_2(%arg0: i32) -> (i32, i32) {
    %c0_i32 = arith.constant 0 : i32
    %c0_i32_0 = arith.constant 0 : i32
    %c0_i32_1 = arith.constant 0 : i32
    return %c0_i32, %c0_i32_0 : i32, i32
  }
  func.func @transform_3(%arg0: i32) -> (i32, i32) {
    %c0_i32 = arith.constant 0 : i32
    %c0_i32_0 = arith.constant 0 : i32
    %c0_i32_1 = arith.constant 0 : i32
    return %c0_i32, %c0_i32_0 : i32, i32
  }
  func.func @transform_4(%arg0: i32) -> (i32, i32) {
    %c0_i32 = arith.constant 0 : i32
    %c0_i32_0 = arith.constant 0 : i32
    %c0_i32_1 = arith.constant 0 : i32
    return %c0_i32, %c0_i32_0 : i32, i32
  }
  func.func @transform_5(%arg0: i32) -> (i32, i32) {
    %c0_i32 = arith.constant 0 : i32
    %c0_i32_0 = arith.constant 0 : i32
    %c0_i32_1 = arith.constant 0 : i32
    return %c0_i32, %c0_i32_0 : i32, i32
  }
  func.func @transform_6(%arg0: i32) -> (i32, i32) {
    %c0_i32 = arith.constant 0 : i32
    %c0_i32_0 = arith.constant 0 : i32
    %c0_i32_1 = arith.constant 0 : i32
    return %c0_i32, %c0_i32_0 : i32, i32
  }
  func.func @transform_7(%arg0: i32) -> (i32, i32) {
    %c0_i32 = arith.constant 0 : i32
    %c0_i32_0 = arith.constant 0 : i32
    return %arg0, %c0_i32 : i32, i32
  }
}

module attributes {stable_mosaic.version = 11 : i64} {
  func.func @head_kernel(%arg0: i32, %arg1: memref<1x16x32xf32, #tpu.memory_space<vmem>>, %arg2: memref<1x32xf32, #tpu.memory_space<vmem>>, %arg3: memref<1x32xf32, #tpu.memory_space<vmem>>, %arg4: memref<32x10xf32, #tpu.memory_space<vmem>>, %arg5: memref<1x10xf32, #tpu.memory_space<vmem>>, %arg6: memref<1x1x10xf32, #tpu.memory_space<vmem>>) attributes {dimension_semantics = [#tpu.dimension_semantics<parallel>], iteration_bounds = array<i64: 2>, scalar_prefetch = 0 : i64, scratch_operands = 0 : i64, tpu.core_type = #tpu.core_type<tc>, window_params = [{transform_indices = @transform_0, window_bounds = array<i64: 1, 16, 32>}, {pipeline_mode = #tpu.pipeline_mode<synchronous>, transform_indices = @transform_1, window_bounds = array<i64: 1, 32>}, {pipeline_mode = #tpu.pipeline_mode<synchronous>, transform_indices = @transform_2, window_bounds = array<i64: 1, 32>}, {pipeline_mode = #tpu.pipeline_mode<synchronous>, transform_indices = @transform_3, window_bounds = array<i64: 32, 10>}, {pipeline_mode = #tpu.pipeline_mode<synchronous>, transform_indices = @transform_4, window_bounds = array<i64: 1, 10>}, {transform_indices = @transform_5, window_bounds = array<i64: 1, 1, 10>}]} {
    %c0 = arith.constant 0 : index
    %c0_0 = arith.constant 0 : index
    %c0_1 = arith.constant 0 : index
    %0 = vector.load %arg1[%c0, %c0_0, %c0_1] : memref<1x16x32xf32, #tpu.memory_space<vmem>>, vector<1x16x32xf32>
    %c0_2 = arith.constant 0 : index
    %c0_3 = arith.constant 0 : index
    %1 = vector.load %arg2[%c0_2, %c0_3] : memref<1x32xf32, #tpu.memory_space<vmem>>, vector<1x32xf32>
    %c0_4 = arith.constant 0 : index
    %c0_5 = arith.constant 0 : index
    %2 = vector.load %arg3[%c0_4, %c0_5] : memref<1x32xf32, #tpu.memory_space<vmem>>, vector<1x32xf32>
    %cst = arith.constant dense<0.000000e+00> : vector<1x16xf32>
    %3 = vector.multi_reduction <add>, %0, %cst [2] : vector<1x16x32xf32> to vector<1x16xf32>
    %4 = vector.shape_cast %3 : vector<1x16xf32> to vector<1x16x1xf32>
    %cst_6 = arith.constant 3.200000e+01 : f32
    %5 = vector.broadcast %cst_6 : f32 to vector<1x16x1xf32>
    %6 = arith.divf %4, %5 : vector<1x16x1xf32>
    %7 = vector.broadcast %6 : vector<1x16x1xf32> to vector<1x16x32xf32>
    %8 = arith.subf %0, %7 : vector<1x16x32xf32>
    %9 = arith.mulf %8, %8 : vector<1x16x32xf32>
    %cst_7 = arith.constant dense<0.000000e+00> : vector<1x16xf32>
    %10 = vector.multi_reduction <add>, %9, %cst_7 [2] : vector<1x16x32xf32> to vector<1x16xf32>
    %11 = vector.shape_cast %10 : vector<1x16xf32> to vector<1x16x1xf32>
    %cst_8 = arith.constant 3.200000e+01 : f32
    %12 = vector.broadcast %cst_8 : f32 to vector<1x16x1xf32>
    %13 = arith.divf %11, %12 : vector<1x16x1xf32>
    %14 = vector.broadcast %6 : vector<1x16x1xf32> to vector<1x16x32xf32>
    %15 = arith.subf %0, %14 : vector<1x16x32xf32>
    %cst_9 = arith.constant 9.99999974E-6 : f32
    %16 = vector.broadcast %cst_9 : f32 to vector<1x16x1xf32>
    %17 = arith.addf %13, %16 : vector<1x16x1xf32>
    %18 = math.rsqrt %17 : vector<1x16x1xf32>
    %19 = vector.broadcast %18 : vector<1x16x1xf32> to vector<1x16x32xf32>
    %20 = arith.mulf %15, %19 : vector<1x16x32xf32>
    %21 = vector.shape_cast %1 : vector<1x32xf32> to vector<1x1x32xf32>
    %22 = vector.broadcast %21 : vector<1x1x32xf32> to vector<1x16x32xf32>
    %23 = arith.mulf %20, %22 : vector<1x16x32xf32>
    %24 = vector.shape_cast %2 : vector<1x32xf32> to vector<1x1x32xf32>
    %25 = vector.broadcast %24 : vector<1x1x32xf32> to vector<1x16x32xf32>
    %26 = arith.addf %23, %25 : vector<1x16x32xf32>
    %cst_10 = arith.constant dense<0.000000e+00> : vector<1x32xf32>
    %27 = vector.multi_reduction <add>, %26, %cst_10 [1] : vector<1x16x32xf32> to vector<1x32xf32>
    %cst_11 = arith.constant 1.600000e+01 : f32
    %28 = vector.broadcast %cst_11 : f32 to vector<1x32xf32>
    %29 = arith.divf %27, %28 : vector<1x32xf32>
    %c0_12 = arith.constant 0 : index
    %c0_13 = arith.constant 0 : index
    %30 = vector.load %arg4[%c0_12, %c0_13] : memref<32x10xf32, #tpu.memory_space<vmem>>, vector<32x10xf32>
    %cst_14 = arith.constant dense<0.000000e+00> : vector<1x10xf32>
    %31 = tpu.matmul %29, %30, %cst_14 {dimension_numbers = #tpu.dot_dimension_numbers<[1], [0], [0], [1], [0, 0, 1, 1], [], []>} : vector<1x32xf32>, vector<32x10xf32>, vector<1x10xf32> -> vector<1x10xf32>
    %c0_15 = arith.constant 0 : index
    %c0_16 = arith.constant 0 : index
    %32 = vector.load %arg5[%c0_15, %c0_16] : memref<1x10xf32, #tpu.memory_space<vmem>>, vector<1x10xf32>
    %33 = arith.addf %31, %32 : vector<1x10xf32>
    %cst_17 = arith.constant dense<0xFF800000> : vector<1xf32>
    %34 = vector.multi_reduction <maximumf>, %33, %cst_17 [1] : vector<1x10xf32> to vector<1xf32>
    %35 = vector.shape_cast %34 : vector<1xf32> to vector<1x1xf32>
    %36 = vector.broadcast %35 : vector<1x1xf32> to vector<1x10xf32>
    %37 = arith.subf %33, %36 : vector<1x10xf32>
    %38 = math.exp %37 : vector<1x10xf32>
    %cst_18 = arith.constant dense<0.000000e+00> : vector<1xf32>
    %39 = vector.multi_reduction <add>, %38, %cst_18 [1] : vector<1x10xf32> to vector<1xf32>
    %40 = vector.shape_cast %39 : vector<1xf32> to vector<1x1xf32>
    %41 = vector.broadcast %40 : vector<1x1xf32> to vector<1x10xf32>
    %42 = arith.divf %38, %41 : vector<1x10xf32>
    %c0_19 = arith.constant 0 : index
    %c0_20 = arith.constant 0 : index
    %c0_21 = arith.constant 0 : index
    %43 = vector.load %arg6[%c0_19, %c0_20, %c0_21] : memref<1x1x10xf32, #tpu.memory_space<vmem>>, vector<1x1x10xf32>
    %44 = vector.shape_cast %43 : vector<1x1x10xf32> to vector<1x10xf32>
    %45 = vector.shape_cast %42 : vector<1x10xf32> to vector<1x1x10xf32>
    tpu.vector_store %arg6[%c0_19, %c0_20, %c0_21], %45 {strides = array<i32>} : memref<1x1x10xf32, #tpu.memory_space<vmem>>, vector<1x1x10xf32>,
    return
  }
  func.func @transform_0(%arg0: i32) -> (i32, i32, i32) {
    %c0_i32 = arith.constant 0 : i32
    %c0_i32_0 = arith.constant 0 : i32
    %c0_i32_1 = arith.constant 0 : i32
    return %arg0, %c0_i32, %c0_i32_0 : i32, i32, i32
  }
  func.func @transform_1(%arg0: i32) -> (i32, i32) {
    %c0_i32 = arith.constant 0 : i32
    %c0_i32_0 = arith.constant 0 : i32
    %c0_i32_1 = arith.constant 0 : i32
    return %c0_i32, %c0_i32_0 : i32, i32
  }
  func.func @transform_2(%arg0: i32) -> (i32, i32) {
    %c0_i32 = arith.constant 0 : i32
    %c0_i32_0 = arith.constant 0 : i32
    %c0_i32_1 = arith.constant 0 : i32
    return %c0_i32, %c0_i32_0 : i32, i32
  }
  func.func @transform_3(%arg0: i32) -> (i32, i32) {
    %c0_i32 = arith.constant 0 : i32
    %c0_i32_0 = arith.constant 0 : i32
    %c0_i32_1 = arith.constant 0 : i32
    return %c0_i32, %c0_i32_0 : i32, i32
  }
  func.func @transform_4(%arg0: i32) -> (i32, i32) {
    %c0_i32 = arith.constant 0 : i32
    %c0_i32_0 = arith.constant 0 : i32
    %c0_i32_1 = arith.constant 0 : i32
    return %c0_i32, %c0_i32_0 : i32, i32
  }
  func.func @transform_5(%arg0: i32) -> (i32, i32, i32) {
    %c0_i32 = arith.constant 0 : i32
    %c0_i32_0 = arith.constant 0 : i32
    %c0_i32_1 = arith.constant 0 : i32
    return %arg0, %c0_i32, %c0_i32_0 : i32, i32, i32
  }
}

</mosaic_0001>

<bundles_post_ra>
// kernel: _lambda_.13
= control target key start
LH: loop header
LB: loop body
LE: loop exit
PB: predicated region body
PF: predicated region fallthrough
CT: control target
= control target key end

     0   :  { %8 = vsyncpa [#allocation3], 0  ;;  %s897_s0 = inlined_call_operand.hbm [shape: f32[32,32], index: 0, kind: input, shape index: {}]   ;;  %s898_s1 = inlined_call_operand.hbm [shape: f32[1,32], index: 1, kind: input, shape index: {}]   ;;  %s899_s2 = inlined_call_operand.hbm [shape: f32[1,32], index: 2, kind: input, shape index: {}]   ;;  %s900_s3 = inlined_call_operand.hbm [shape: f32[32,32], index: 3, kind: output, shape index: {}]  }
   0x1   :  { %10 = vsyncpa [#allocation3 + $0x1], 0 }
   0x2   :  { %11 = vsyncpa [#allocation6], 0 }
   0x3   :  { %12 = vsyncpa [#allocation4], 0 }
   0x4   :  { %14 = vsyncpa [#allocation4 + $0x1], 0  ;;  %s655_s12 = smov 0   ;;  %s657_s13 = smov 0  }
   0x5   :  { %s659_s14 = smov 0   ;;  %s661_s15 = smov 0  }
   0x6 LB: > { %s676_s16 = sadd.s32 4294967295, %s625_s15   ;;  %s372_s17 = sadd.s32 4294967294, %s625_s15   ;;  %s625_s15 = sphi %s661_s15, %s925_s15   ;;  %s621_s14 = sphi %s659_s14, %s924_s14   ;;  %s617_s13 = sphi %s657_s13, %s923_s13   ;;  %s613_s12 = sphi %s655_s12, %s922_s12  }
   0x7   : > { %s680_s18 = sadd.s32 1, %s625_s15   ;;  %s27_s19 = sadd.s32 1, %s621_s14 }
   0x8   : > { %s24_s20 = ssub.s32 %s625_s15, %s680_s18  ;;  %p34_p0 = scmp.ne.s32.totalorder %s621_s14, %s617_s13 }
   0x9   : > { %p25_p1 = scmp.eq.s32.totalorder %s24_s20, 0  ;;  %p35_p2 = scmp.eq.s32.totalorder %s625_s15, 0 }
   0xa   : > { %p40_p3 = scmp.ne.s32.totalorder %s617_s13, %s613_s12  ;;  %p901_p4 = scmp.eq.s32.totalorder %s676_s16, 0 }
   0xb   : > { %s692_s21 = scalar_select %p25_p1, %s621_s14, %s27_s19  }
   0xc   : > { %p694_p5 = por %p35_p2, %p34_p0  ;;  %p700_p6 = por %p901_p4, %p40_p3 }
   0xd   : > { %p106_p7 = scmp.eq.s32.totalorder %s676_s16, 1  ;;  %p112_p8 = scmp.eq.s32.totalorder %s372_s17, 1 }
   0xe   : > { %s907_s23 = scalar_select %p700_p6, 1, 0 }
   0xf   : > { %p373_p9 = scmp.ge.s32.totalorder %s625_s15, 1  ;;  %p119_p10 = scmp.lt.s32.totalorder %s625_s15, 3 }
  0x10   : > { %p707_p11 = por %p106_p7, %p34_p0  ;;  %p711_p12 = por %p112_p8, %p40_p3 }
  0x11   : > { %p715_p13 = pnand %p373_p9, %p119_p10  ;;  %s627_s27 = smov [#allocation5]  }
  0x12   : > { %s908_s24 = scalar_select %p707_p11, 1, 0 }
  0x13   : > { %s909_s25 = scalar_select %p711_p12, 1, 0 }
  0x14   : > { %s910_s26 = scalar_select %p715_p13, 1, 0 }
  0x15   : > { %p406_p2 = pneg %p715_p13  ;;  %s132_s28 = sshll.u32 %s627_s27, 4  ;;  %s133_s28 = int_to_ptr.vmem [resolvable:$true] %s132_s28 }
  0x16   : > { %p423_p4 = scmp.lt.s32.totalorder %s625_s15, 2  ;;  %p911_p0 = scmp.eq.s32.totalorder %s676_s16, 0 }
  0x17   : > { %s628_s4 = smov [#allocation7]   ;;  %s469_s8 = scalar_lea.hbm %s898_s1, 16 }
  0x18   : > { %p725_p7 = pnand %p406_p2, %p911_p0  ;;  %p731_p3 = pnand %p423_p4, %p694_p5 }
  0x19   : > { %s143_s5 = sshll.u32 %s628_s4, 4  ;;  %p470_p8 = scmp.ne.s32.totalorder %s898_s1, %s469_s8  ;;  %s735_s5 = int_to_ptr.vmem [resolvable:$true] %s143_s5 }
  0x1a   : > { %s913_s30 = scalar_select %p731_p3, 1, 0 }
  0x1b   : > { %p471_p9 = pneg %p725_p7  ;;  %p476_p10 = scmp.lt.u32.totalorder %s469_s8, %s898_s1 }
  0x1d   : > { %p472_p4 = pnand %p471_p9, %p470_p8 }
  0x1f   : > { %p473_p5 = pneg %p472_p4 }
  0x21   : > { %p478_p2 = pnand %p476_p10, %p473_p5 }
  0x23   : > { %481 = shalt.err (!%p478_p2)
}
  0x24   : > { %s482_s19 = scalar_lea.vmem %s133_s28, 16  ;;  %s489_s20 = scalar_lea.vmem %s133_s28, 32 }
  0x25   : > { %p483_p0 = scmp.ne.s32.totalorder %s133_s28, %s482_s19  ;;  %p490_p11 = scmp.lt.s32.totalorder %s133_s28, %s133_s28 }
  0x26   : > { %p491_p6 = scmp.lt.s32.totalorder %s489_s20, %s482_s19 }
  0x27   : > { %p485_p1 = pnand %p483_p0, %p471_p9 }
  0x28   : > { %p492_p13 = por %p491_p6, %p490_p11 }
  0x29   : > { %p486_p12 = pneg %p485_p1 }
  0x2b   : > { %p493_p3 = pnand %p492_p13, %p486_p12 }
  0x2d   : > { %496 = shalt.err (!%p493_p3)
}
  0x2e   : > { %409 = dma.hbm_to_vmem [thread:$0]  (!%p725_p7), %s898_s1, 16, %s133_s28, [#allocation6]  }
  0x2f   : > { %s154_s4 = sand.u32 1, %s621_s14   ;;  %s497_s8 = scalar_lea.hbm %s899_s2, 16 }
  0x30   : > { %p498_p1 = scmp.ne.s32.totalorder %s899_s2, %s497_s8  ;;  %p504_p12 = scmp.lt.u32.totalorder %s497_s8, %s899_s2 }
  0x32   : > { %p500_p6 = pnand %p498_p1, %p471_p9 }
  0x34   : > { %p501_p11 = pneg %p500_p6 }
  0x36   : > { %p506_p13 = pnand %p504_p12, %p501_p11 }
  0x38   : > { %509 = shalt.err (!%p506_p13)
}
  0x39   : > { %s510_s28 = scalar_lea.vmem %s735_s5, 16  ;;  %s517_s19 = scalar_lea.vmem %s735_s5, 32 }
  0x3a   : > { %p511_p3 = scmp.ne.s32.totalorder %s735_s5, %s510_s28  ;;  %p518_p5 = scmp.lt.s32.totalorder %s735_s5, %s735_s5 }
  0x3b   : > { %p519_p10 = scmp.lt.s32.totalorder %s517_s19, %s510_s28 }
  0x3c   : > { %p513_p8 = pnand %p511_p3, %p471_p9 }
  0x3d   : > { %p520_p2 = por %p519_p10, %p518_p5 }
  0x3e   : > { %p514_p4 = pneg %p513_p8 }
  0x40   : > { %p521_p0 = pnand %p520_p2, %p514_p4 }
  0x42   : > { %524 = shalt.err (!%p521_p0)
}
  0x43   : > { %412 = dma.hbm_to_vmem [thread:$0]  (!%p725_p7), %s899_s2, 16, %s735_s5, [#allocation6]  }
  0x44   : > { %s377_s27 = sshll.u32 %s154_s4, 4  ;;  %s392_s6 = sshll.u32 %s625_s15, 8 }
  0x45   : > { %s790_s9 = scalar_lea.hbm %s897_s0, %s392_s6  ;;  %s158_s29 = scalar_lea.vmem [#allocation2], %s377_s27 }
  0x46   : > { %s165_s10 = sshll.u32 %s158_s29, 4  ;;  %s794_s11 = scalar_lea.sflag [#allocation3], %s154_s4  ;;  %s792_s10 = int_to_ptr.vmem [resolvable:$true] %s165_s10 }
  0x47   : > { %s525_s17 = scalar_lea.hbm %s790_s9, 256  ;;  %p914_p7 = scmp.ne.s32.totalorder %s913_s30, 0 }
  0x48   : > { %p526_p9 = scmp.ne.s32.totalorder %s790_s9, %s525_s17  ;;  %s530_s19 = scalar_lea.hbm %s897_s0, 512 }
  0x49   : > { %p527_p1 = pneg %p914_p7  ;;  %p531_p12 = scmp.lt.u32.totalorder %s790_s9, %s897_s0 }
  0x4a   : > { %p532_p13 = scmp.lt.u32.totalorder %s530_s19, %s525_s17  ;;  %p534_p8 = scmp.lt.u32.totalorder %s525_s17, %s790_s9 }
  0x4b   : > { %p528_p6 = pnand %p527_p1, %p526_p9 }
  0x4c   : > { %p533_p3 = por %p532_p13, %p531_p12 }
  0x4d   : > { %p529_p11 = pneg %p528_p6 }
  0x4e   : > { %p535_p4 = por %p534_p8, %p533_p3 }
  0x50   : > { %p536_p5 = pnand %p535_p4, %p529_p11 }
  0x52   : > { %539 = shalt.err (!%p536_p5)
}
  0x53   : > { %s540_s4 = scalar_lea.vmem %s792_s10, 256  ;;  %s629_s27 = smov [#allocation2]  }
  0x54   : > { %p541_p10 = scmp.ne.s32.totalorder %s792_s10, %s540_s4  ;;  %s545_s6 = sshll.u32 %s629_s27, 4  ;;  %s546_s6 = int_to_ptr.vmem [resolvable:$false] %s545_s6 }
  0x55   : > { %s547_s7 = scalar_lea.vmem %s546_s6, 512  ;;  %p548_p9 = scmp.lt.s32.totalorder %s792_s10, %s546_s6 }
  0x56   : > { %p543_p2 = pnand %p541_p10, %p527_p1  ;;  %p549_p6 = scmp.lt.s32.totalorder %s547_s7, %s540_s4 }
  0x58   : > { %p544_p0 = pneg %p543_p2  ;;  %p550_p12 = por %p549_p6, %p548_p9 }
  0x5a   : > { %p551_p13 = pnand %p550_p12, %p544_p0 }
  0x5c   : > { %554 = shalt.err (!%p551_p13)
}
  0x5d   : > { %s630_s8 = smov 128   ;;  %s631_s29 = smov 8  }
  0x5e   : > { %416 = dma.hbm_to_vmem [thread:$0]  (!%p914_p7), %s790_s9, 256, %s792_s10, %s794_s11, %s630_s8, %s630_s8, %s631_s29  }
  0x5f   : > { %p915_p1 = scmp.ne.s32.totalorder %s910_s26, 0 }
  0x60   : > { %s825_s17 = sand.u32 (!%p915_p1), 1, %s617_s13   ;;  %p916_p11 = scmp.ne.s32.totalorder (!%p915_p1), %s907_s23, 0 }
  0x61   : > { %177 = sbr.rel (%p915_p1) target bundleno = 441 (0x1b9), region = 32  ;;  %s381_s5 = sshll.u32 (!%p915_p1), %s825_s17, 4 }
  0x62   : > { %s180_s28 = scalar_lea.sflag (!%p915_p1), [#allocation3], %s825_s17  ;;  %s183_s19 = scalar_lea.vmem (!%p915_p1), [#allocation2], %s381_s5 }
  0x68   : > { %600 = dma.done.wait (%p916_p11), %s180_s28, 256  }
  0x69   : > { %602 = vsyncadd (%p916_p11), %s180_s28, 4294967040  ;;  %p917_p7 = scmp.eq.s32.totalorder %s676_s16, 0 }
  0x6b   : > { %604 = dma.done.wait (%p917_p7), [#allocation6], 32   ;;  %p918_p3 = pmov %p917_p7 }
  0x6c   : > { %vm220_vm0 = vcmask 261120   ;;  %v216_v0 = vld [vmem:[%s183_s19] sm:$0xff]  ;;  %v217_v1 = vld [vmem:[%s183_s19 + $0x8] sm:$0xff]  ;;  %s393_s23 = sshll.u32 %s676_s16, 8  ;;  %s213_s26 = scalar_lea.vmem [#allocation8], %s381_s5 }
  0x6d   : > { %606 = vsyncadd (%p918_p3), [#allocation6], 4294967264  ;;  %v221_v2 = vsel %vm220_vm0, %v216_v0, 0.0  ;;  %v224_v3 = vsel %vm220_vm0, %v217_v1, 0.0  ;;  %v385_v21 = vld [vmem:[#allocation5] ss:$0 sm:$0xff]  ;;  %s850_s11 = scalar_lea.hbm %s900_s3, %s393_s23 }
  0x6e   : > { %222 = vadd.xlane.f32.xlu0 %v221_v2  ;;  %v386_v23 = vld [vmem:[#allocation7] ss:$0 sm:$0xff]  ;;  %s280_s30 = sshll.u32 %s213_s26, 4  ;;  %s267_s16 = scalar_lea.sflag [#allocation4], %s825_s17  ;;  %s852_s30 = int_to_ptr.vmem [resolvable:$true] %s280_s30 }
  0x6f   : > { %s555_s20 = scalar_lea.vmem %s852_s30, 256  ;;  %p919_p4 = scmp.ne.s32.totalorder %s908_s24, 0 }
  0x70   : > { %p556_p8 = scmp.ne.s32.totalorder %s852_s30, %s555_s20  ;;  %s632_s22 = smov [#allocation8]  }
  0x71   : > { %s559_s4 = sshll.u32 %s632_s22, 4  ;;  %s560_s4 = int_to_ptr.vmem [resolvable:$false] %s559_s4 }
  0x72   : > { %225 = vadd.xlane.f32.xlu0 %v224_v3  ;;  %p557_p5 = pnand %p556_p8, %p919_p4  ;;  %s561_s27 = scalar_lea.vmem %s560_s4, 512 }
  0x73   : > { %p562_p2 = scmp.lt.s32.totalorder %s852_s30, %s560_s4  ;;  %p563_p0 = scmp.lt.s32.totalorder %s561_s27, %s555_s20 }
  0x74   : > { %p558_p10 = pneg %p557_p5 }
  0x75   : > { %p564_p9 = por %p563_p0, %p562_p2 }
  0x77   : > { %p565_p6 = pnand %p564_p9, %p558_p10 }
  0xfb   : > { %v223_v4 = vpop.xlane.xlu0 %222 }
  0xfc   : > { %v228_v5 = vmul.f32 0.03125, %v223_v4 }
  0xfe   : > { %v230_v6 = vsub.f32 %v216_v0, %v228_v5 }
  0xff   : > { %v226_v7 = vpop.xlane.xlu0 %225 }
 0x100   : > { %v229_v8 = vmul.f32 0.03125, %v226_v7  ;;  %v232_v9 = vmul.f32 %v230_v6, %v230_v6 }
 0x102   : > { %v231_v10 = vsub.f32 %v217_v1, %v229_v8  ;;  %v234_v11 = vsel %vm220_vm0, %v232_v9, 0.0 }
 0x103   : > { %235 = vadd.xlane.f32.xlu1 %v234_v11 }
 0x104   : > { %v233_v12 = vmul.f32 %v231_v10, %v231_v10 }
 0x106   : > { %v237_v13 = vsel %vm220_vm0, %v233_v12, 0.0 }
 0x107   : > { %238 = vadd.xlane.f32.xlu1 %v237_v13 }
 0x190   : > { %v236_v14 = vpop.xlane.xlu1 %235 }
 0x191   : > { %v240_v15 = vmul.f32 0.03125, %v236_v14 }
 0x193   : > { %v242_v16 = vadd.f32 1e-05, %v240_v15 }
 0x194   : > { %v239_v17 = vpop.xlane.xlu1 %238 }
 0x195   : > { %465 = vrsqrt.f32 %v242_v16  ;;  %v241_v18 = vmul.f32 0.03125, %v239_v17 }
 0x197   : > { %v243_v19 = vadd.f32 1e-05, %v241_v18 }
 0x199   : > { %467 = vrsqrt.f32 %v243_v19 }
 0x19f   : > { %v466_v20 = vpop.eup %465 }
 0x1a0   : > { %v246_v22 = vmul.f32 %v466_v20, %v230_v6 }
 0x1a2   : > { %v254_v24 = vmul.f32 %v385_v21, %v246_v22 }
 0x1a3   : > { %v468_v25 = vpop.eup %467 }
 0x1a4   : > { %v262_v26 = vadd.f32 %v386_v23, %v254_v24  ;;  %v247_v27 = vmul.f32 %v468_v25, %v231_v10 }
 0x1a6   : > { %v255_v28 = vmul.f32 %v385_v21, %v247_v27  ;;  %264 = vst.msk [vmem:[%s213_s26] sm:$0xff] %vm220_vm0, %v262_v26 }
 0x1a8   : > { %v263_v29 = vadd.f32 %v386_v23, %v255_v28 }
 0x1aa   : > { %265 = vst.msk [vmem:[%s213_s26 + $0x8] sm:$0xff] %vm220_vm0, %v263_v29 }
 0x1ab   : > { %568 = shalt.err (!%p565_p6)
}
 0x1ac   : > { %s569_s6 = scalar_lea.hbm %s850_s11, 256  ;;  %s573_s29 = scalar_lea.hbm %s900_s3, 512 }
 0x1ad   : > { %p570_p12 = scmp.ne.s32.totalorder %s850_s11, %s569_s6  ;;  %p574_p11 = scmp.lt.u32.totalorder %s850_s11, %s900_s3 }
 0x1ae   : > { %p575_p7 = scmp.lt.u32.totalorder %s573_s29, %s569_s6  ;;  %p577_p8 = scmp.lt.u32.totalorder %s569_s6, %s850_s11 }
 0x1af   : > { %p571_p13 = pnand %p570_p12, %p919_p4 }
 0x1b0   : > { %p576_p3 = por %p575_p7, %p574_p11 }
 0x1b1   : > { %p572_p1 = pneg %p571_p13 }
 0x1b2   : > { %p578_p5 = por %p577_p8, %p576_p3 }
 0x1b4   : > { %p579_p10 = pnand %p578_p5, %p572_p1 }
 0x1b6   : > { %582 = shalt.err (!%p579_p10)
}
 0x1b7   : > { %s633_s19 = smov 128   ;;  %s634_s23 = smov 8  }
 0x1b8   : > { %404 = dma.vmem_to_hbm [thread:$0]  (%p919_p4), %s852_s30, 256, %s850_s11, %s267_s16, %s633_s19, %s633_s19, %s634_s23  }
 0x1b9 PF: > { %s295_s26 = sand.u32 1, %s613_s12   ;;  %p920_p2 = scmp.ne.s32.totalorder %s909_s25, 0 }
 0x1ba   : > { %p921_p0 = scmp.ge.s32.totalorder %s625_s15, 2  ;;  %s296_s9 = scalar_lea.sflag [#allocation4], %s295_s26 }
 0x1bc   : > { %p418_p9 = pnand %p921_p0, %p920_p2 }
 0x1be   : > { %608 = dma.done.wait (!%p418_p9), %s296_s9, 256  }
 0x1bf   : > { %610 = vsyncadd (!%p418_p9), %s296_s9, 4294967040  ;;  %p17_p6 = scmp.ge.s32.totalorder %s680_s18, 4   ;;  %s922_s12 = smov %s617_s13 }
 0x1c0   : > { %s923_s13 = smov %s621_s14  ;;  %s924_s14 = smov %s692_s21 }
 0x1c1   : > { %s925_s15 = smov %s680_s18  ;;  %19 = sbr.rel (!%p17_p6) target bundleno = 6 (0x6), region = 85 }
 0x1c8   :  { %301 = vsyncpa [#allocation3], 1 }
 0x1c9   :  { %303 = vsyncpa [#allocation3 + $0x1], 1 }
 0x1ca   :  { %304 = vsyncpa [#allocation6], 1 }
 0x1cb   :  { %305 = vsyncpa [#allocation4], 1 }
 0x1cc   :  { %307 = vsyncpa [#allocation4 + $0x1], 1 }

// kernel: _lambda_.12
= control target key start
LH: loop header
LB: loop body
LE: loop exit
PB: predicated region body
PF: predicated region fallthrough
CT: control target
= control target key end

     0   :  { %12 = vsyncpa [#allocation3], 0  ;;  %s1554_s0 = inlined_call_operand.hbm [shape: f32[32,16], index: 0, kind: input, shape index: {}]   ;;  %s1555_s1 = inlined_call_operand.hbm [shape: f32[1,16], index: 1, kind: input, shape index: {}]   ;;  %s1556_s2 = inlined_call_operand.hbm [shape: f32[1,16], index: 2, kind: input, shape index: {}]   ;;  %s1557_s3 = inlined_call_operand.hbm [shape: f32[16,32], index: 3, kind: input, shape index: {}]   ;;  %s1558_s4 = inlined_call_operand.hbm [shape: f32[1,32], index: 4, kind: input, shape index: {}]   ;;  %s1559_s5 = inlined_call_operand.hbm [shape: f32[1,32], index: 5, kind: input, shape index: {}]   ;;  %s1560_s6 = inlined_call_operand.hbm [shape: f32[1,32], index: 6, kind: input, shape index: {}]   ;;  %s1561_s7 = inlined_call_operand.hbm [shape: f32[32,32], index: 7, kind: output, shape index: {}]  }
   0x1   :  { %14 = vsyncpa [#allocation3 + $0x1], 0 }
   0x2   :  { %15 = vsyncpa [#allocation6], 0 }
   0x3   :  { %16 = vsyncpa [#allocation9], 0 }
   0x4   :  { %17 = vsyncpa [#allocation12], 0 }
   0x5   :  { %18 = vsyncpa [#allocation4], 0 }
   0x6   :  { %20 = vsyncpa [#allocation4 + $0x1], 0  ;;  %s1205_s24 = smov 0   ;;  %s1207_s25 = smov 0  }
   0x7   :  { %s1209_s26 = smov 0   ;;  %s1211_s27 = smov 0  }
   0x8 LB: > { %s1153_s28 = smov [#allocation5]   ;;  %s1226_s30 = sadd.s32 4294967295, %s1151_s27   ;;  %s1151_s27 = sphi %s1211_s27, %s1589_s27   ;;  %s1147_s26 = sphi %s1209_s26, %s1588_s26   ;;  %s1143_s25 = sphi %s1207_s25, %s1587_s25   ;;  %s1139_s24 = sphi %s1205_s24, %s1586_s24  }
   0x9   : > { %s222_s29 = sshll.u32 %s1153_s28, 4  ;;  %p707_p0 = scmp.ge.s32.totalorder %s1151_s27, 1  ;;  %s1231_s29 = int_to_ptr.vmem [resolvable:$true] %s222_s29 }
   0xa   : > { %p1562_p1 = scmp.eq.s32.totalorder %s1226_s30, 0  ;;  %p209_p2 = scmp.lt.s32.totalorder %s1151_s27, 3 }
   0xb   : > { %s1154_s9 = smov [#allocation8]   ;;  %s1155_s12 = smov [#allocation11]  }
   0xc   : > { %p1233_p3 = pnand %p707_p0, %p209_p2  ;;  %s243_s10 = sshll.u32 %s1154_s9, 4  ;;  %s1240_s10 = int_to_ptr.vmem [resolvable:$true] %s243_s10 }
   0xd   : > { %s268_s13 = sshll.u32 %s1155_s12, 4  ;;  %s875_s16 = scalar_lea.hbm %s1555_s1, 16  ;;  %s1248_s13 = int_to_ptr.vmem [resolvable:$true] %s268_s13 }
   0xe   : > { %s1566_s8 = scalar_select %p1233_p3, 1, 0 }
   0xf   : > { %p784_p5 = pneg %p1233_p3  ;;  %p876_p7 = scmp.ne.s32.totalorder %s1555_s1, %s875_s16 }
  0x10   : > { %p882_p11 = scmp.lt.u32.totalorder %s875_s16, %s1555_s1 }
  0x11   : > { %p1244_p6 = pnand %p784_p5, %p1562_p1 }
  0x13   : > { %p1258_p8 = pneg %p1244_p6 }
  0x15   : > { %p878_p9 = pnand %p1258_p8, %p876_p7 }
  0x17   : > { %p879_p10 = pneg %p878_p9 }
  0x19   : > { %p884_p12 = pnand %p882_p11, %p879_p10 }
  0x1b   : > { %887 = shalt.err (!%p884_p12)
}
  0x1c   : > { %s888_s22 = scalar_lea.vmem %s1231_s29, 16  ;;  %s895_s23 = scalar_lea.vmem %s1231_s29, 32 }
  0x1d   : > { %p889_p13 = scmp.ne.s32.totalorder %s1231_s29, %s888_s22  ;;  %p896_p5 = scmp.lt.s32.totalorder %s1231_s29, %s1231_s29 }
  0x1e   : > { %p897_p7 = scmp.lt.s32.totalorder %s895_s23, %s888_s22 }
  0x1f   : > { %p891_p0 = pnand %p889_p13, %p1258_p8 }
  0x20   : > { %p898_p9 = por %p897_p7, %p896_p5 }
  0x21   : > { %p892_p2 = pneg %p891_p0 }
  0x23   : > { %p899_p4 = pnand %p898_p9, %p892_p2 }
  0x25   : > { %902 = shalt.err (!%p899_p4)
}
  0x26   : > { %787 = dma.hbm_to_vmem [thread:$0]  (!%p1244_p6), %s1555_s1, 16, %s1231_s29, [#allocation6]  }
  0x27   : > { %s903_s15 = scalar_lea.hbm %s1557_s3, 256 }
  0x28   : > { %p904_p10 = scmp.ne.s32.totalorder %s1557_s3, %s903_s15  ;;  %p910_p4 = scmp.lt.u32.totalorder %s903_s15, %s1557_s3 }
  0x2a   : > { %p906_p11 = pnand %p904_p10, %p1258_p8 }
  0x2c   : > { %p907_p12 = pneg %p906_p11 }
  0x2e   : > { %p912_p13 = pnand %p910_p4, %p907_p12 }
  0x30   : > { %915 = shalt.err (!%p912_p13)
}
  0x31   : > { %s916_s29 = scalar_lea.vmem %s1240_s10, 256  ;;  %p924_p7 = scmp.lt.s32.totalorder %s1240_s10, %s1240_s10 }
  0x32   : > { %p917_p0 = scmp.ne.s32.totalorder %s1240_s10, %s916_s29  ;;  %p925_p9 = scmp.lt.s32.totalorder %s916_s29, %s916_s29 }
  0x34   : > { %p919_p2 = pnand %p917_p0, %p1258_p8  ;;  %p926_p10 = por %p925_p9, %p924_p7 }
  0x36   : > { %p920_p5 = pneg %p919_p2 }
  0x38   : > { %p927_p11 = pnand %p926_p10, %p920_p5 }
  0x3a   : > { %930 = shalt.err (!%p927_p11)
}
  0x3b   : > { %s1564_s21 = smov 128   ;;  %s1157_s22 = smov 8  }
  0x3c   : > { %793 = dma.hbm_to_vmem [thread:$0]  (!%p1244_p6), %s1557_s3, 256, %s1240_s10, [#allocation9], %s1564_s21, %s1564_s21, %s1157_s22  }
  0x3d   : > { %s931_s14 = scalar_lea.hbm %s1559_s5, 16 }
  0x3e   : > { %p932_p12 = scmp.ne.s32.totalorder %s1559_s5, %s931_s14  ;;  %p938_p0 = scmp.lt.u32.totalorder %s931_s14, %s1559_s5 }
  0x40   : > { %p934_p4 = pnand %p932_p12, %p1258_p8 }
  0x42   : > { %p935_p13 = pneg %p934_p4 }
  0x44   : > { %p940_p2 = pnand %p938_p0, %p935_p13 }
  0x46   : > { %943 = shalt.err (!%p940_p2)
}
  0x47   : > { %s944_s10 = scalar_lea.vmem %s1248_s13, 16  ;;  %s951_s20 = scalar_lea.vmem %s1248_s13, 32 }
  0x48   : > { %p945_p5 = scmp.ne.s32.totalorder %s1248_s13, %s944_s10  ;;  %p952_p10 = scmp.lt.s32.totalorder %s1248_s13, %s1248_s13 }
  0x49   : > { %p953_p11 = scmp.lt.s32.totalorder %s951_s20, %s944_s10 }
  0x4a   : > { %p947_p7 = pnand %p945_p5, %p1258_p8 }
  0x4b   : > { %p954_p12 = por %p953_p11, %p952_p10 }
  0x4c   : > { %p948_p9 = pneg %p947_p7 }
  0x4e   : > { %p955_p4 = pnand %p954_p12, %p948_p9 }
  0x50   : > { %958 = shalt.err (!%p955_p4)
}
  0x51   : > { %799 = dma.hbm_to_vmem [thread:$0]  (!%p1244_p6), %s1559_s5, 16, %s1248_s13, [#allocation12]  }
  0x52   : > { %s1158_s28 = smov [#allocation7]   ;;  %s1159_s12 = smov [#allocation10]  }
  0x53   : > { %s233_s9 = sshll.u32 %s1158_s28, 4  ;;  %s257_s14 = sshll.u32 %s1159_s12, 4  ;;  %s234_s9 = int_to_ptr.vmem [resolvable:$true] %s233_s9  ;;  %s258_s14 = int_to_ptr.vmem [resolvable:$true] %s257_s14 }
  0x54   : > { %s959_s17 = scalar_lea.hbm %s1556_s2, 16 }
  0x55   : > { %p960_p13 = scmp.ne.s32.totalorder %s1556_s2, %s959_s17  ;;  %p966_p5 = scmp.lt.u32.totalorder %s959_s17, %s1556_s2 }
  0x57   : > { %p962_p0 = pnand %p960_p13, %p1258_p8 }
  0x59   : > { %p963_p2 = pneg %p962_p0 }
  0x5b   : > { %p968_p7 = pnand %p966_p5, %p963_p2 }
  0x5d   : > { %971 = shalt.err (!%p968_p7)
}
  0x5e   : > { %s972_s13 = scalar_lea.vmem %s234_s9, 16  ;;  %s979_s23 = scalar_lea.vmem %s234_s9, 32 }
  0x5f   : > { %p973_p9 = scmp.ne.s32.totalorder %s234_s9, %s972_s13  ;;  %p980_p12 = scmp.lt.s32.totalorder %s234_s9, %s234_s9 }
  0x60   : > { %p981_p4 = scmp.lt.s32.totalorder %s979_s23, %s972_s13 }
  0x61   : > { %p975_p10 = pnand %p973_p9, %p1258_p8 }
  0x62   : > { %p982_p1 = por %p981_p4, %p980_p12 }
  0x63   : > { %p976_p11 = pneg %p975_p10 }
  0x65   : > { %p983_p3 = pnand %p982_p1, %p976_p11 }
  0x67   : > { %986 = shalt.err (!%p983_p3)
}
  0x68   : > { %790 = dma.hbm_to_vmem [thread:$0]  (!%p1244_p6), %s1556_s2, 16, %s234_s9, [#allocation6]  }
  0x69   : > { %s987_s17 = scalar_lea.hbm %s1558_s4, 16 }
  0x6a   : > { %p988_p13 = scmp.ne.s32.totalorder %s1558_s4, %s987_s17  ;;  %p994_p3 = scmp.lt.u32.totalorder %s987_s17, %s1558_s4 }
  0x6c   : > { %p990_p0 = pnand %p988_p13, %p1258_p8 }
  0x6e   : > { %p991_p1 = pneg %p990_p0 }
  0x70   : > { %p996_p2 = pnand %p994_p3, %p991_p1 }
  0x72   : > { %999 = shalt.err (!%p996_p2)
}
  0x73   : > { %s1000_s13 = scalar_lea.vmem %s258_s14, 16  ;;  %s1007_s9 = scalar_lea.vmem %s258_s14, 32 }
  0x74   : > { %p1001_p5 = scmp.ne.s32.totalorder %s258_s14, %s1000_s13  ;;  %p1008_p10 = scmp.lt.s32.totalorder %s258_s14, %s258_s14 }
  0x75   : > { %p1009_p11 = scmp.lt.s32.totalorder %s1007_s9, %s1000_s13 }
  0x76   : > { %p1003_p7 = pnand %p1001_p5, %p1258_p8 }
  0x77   : > { %p1010_p12 = por %p1009_p11, %p1008_p10 }
  0x78   : > { %p1004_p9 = pneg %p1003_p7 }
  0x7a   : > { %p1011_p4 = pnand %p1010_p12, %p1004_p9 }
  0x7c   : > { %1014 = shalt.err (!%p1011_p4)
}
  0x7d   : > { %796 = dma.hbm_to_vmem [thread:$0]  (!%p1244_p6), %s1558_s4, 16, %s258_s14, [#allocation9]  }
  0x7e   : > { %s1160_s12 = smov [#allocation13]   ;;  %s1015_s18 = scalar_lea.hbm %s1560_s6, 16 }
  0x7f   : > { %s279_s15 = sshll.u32 %s1160_s12, 4  ;;  %p1016_p13 = scmp.ne.s32.totalorder %s1560_s6, %s1015_s18  ;;  %s280_s15 = int_to_ptr.vmem [resolvable:$true] %s279_s15 }
  0x80   : > { %p1022_p3 = scmp.lt.u32.totalorder %s1015_s18, %s1560_s6 }
  0x81   : > { %p1018_p0 = pnand %p1016_p13, %p1258_p8 }
  0x83   : > { %p1019_p1 = pneg %p1018_p0 }
  0x85   : > { %p1024_p2 = pnand %p1022_p3, %p1019_p1 }
  0x87   : > { %1027 = shalt.err (!%p1024_p2)
}
  0x88   : > { %s1028_s14 = scalar_lea.vmem %s280_s15, 16  ;;  %s1035_s9 = scalar_lea.vmem %s280_s15, 32 }
  0x89   : > { %p1029_p5 = scmp.ne.s32.totalorder %s280_s15, %s1028_s14  ;;  %p1036_p10 = scmp.lt.s32.totalorder %s280_s15, %s280_s15 }
  0x8a   : > { %p1037_p11 = scmp.lt.s32.totalorder %s1035_s9, %s1028_s14 }
  0x8b   : > { %p1031_p7 = pnand %p1029_p5, %p1258_p8 }
  0x8c   : > { %p1038_p12 = por %p1037_p11, %p1036_p10 }
  0x8d   : > { %p1032_p9 = pneg %p1031_p7 }
  0x8f   : > { %p1039_p4 = pnand %p1038_p12, %p1032_p9 }
  0x91   : > { %1042 = shalt.err (!%p1039_p4)
}
  0x92   : > { %802 = dma.hbm_to_vmem [thread:$0]  (!%p1244_p6), %s1560_s6, 16, %s280_s15, [#allocation12]  }
  0x93   : > { %s706_s19 = sadd.s32 4294967294, %s1151_s27   ;;  %s1386_s11 = sadd.s32 1, %s1151_s27  }
  0x94   : > { %s30_s12 = ssub.s32 %s1151_s27, %s1386_s11  ;;  %s33_s16 = sadd.s32 1, %s1147_s26 }
  0x95   : > { %p31_p8 = scmp.eq.s32.totalorder %s30_s12, 0  ;;  %p40_p13 = scmp.ne.s32.totalorder %s1147_s26, %s1143_s25 }
  0x96   : > { %p41_p0 = scmp.eq.s32.totalorder %s1151_s27, 0  ;;  %p46_p1 = scmp.ne.s32.totalorder %s1143_s25, %s1139_s24 }
  0x97   : > { %s1397_s17 = scalar_select %p31_p8, %s1147_s26, %s33_s16  }
  0x98   : > { %p1399_p3 = por %p41_p0, %p40_p13  ;;  %p1570_p2 = scmp.eq.s32.totalorder %s1226_s30, 0 }
  0x99   : > { %p196_p5 = scmp.eq.s32.totalorder %s1226_s30, 1  ;;  %p202_p7 = scmp.eq.s32.totalorder %s706_s19, 1 }
  0x9a   : > { %p1405_p6 = por %p1570_p2, %p46_p1  ;;  %p817_p9 = scmp.lt.s32.totalorder %s1151_s27, 2 }
  0x9b   : > { %s290_s10 = sand.u32 1, %s1147_s26   ;;  %p1412_p10 = por %p196_p5, %p40_p13 }
  0x9c   : > { %p1416_p11 = por %p202_p7, %p46_p1  ;;  %s715_s13 = sshll.u32 %s290_s10, 4 }
  0x9d   : > { %s1572_s20 = scalar_select %p1412_p10, 1, 0 }
  0x9e   : > { %s1573_s29 = scalar_select %p1416_p11, 1, 0 }
  0x9f   : > { %s739_s14 = sshll.u32 %s1151_s27, 8  ;;  %s294_s19 = scalar_lea.vmem [#allocation2], %s715_s13 }
  0xa0   : > { %s1424_s28 = scalar_lea.hbm %s1554_s0, %s739_s14  ;;  %s301_s12 = sshll.u32 %s294_s19, 4  ;;  %s1426_s12 = int_to_ptr.vmem [resolvable:$true] %s301_s12 }
  0xa1   : > { %p1430_p12 = pnand %p817_p9, %p1399_p3  ;;  %s1434_s21 = scalar_lea.sflag [#allocation3], %s290_s10 }
  0xa2   : > { %s1043_s9 = scalar_lea.hbm %s1424_s28, 256  ;;  %s1048_s18 = scalar_lea.hbm %s1554_s0, 512 }
  0xa3   : > { %p1044_p4 = scmp.ne.s32.totalorder %s1424_s28, %s1043_s9  ;;  %p1045_p8 = pneg %p1430_p12 }
  0xa4   : > { %p1049_p1 = scmp.lt.u32.totalorder %s1424_s28, %s1554_s0  ;;  %p1050_p3 = scmp.lt.u32.totalorder %s1048_s18, %s1043_s9 }
  0xa5   : > { %p1046_p13 = pnand %p1045_p8, %p1044_p4  ;;  %p1052_p5 = scmp.lt.u32.totalorder %s1043_s9, %s1424_s28 }
  0xa6   : > { %p1051_p2 = por %p1050_p3, %p1049_p1 }
  0xa7   : > { %p1047_p0 = pneg %p1046_p13 }
  0xa8   : > { %p1053_p7 = por %p1052_p5, %p1051_p2 }
  0xaa   : > { %p1054_p9 = pnand %p1053_p7, %p1047_p0 }
  0xac   : > { %1057 = shalt.err (!%p1054_p9)
}
  0xad   : > { %s1058_s10 = scalar_lea.vmem %s1426_s12, 256  ;;  %s1161_s13 = smov [#allocation2]  }
  0xae   : > { %p1059_p4 = scmp.ne.s32.totalorder %s1426_s12, %s1058_s10  ;;  %s1063_s14 = sshll.u32 %s1161_s13, 4  ;;  %s1064_s14 = int_to_ptr.vmem [resolvable:$false] %s1063_s14 }
  0xaf   : > { %s1065_s23 = scalar_lea.vmem %s1064_s14, 512  ;;  %p1066_p10 = scmp.lt.s32.totalorder %s1426_s12, %s1064_s14 }
  0xb0   : > { %p1061_p13 = pnand %p1059_p4, %p1045_p8  ;;  %p1067_p1 = scmp.lt.s32.totalorder %s1065_s23, %s1058_s10 }
  0xb2   : > { %p1062_p11 = pneg %p1061_p13  ;;  %p1068_p3 = por %p1067_p1, %p1066_p10 }
  0xb4   : > { %p1069_p2 = pnand %p1068_p3, %p1062_p11 }
  0xb6   : > { %1072 = shalt.err (!%p1069_p2)
}
  0xb7   : > { %s1575_s9 = smov 128   ;;  %p1576_p8 = scmp.ne.s32.totalorder %s1566_s8, 0 }
  0xb8   : > { %806 = dma.hbm_to_vmem [thread:$0]  (!%p1430_p12), %s1424_s28, 256, %s1426_s12, %s1434_s21, %s1575_s9, %s1575_s9, %s1157_s22  }
  0xb9   : > { %313 = sbr.rel (%p1576_p8) target bundleno = 1064 (0x428), region = 48  ;;  %s1468_s18 = sand.u32 (!%p1576_p8), 1, %s1143_s25  }
  0xba   : > { %s719_s19 = sshll.u32 (!%p1576_p8), %s1468_s18, 4  ;;  %s316_s10 = scalar_lea.sflag (!%p1576_p8), [#allocation3], %s1468_s18 }
  0xbb   : > { %s319_s16 = scalar_lea.vmem (!%p1576_p8), [#allocation2], %s719_s19 }
  0xc0   : > { %1118 = dma.done.wait (%p1405_p6), %s316_s10, 256  }
  0xc1   : > { %1120 = vsyncadd (%p1405_p6), %s316_s10, 4294967040  ;;  %p1577_p10 = scmp.eq.s32.totalorder %s1226_s30, 0 }
  0xc3   : > { %1122 = dma.done.wait (%p1577_p10), [#allocation6], 32   ;;  %p1578_p11 = pmov %p1577_p10 }
  0xc4   : > { %p1579_p12 = pmov %p1577_p10 }
  0xc5   : > { %1124 = vsyncadd (%p1578_p11), [#allocation6], 4294967264 }
  0xc6   : > { %1126 = dma.done.wait (%p1579_p12), [#allocation9], 272   ;;  %p1580_p0 = pmov %p1577_p10 }
  0xc8   : > { %1128 = vsyncadd (%p1580_p0), [#allocation9], 4294967024  ;;  %p1581_p5 = pmov %p1580_p0 }
  0xc9   : > { %p1582_p7 = pmov %p1580_p0 }
  0xca   : > { %1130 = dma.done.wait (%p1581_p5), [#allocation12], 32  }
  0xcb   : > { %1132 = vsyncadd (%p1582_p7), [#allocation12], 4294967264  ;;  %vm380_vm0 = vcmask 130048   ;;  %v376_v0 = vld [vmem:[%s319_s16] sm:$0xff]  ;;  %v377_v1 = vld [vmem:[%s319_s16 + $0x8] sm:$0xff]  ;;  %vm516_vm1 = vcmask 261120  }
  0xcc   : > { %v381_v2 = vsel %vm380_vm0, %v376_v0, 0.0  ;;  %v384_v3 = vsel %vm380_vm0, %v377_v1, 0.0  ;;  %v424_v14 = vld [vmem:[#allocation8] sm:$0xff]  ;;  %v425_v15 = vld [vmem:[#allocation8 + $0x8] sm:$0xff]  ;;  %v727_v24 = vld [vmem:[#allocation5] ss:$0 sm:$0xff] }
  0xcd   : > { %382 = vadd.xlane.f32.xlu0 %v381_v2  ;;  %v752_v16 = vpack.c.bf16 %v425_v15, %v424_v14  ;;  %v728_v26 = vld [vmem:[#allocation7] ss:$0 sm:$0xff]  ;;  %v729_v33 = vld [vmem:[#allocation10] ss:$0 sm:$0xff]  ;;  %v732_v57 = vld [vmem:[#allocation11] ss:$0 sm:$0xff] }
  0xce   : > { %v733_v60 = vld [vmem:[#allocation13] ss:$0 sm:$0xff]  ;;  %s740_s8 = sshll.u32 %s1226_s30, 8  ;;  %s373_s21 = scalar_lea.vmem [#allocation14], %s719_s19 }
  0xcf   : > { %753 = vmatprep.subr.bf16.mxu0 %v752_v16  ;;  %s576_s22 = sshll.u32 %s373_s21, 4  ;;  %s1506_s12 = scalar_lea.hbm %s1561_s7, %s740_s8  ;;  %s1508_s22 = int_to_ptr.vmem [resolvable:$true] %s576_s22 }
  0xd0   : > { %755 = vmatpush3.bf16.msra.mxu0 %v752_v16  ;;  %s563_s30 = scalar_lea.sflag [#allocation4], %s1468_s18  ;;  %s1073_s13 = scalar_lea.vmem %s1508_s22, 256 }
  0xd1   : > { %385 = vadd.xlane.f32.xlu0 %v384_v3  ;;  %p1074_p6 = scmp.ne.s32.totalorder %s1508_s22, %s1073_s13  ;;  %p1583_p9 = scmp.ne.s32.totalorder %s1572_s20, 0 }
  0xd2   : > { %s1162_s14 = smov [#allocation14]  }
  0xd3   : > { %p1075_p4 = pnand %p1074_p6, %p1583_p9  ;;  %s1077_s23 = sshll.u32 %s1162_s14, 4  ;;  %s1078_s23 = int_to_ptr.vmem [resolvable:$false] %s1077_s23 }
  0xd4   : > { %s1079_s9 = scalar_lea.vmem %s1078_s23, 512  ;;  %p1080_p1 = scmp.lt.s32.totalorder %s1508_s22, %s1078_s23 }
  0xd5   : > { %p1076_p13 = pneg %p1075_p4  ;;  %p1081_p3 = scmp.lt.s32.totalorder %s1079_s9, %s1073_s13 }
  0xd7   : > { %p1082_p2 = por %p1081_p3, %p1080_p1 }
  0xd9   : > { %p1083_p8 = pnand %p1082_p2, %p1076_p13 }
 0x15a   : > { %v383_v4 = vpop.xlane.xlu0 %382 }
 0x15b   : > { %v388_v5 = vmul.f32 0.0625, %v383_v4 }
 0x15d   : > { %v390_v6 = vsub.f32 %v376_v0, %v388_v5 }
 0x15e   : > { %v386_v7 = vpop.xlane.xlu0 %385 }
 0x15f   : > { %v389_v8 = vmul.f32 0.0625, %v386_v7  ;;  %v392_v9 = vmul.f32 %v390_v6, %v390_v6 }
 0x161   : > { %v391_v10 = vsub.f32 %v377_v1, %v389_v8  ;;  %v394_v11 = vsel %vm380_vm0, %v392_v9, 0.0 }
 0x162   : > { %395 = vadd.xlane.f32.xlu1 %v394_v11 }
 0x163   : > { %v393_v12 = vmul.f32 %v391_v10, %v391_v10 }
 0x165   : > { %v397_v13 = vsel %vm380_vm0, %v393_v12, 0.0 }
 0x166   : > { %398 = vadd.xlane.f32.xlu1 %v397_v13 }
 0x1ef   : > { %v396_v17 = vpop.xlane.xlu1 %395 }
 0x1f0   : > { %v400_v18 = vmul.f32 0.0625, %v396_v17 }
 0x1f2   : > { %v402_v19 = vadd.f32 1e-05, %v400_v18 }
 0x1f3   : > { %v399_v20 = vpop.xlane.xlu1 %398 }
 0x1f4   : > { %867 = vrsqrt.f32 %v402_v19  ;;  %v401_v21 = vmul.f32 0.0625, %v399_v20 }
 0x1f6   : > { %v403_v22 = vadd.f32 1e-05, %v401_v21 }
 0x1f8   : > { %869 = vrsqrt.f32 %v403_v22 }
 0x1fe   : > { %v868_v23 = vpop.eup %867 }
 0x1ff   : > { %v406_v25 = vmul.f32 %v868_v23, %v390_v6 }
 0x201   : > { %v414_v27 = vmul.f32 %v727_v24, %v406_v25 }
 0x202   : > { %v870_v28 = vpop.eup %869 }
 0x203   : > { %v407_v29 = vmul.f32 %v870_v28, %v391_v10  ;;  %v422_v30 = vadd.f32 %v728_v26, %v414_v27 }
 0x205   : > { %v415_v31 = vmul.f32 %v727_v24, %v407_v29  ;;  %749 = vmatprep.mubr.msk.f32.mxu0 %vm380_vm0, %v422_v30 }
 0x207   : > { %v423_v32 = vadd.f32 %v728_v26, %v415_v31 }
 0x209   : > { %750 = vmatmul.mubr.msk.f32.vlgmr.msra.gmra.mrb[0].mxu0 %vm380_vm0, %v423_v32 }
 0x2dc   : > { %v751_v34 = vpop.f32.mrb[0].mxu0 }
 0x2dd   : > { %v511_v35 = vadd.f32 %v751_v34, %v729_v33  ;;  %v505_v36 = vpop.f32.mrb[1].mxu0 }
 0x2de   : > { %v506_v37 = vadd.f32 %v729_v33, %v505_v36 }
 0x2df   : > { %v520_v38 = vsel %vm516_vm1, %v511_v35, 0.0 }
 0x2e0   : > { %521 = vadd.xlane.f32.xlu1 %v520_v38  ;;  %v517_v39 = vsel %vm516_vm1, %v506_v37, 0.0 }
 0x2e1   : > { %518 = vadd.xlane.f32.xlu0 %v517_v39 }
 0x36d   : > { %v522_v40 = vpop.xlane.xlu1 %521 }
 0x36e   : > { %v525_v41 = vmul.f32 0.03125, %v522_v40  ;;  %v519_v42 = vpop.xlane.xlu0 %518 }
 0x36f   : > { %v524_v43 = vmul.f32 0.03125, %v519_v42 }
 0x370   : > { %v527_v44 = vsub.f32 %v511_v35, %v525_v41 }
 0x371   : > { %v526_v45 = vsub.f32 %v506_v37, %v524_v43 }
 0x372   : > { %v529_v46 = vmul.f32 %v527_v44, %v527_v44 }
 0x373   : > { %v528_v47 = vmul.f32 %v526_v45, %v526_v45 }
 0x374   : > { %v533_v48 = vsel %vm516_vm1, %v529_v46, 0.0 }
 0x375   : > { %534 = vadd.xlane.f32.xlu1 %v533_v48  ;;  %v530_v49 = vsel %vm516_vm1, %v528_v47, 0.0 }
 0x376   : > { %531 = vadd.xlane.f32.xlu0 %v530_v49 }
 0x402   : > { %v535_v50 = vpop.xlane.xlu1 %534 }
 0x403   : > { %v537_v51 = vmul.f32 0.03125, %v535_v50  ;;  %v532_v52 = vpop.xlane.xlu0 %531 }
 0x404   : > { %v536_v53 = vmul.f32 0.03125, %v532_v52 }
 0x405   : > { %v539_v54 = vadd.f32 1e-05, %v537_v51 }
 0x406   : > { %v538_v55 = vadd.f32 1e-05, %v536_v53 }
 0x407   : > { %871 = vrsqrt.f32 %v539_v54 }
 0x408   : > { %873 = vrsqrt.f32 %v538_v55 }
 0x411   : > { %v872_v56 = vpop.eup %871 }
 0x412   : > { %v874_v58 = vpop.eup %873  ;;  %v543_v59 = vmul.f32 %v872_v56, %v527_v44 }
 0x413   : > { %v542_v61 = vmul.f32 %v874_v58, %v526_v45 }
 0x414   : > { %v551_v62 = vmul.f32 %v732_v57, %v543_v59 }
 0x415   : > { %v550_v63 = vmul.f32 %v732_v57, %v542_v61 }
 0x416   : > { %v559_v0 = vadd.f32 %v733_v60, %v551_v62 }
 0x417   : > { %v558_v1 = vadd.f32 %v733_v60, %v550_v63 }
 0x418   : > { %561 = vst.msk [vmem:[%s373_s21 + $0x8] sm:$0xff] %vm516_vm1, %v559_v0 }
 0x419   : > { %560 = vst.msk [vmem:[%s373_s21] sm:$0xff] %vm516_vm1, %v558_v1 }
 0x41a   : > { %1086 = shalt.err (!%p1083_p8)
}
 0x41b   : > { %s1087_s19 = scalar_lea.hbm %s1506_s12, 256  ;;  %s1091_s8 = scalar_lea.hbm %s1561_s7, 512 }
 0x41c   : > { %p1088_p10 = scmp.ne.s32.totalorder %s1506_s12, %s1087_s19  ;;  %p1092_p0 = scmp.lt.u32.totalorder %s1506_s12, %s1561_s7 }
 0x41d   : > { %p1093_p5 = scmp.lt.u32.totalorder %s1091_s8, %s1087_s19  ;;  %p1095_p6 = scmp.lt.u32.totalorder %s1087_s19, %s1506_s12 }
 0x41e   : > { %p1089_p11 = pnand %p1088_p10, %p1583_p9 }
 0x41f   : > { %p1094_p7 = por %p1093_p5, %p1092_p0 }
 0x420   : > { %p1090_p12 = pneg %p1089_p11 }
 0x421   : > { %p1096_p4 = por %p1095_p6, %p1094_p7 }
 0x423   : > { %p1097_p13 = pnand %p1096_p4, %p1090_p12 }
 0x425   : > { %1100 = shalt.err (!%p1097_p13)
}
 0x426   : > { %s1163_s28 = smov 128   ;;  %s1164_s13 = smov 8  }
 0x427   : > { %782 = dma.vmem_to_hbm [thread:$0]  (%p1583_p9), %s1508_s22, 256, %s1506_s12, %s563_s30, %s1163_s28, %s1163_s28, %s1164_s13  }
 0x428 PF: > { %s591_s14 = sand.u32 1, %s1139_s24   ;;  %p1584_p1 = scmp.ne.s32.totalorder %s1573_s29, 0 }
 0x429   : > { %p1585_p3 = scmp.ge.s32.totalorder %s1151_s27, 2  ;;  %s592_s23 = scalar_lea.sflag [#allocation4], %s591_s14 }
 0x42b   : > { %p808_p2 = pnand %p1585_p3, %p1584_p1 }
 0x42d   : > { %1134 = dma.done.wait (!%p808_p2), %s592_s23, 256  }
 0x42e   : > { %1136 = vsyncadd (!%p808_p2), %s592_s23, 4294967040  ;;  %p23_p8 = scmp.ge.s32.totalorder %s1386_s11, 4   ;;  %s1586_s24 = smov %s1143_s25 }
 0x42f   : > { %s1587_s25 = smov %s1147_s26  ;;  %s1588_s26 = smov %s1397_s17 }
 0x430   : > { %s1589_s27 = smov %s1386_s11  ;;  %25 = sbr.rel (!%p23_p8) target bundleno = 8 (0x8), region = 117 }
 0x437   :  { %597 = vsyncpa [#allocation3], 1 }
 0x438   :  { %599 = vsyncpa [#allocation3 + $0x1], 1 }
 0x439   :  { %600 = vsyncpa [#allocation6], 1 }
 0x43a   :  { %601 = vsyncpa [#allocation9], 1 }
 0x43b   :  { %602 = vsyncpa [#allocation12], 1 }
 0x43c   :  { %603 = vsyncpa [#allocation4], 1 }
 0x43d   :  { %605 = vsyncpa [#allocation4 + $0x1], 1 }

// kernel: _lambda_.14
= control target key start
LH: loop header
LB: loop body
LE: loop exit
PB: predicated region body
PF: predicated region fallthrough
CT: control target
= control target key end

     0   :  { %8 = vsyncpa [#allocation3], 0  ;;  %s992_s0 = inlined_call_operand.hbm [shape: f32[64,16], index: 0, kind: input, shape index: {}]   ;;  %s993_s1 = inlined_call_operand.hbm [shape: f32[16,16], index: 1, kind: input, shape index: {}]   ;;  %s994_s2 = inlined_call_operand.hbm [shape: f32[1,16], index: 2, kind: input, shape index: {}]   ;;  %s995_s3 = inlined_call_operand.hbm [shape: f32[64,16], index: 3, kind: output, shape index: {}]  }
   0x1   :  { %10 = vsyncpa [#allocation3 + $0x1], 0 }
   0x2   :  { %11 = vsyncpa [#allocation6], 0 }
   0x3   :  { %12 = vsyncpa [#allocation4], 0 }
   0x4   :  { %14 = vsyncpa [#allocation4 + $0x1], 0  ;;  %s743_s12 = smov 0   ;;  %s745_s13 = smov 0  }
   0x5   :  { %s747_s14 = smov 0   ;;  %s749_s15 = smov 0  }
   0x6 LB: > { %s764_s16 = sadd.s32 4294967295, %s713_s15   ;;  %s439_s17 = sadd.s32 4294967294, %s713_s15   ;;  %s713_s15 = sphi %s749_s15, %s1015_s15   ;;  %s709_s14 = sphi %s747_s14, %s1014_s14   ;;  %s705_s13 = sphi %s745_s13, %s1013_s13   ;;  %s701_s12 = sphi %s743_s12, %s1012_s12  }
   0x7   : > { %p40_p0 = scmp.ne.s32.totalorder %s705_s13, %s701_s12  ;;  %p996_p1 = scmp.eq.s32.totalorder %s764_s16, 0 }
   0x8   : > { %p112_p3 = scmp.eq.s32.totalorder %s439_s17, 1  ;;  %p440_p5 = scmp.ge.s32.totalorder %s713_s15, 1 }
   0x9   : > { %p773_p4 = por %p996_p1, %p40_p0  ;;  %p119_p7 = scmp.lt.s32.totalorder %s713_s15, 3 }
   0xa   : > { %p778_p6 = por %p112_p3, %p40_p0  ;;  %s715_s21 = smov [#allocation5]  }
   0xb   : > { %s999_s18 = scalar_select %p773_p4, 1, 0 }
   0xc   : > { %s1000_s19 = scalar_select %p778_p6, 1, 0 }
   0xd   : > { %p783_p8 = pnand %p440_p5, %p119_p7  ;;  %s131_s22 = sshll.u32 %s715_s21, 4  ;;  %s787_s22 = int_to_ptr.vmem [resolvable:$true] %s131_s22 }
   0xe   : > { %s716_s24 = smov [#allocation7]   ;;  %s557_s28 = scalar_lea.hbm %s993_s1, 256 }
   0xf   : > { %p498_p9 = pneg %p783_p8  ;;  %s145_s25 = sshll.u32 %s716_s24, 4  ;;  %s798_s25 = int_to_ptr.vmem [resolvable:$true] %s145_s25 }
  0x10   : > { %p558_p12 = scmp.ne.s32.totalorder %s993_s1, %s557_s28  ;;  %p564_p5 = scmp.lt.u32.totalorder %s557_s28, %s993_s1 }
  0x11   : > { %p794_p11 = pnand %p498_p9, %p996_p1 }
  0x13   : > { %p559_p13 = pneg %p794_p11 }
  0x15   : > { %p560_p0 = pnand %p559_p13, %p558_p12 }
  0x17   : > { %p561_p3 = pneg %p560_p0 }
  0x19   : > { %p566_p7 = pnand %p564_p5, %p561_p3 }
  0x1b   : > { %569 = shalt.err (!%p566_p7)
}
  0x1c   : > { %s570_s6 = scalar_lea.vmem %s787_s22, 256  ;;  %p578_p2 = scmp.lt.s32.totalorder %s787_s22, %s787_s22 }
  0x1d   : > { %p571_p9 = scmp.ne.s32.totalorder %s787_s22, %s570_s6  ;;  %p579_p12 = scmp.lt.s32.totalorder %s570_s6, %s570_s6 }
  0x1f   : > { %p573_p10 = pnand %p571_p9, %p559_p13  ;;  %p580_p0 = por %p579_p12, %p578_p2 }
  0x21   : > { %p574_p1 = pneg %p573_p10 }
  0x23   : > { %p581_p6 = pnand %p580_p0, %p574_p1 }
  0x25   : > { %584 = shalt.err (!%p581_p6)
}
  0x26   : > { %s717_s7 = smov 128   ;;  %s718_s8 = smov 8  }
  0x27   : > { %501 = dma.hbm_to_vmem [thread:$0]  (!%p794_p11), %s993_s1, 256, %s787_s22, [#allocation6], %s717_s7, %s717_s7, %s718_s8  }
  0x28   : > { %s585_s21 = scalar_lea.hbm %s994_s2, 16 }
  0x29   : > { %p586_p1 = scmp.ne.s32.totalorder %s994_s2, %s585_s21  ;;  %p592_p10 = scmp.lt.u32.totalorder %s585_s21, %s994_s2 }
  0x2b   : > { %p588_p2 = pnand %p586_p1, %p559_p13 }
  0x2d   : > { %p589_p6 = pneg %p588_p2 }
  0x2f   : > { %p594_p3 = pnand %p592_p10, %p589_p6 }
  0x31   : > { %597 = shalt.err (!%p594_p3)
}
  0x32   : > { %s598_s22 = scalar_lea.vmem %s798_s25, 16  ;;  %s605_s29 = scalar_lea.vmem %s798_s25, 32 }
  0x33   : > { %p599_p5 = scmp.ne.s32.totalorder %s798_s25, %s598_s22  ;;  %p606_p12 = scmp.lt.s32.totalorder %s798_s25, %s798_s25 }
  0x34   : > { %p607_p0 = scmp.lt.s32.totalorder %s605_s29, %s598_s22 }
  0x35   : > { %p601_p7 = pnand %p599_p5, %p559_p13 }
  0x36   : > { %p608_p1 = por %p607_p0, %p606_p12 }
  0x37   : > { %p602_p9 = pneg %p601_p7 }
  0x39   : > { %p609_p2 = pnand %p608_p1, %p602_p9 }
  0x3b   : > { %612 = shalt.err (!%p609_p2)
}
  0x3c   : > { %504 = dma.hbm_to_vmem [thread:$0]  (!%p794_p11), %s994_s2, 16, %s798_s25, [#allocation6]  }
  0x3d   : > { %s857_s5 = sadd.s32 1, %s713_s15   ;;  %s27_s23 = sadd.s32 1, %s709_s14 }
  0x3e   : > { %s24_s6 = ssub.s32 %s713_s15, %s857_s5  ;;  %p34_p13 = scmp.ne.s32.totalorder %s709_s14, %s705_s13 }
  0x3f   : > { %p25_p6 = scmp.eq.s32.totalorder %s24_s6, 0  ;;  %p35_p10 = scmp.eq.s32.totalorder %s713_s15, 0 }
  0x40   : > { %p1003_p3 = scmp.eq.s32.totalorder %s764_s16, 1  ;;  %p515_p7 = scmp.lt.s32.totalorder %s713_s15, 2 }
  0x41   : > { %s873_s10 = scalar_select %p25_p6, %s709_s14, %s27_s23  }
  0x42   : > { %p867_p5 = por %p1003_p3, %p34_p13  ;;  %p36_p9 = por %p35_p10, %p34_p13 }
  0x43   : > { %s156_s11 = sand.u32 1, %s709_s14   ;;  %s462_s25 = sshll.u32 %s713_s15, 9 }
  0x44   : > { %s1004_s9 = scalar_select %p867_p5, 1, 0 }
  0x45   : > { %s444_s17 = sshll.u32 %s156_s11, 5  ;;  %s880_s26 = scalar_lea.hbm %s992_s0, %s462_s25 }
  0x46   : > { %s160_s27 = scalar_lea.vmem [#allocation2], %s444_s17  ;;  %p884_p11 = pnand %p515_p7, %p36_p9 }
  0x47   : > { %s167_s28 = sshll.u32 %s160_s27, 4  ;;  %s888_s29 = scalar_lea.sflag [#allocation3], %s156_s11  ;;  %s882_s28 = int_to_ptr.vmem [resolvable:$true] %s167_s28 }
  0x48   : > { %s613_s30 = scalar_lea.hbm %s880_s26, 512  ;;  %p615_p0 = pneg %p884_p11 }
  0x49   : > { %p614_p12 = scmp.ne.s32.totalorder %s880_s26, %s613_s30  ;;  %s618_s6 = scalar_lea.hbm %s992_s0, 1024 }
  0x4a   : > { %p619_p13 = scmp.lt.u32.totalorder %s880_s26, %s992_s0  ;;  %p620_p6 = scmp.lt.u32.totalorder %s618_s6, %s613_s30 }
  0x4b   : > { %p616_p1 = pnand %p615_p0, %p614_p12  ;;  %p622_p3 = scmp.lt.u32.totalorder %s613_s30, %s880_s26 }
  0x4c   : > { %p621_p10 = por %p620_p6, %p619_p13 }
  0x4d   : > { %p617_p2 = pneg %p616_p1 }
  0x4e   : > { %p623_p7 = por %p622_p3, %p621_p10 }
  0x50   : > { %p624_p9 = pnand %p623_p7, %p617_p2 }
  0x52   : > { %627 = shalt.err (!%p624_p9)
}
  0x53   : > { %s628_s11 = scalar_lea.vmem %s882_s28, 512  ;;  %s719_s21 = smov [#allocation2]  }
  0x54   : > { %p629_p12 = scmp.ne.s32.totalorder %s882_s28, %s628_s11  ;;  %s633_s24 = sshll.u32 %s719_s21, 4  ;;  %s634_s24 = int_to_ptr.vmem [resolvable:$false] %s633_s24 }
  0x55   : > { %s635_s27 = scalar_lea.vmem %s634_s24, 1024  ;;  %p636_p4 = scmp.lt.s32.totalorder %s882_s28, %s634_s24 }
  0x56   : > { %p631_p1 = pnand %p629_p12, %p615_p0  ;;  %p637_p13 = scmp.lt.s32.totalorder %s635_s27, %s628_s11 }
  0x58   : > { %p632_p5 = pneg %p631_p1  ;;  %p638_p6 = por %p637_p13, %p636_p4 }
  0x5a   : > { %p639_p10 = pnand %p638_p6, %p632_p5 }
  0x5c   : > { %642 = shalt.err (!%p639_p10)
}
  0x5d   : > { %508 = dma.hbm_to_vmem [thread:$0]  (!%p884_p11), %s880_s26, 512, %s882_s28, %s888_s29, %s717_s7, %s717_s7, %s718_s8  }
  0x5e   : > { %179 = sbr.rel (%p783_p8) target bundleno = 342 (0x156), region = 32  ;;  %s922_s30 = sand.u32 (!%p783_p8), 1, %s705_s13  }
  0x5f   : > { %s448_s4 = sshll.u32 (!%p783_p8), %s922_s30, 5  ;;  %s182_s23 = scalar_lea.sflag (!%p783_p8), [#allocation3], %s922_s30 }
  0x60   : > { %s185_s6 = scalar_lea.vmem (!%p783_p8), [#allocation2], %s448_s4  ;;  %p1006_p4 = scmp.ne.s32.totalorder (!%p783_p8), %s999_s18, 0 }
  0x65   : > { %688 = dma.done.wait (%p1006_p4), %s182_s23, 512  }
  0x66   : > { %690 = vsyncadd (%p1006_p4), %s182_s23, 4294966784  ;;  %p1007_p5 = scmp.eq.s32.totalorder %s764_s16, 0 }
  0x68   : > { %692 = dma.done.wait (%p1007_p5), [#allocation6], 272   ;;  %p1008_p11 = pmov %p1007_p5 }
  0x69   : > { %vm231_vm0 = vcmask 130048   ;;  %v222_v0 = vld [vmem:[#allocation5] sm:$0xff]  ;;  %v223_v1 = vld [vmem:[#allocation5 + $0x8] sm:$0xff]  ;;  %v220_v4 = vld [vmem:[%s185_s6 + $0x10] sm:$0xff]  ;;  %s215_s18 = scalar_lea.vmem [#allocation8], %s448_s4  ;;  %s463_s7 = sshll.u32 %s764_s16, 9 }
  0x6a   : > { %694 = vsyncadd (%p1008_p11), [#allocation6], 4294967024  ;;  %v218_v2 = vld [vmem:[%s185_s6] sm:$0xff]  ;;  %v480_v3 = vpack.c.bf16 %v223_v1, %v222_v0  ;;  %477 = vmatprep.mubr.msk.f32.mxu1 %vm231_vm0, %v220_v4  ;;  %v219_v5 = vld [vmem:[%s185_s6 + $0x8] sm:$0xff]  ;;  %s347_s20 = sshll.u32 %s215_s18, 4  ;;  %s944_s28 = scalar_lea.hbm %s995_s3, %s463_s7  ;;  %s939_s20 = int_to_ptr.vmem [resolvable:$true] %s347_s20 }
  0x6b   : > { %474 = vmatprep.mubr.msk.f32.mxu0 %vm231_vm0, %v218_v2  ;;  %v221_v6 = vld [vmem:[%s185_s6 + $0x18] sm:$0xff]  ;;  %v452_v7 = vld [vmem:[#allocation7] ss:$0 sm:$0xff]  ;;  %s334_s16 = scalar_lea.sflag [#allocation4], %s922_s30  ;;  %s643_s22 = scalar_lea.vmem %s939_s20, 512 }
  0x6c   : > { %481 = vmatprep.subr.bf16.mxu0 %v480_v3  ;;  %484 = vmatprep.subr.bf16.mxu1 %v480_v3  ;;  %p644_p8 = scmp.ne.s32.totalorder %s939_s20, %s643_s22  ;;  %p1009_p0 = scmp.ne.s32.totalorder %s1004_s9, 0 }
  0x6d   : > { %483 = vmatpush3.bf16.msra.mxu0 %v480_v3  ;;  %485 = vmatpush3.bf16.msra.mxu1 %v480_v3  ;;  %s720_s29 = smov [#allocation8]  }
  0x6e   : > { %p645_p2 = pnand %p644_p8, %p1009_p0  ;;  %s647_s17 = sshll.u32 %s720_s29, 4  ;;  %s648_s17 = int_to_ptr.vmem [resolvable:$false] %s647_s17 }
  0x6f   : > { %s649_s25 = scalar_lea.vmem %s648_s17, 1024  ;;  %p650_p7 = scmp.lt.s32.totalorder %s939_s20, %s648_s17 }
  0x70   : > { %475 = vmatmul.mubr.msk.f32.vlgmr.msra.gmra.mrb[0].mxu0 %vm231_vm0, %v219_v5  ;;  %478 = vmatmul.mubr.msk.f32.vlgmr.msra.gmra.mrb[0].mxu1 %vm231_vm0, %v221_v6  ;;  %p646_p3 = pneg %p645_p2  ;;  %p651_p9 = scmp.lt.s32.totalorder %s649_s25, %s643_s22 }
  0x72   : > { %p652_p12 = por %p651_p9, %p650_p7 }
  0x74   : > { %p653_p1 = pnand %p652_p12, %p646_p3 }
 0x143   : > { %v476_v8 = vpop.f32.mrb[0].mxu0  ;;  %v479_v9 = vpop.f32.mrb[0].mxu1 }
 0x144   : > { %v316_v10 = vadd.f32 %v476_v8, %v452_v7  ;;  %v326_v11 = vadd.f32 %v479_v9, %v452_v7  ;;  %v310_v12 = vpop.f32.mrb[1].mxu0  ;;  %v320_v13 = vpop.f32.mrb[1].mxu1 }
 0x145   : > { %v311_v14 = vadd.f32 %v452_v7, %v310_v12  ;;  %v321_v15 = vadd.f32 %v452_v7, %v320_v13 }
 0x146   : > { %330 = vst.msk [vmem:[%s215_s18 + $0x8] sm:$0xff] %vm231_vm0, %v316_v10  ;;  %332 = vst.msk [vmem:[%s215_s18 + $0x18] sm:$0xff] %vm231_vm0, %v326_v11 }
 0x147   : > { %329 = vst.msk [vmem:[%s215_s18] sm:$0xff] %vm231_vm0, %v311_v14  ;;  %331 = vst.msk [vmem:[%s215_s18 + $0x10] sm:$0xff] %vm231_vm0, %v321_v15 }
 0x148   : > { %656 = shalt.err (!%p653_p1)
}
 0x149   : > { %s657_s11 = scalar_lea.hbm %s944_s28, 512  ;;  %s661_s27 = scalar_lea.hbm %s995_s3, 1024 }
 0x14a   : > { %p658_p13 = scmp.ne.s32.totalorder %s944_s28, %s657_s11  ;;  %p662_p4 = scmp.lt.u32.totalorder %s944_s28, %s995_s3 }
 0x14b   : > { %p663_p5 = scmp.lt.u32.totalorder %s661_s27, %s657_s11  ;;  %p665_p8 = scmp.lt.u32.totalorder %s657_s11, %s944_s28 }
 0x14c   : > { %p659_p6 = pnand %p658_p13, %p1009_p0 }
 0x14d   : > { %p664_p11 = por %p663_p5, %p662_p4 }
 0x14e   : > { %p660_p10 = pneg %p659_p6 }
 0x14f   : > { %p666_p2 = por %p665_p8, %p664_p11 }
 0x151   : > { %p667_p3 = pnand %p666_p2, %p660_p10 }
 0x153   : > { %670 = shalt.err (!%p667_p3)
}
 0x154   : > { %s721_s6 = smov 128   ;;  %s722_s18 = smov 8  }
 0x155   : > { %496 = dma.vmem_to_hbm [thread:$0]  (%p1009_p0), %s939_s20, 512, %s944_s28, %s334_s16, %s721_s6, %s721_s6, %s722_s18  }
 0x156 PF: > { %s362_s7 = sand.u32 1, %s701_s12   ;;  %p1010_p7 = scmp.ne.s32.totalorder %s1000_s19, 0 }
 0x157   : > { %p1011_p9 = scmp.ge.s32.totalorder %s713_s15, 2  ;;  %s363_s8 = scalar_lea.sflag [#allocation4], %s362_s7 }
 0x159   : > { %p510_p12 = pnand %p1011_p9, %p1010_p7 }
 0x15b   : > { %696 = dma.done.wait (!%p510_p12), %s363_s8, 512  }
 0x15c   : > { %698 = vsyncadd (!%p510_p12), %s363_s8, 4294966784  ;;  %p17_p1 = scmp.ge.s32.totalorder %s857_s5, 4   ;;  %s1012_s12 = smov %s705_s13 }
 0x15d   : > { %s1013_s13 = smov %s709_s14  ;;  %s1014_s14 = smov %s873_s10 }
 0x15e   : > { %s1015_s15 = smov %s857_s5  ;;  %19 = sbr.rel (!%p17_p1) target bundleno = 6 (0x6), region = 85 }
 0x165   :  { %368 = vsyncpa [#allocation3], 1 }
 0x166   :  { %370 = vsyncpa [#allocation3 + $0x1], 1 }
 0x167   :  { %371 = vsyncpa [#allocation6], 1 }
 0x168   :  { %372 = vsyncpa [#allocation4], 1 }
 0x169   :  { %374 = vsyncpa [#allocation4 + $0x1], 1 }

// kernel: _lambda_.16
= control target key start
LH: loop header
LB: loop body
LE: loop exit
PB: predicated region body
PF: predicated region fallthrough
CT: control target
= control target key end

     0   :  { %s2020_s0 = inlined_call_operand.hbm [shape: f32[32,32], index: 0, kind: input, shape index: {}]   ;;  %s2021_s1 = inlined_call_operand.hbm [shape: f32[32,32], index: 1, kind: input, shape index: {}]   ;;  %s2022_s2 = inlined_call_operand.hbm [shape: f32[32,32], index: 2, kind: input, shape index: {}, may-alias: {2,9}]   ;;  %s2023_s3 = inlined_call_operand.hbm [shape: f32[1,32], index: 3, kind: input, shape index: {}]   ;;  %s2024_s4 = inlined_call_operand.hbm [shape: f32[1,32], index: 4, kind: input, shape index: {}]   ;;  %s2025_s5 = inlined_call_operand.hbm [shape: f32[32,32], index: 5, kind: input, shape index: {}]   ;;  %s2026_s6 = inlined_call_operand.hbm [shape: f32[1,32], index: 6, kind: input, shape index: {}]   ;;  %s2027_s7 = inlined_call_operand.hbm [shape: f32[32,32], index: 7, kind: input, shape index: {}]   ;;  %s2028_s8 = inlined_call_operand.hbm [shape: f32[1,32], index: 8, kind: input, shape index: {}]   ;;  %s2029_s9 = inlined_call_operand.hbm [shape: f32[32,32], index: 9, kind: output, shape index: {}, may-alias: {2,9}]  }
   0x1   :  { %2057 = sst [smem:[#allocation31_spill]] %s2021_s1 }
   0x2   :  { %2058 = sst [smem:[#allocation32_spill]] %s2023_s3 }
   0x3   :  { %2059 = sst [smem:[#allocation33_spill]] %s2025_s5 }
   0x4   :  { %2060 = sst [smem:[#allocation34_spill]] %s2027_s7 }
   0x5   :  { %2061 = sst [smem:[#allocation35_spill]] %s2029_s9 }
   0x6   :  { %14 = vsyncpa [#allocation3], 0 }
   0x7   :  { %16 = vsyncpa [#allocation3 + $0x1], 0 }
   0x8   :  { %17 = vsyncpa [#allocation6], 0 }
   0x9   :  { %19 = vsyncpa [#allocation6 + $0x1], 0 }
   0xa   :  { %20 = vsyncpa [#allocation9], 0 }
   0xb   :  { %21 = vsyncpa [#allocation12], 0 }
   0xc   :  { %22 = vsyncpa [#allocation15], 0 }
   0xd   :  { %23 = vsyncpa [#allocation4], 0 }
   0xe   :  { %25 = vsyncpa [#allocation4 + $0x1], 0  ;;  %s1569_s30 = smov 0   ;;  %s1571_s10 = smov 0  }
   0xf   :  { %s1573_s11 = smov 0   ;;  %s1575_s12 = smov 0  }
  0x10 LB: > { %2062 = sst [smem:[#allocation24_spill]] %s1491_s30  ;;  %s1505_s13 = smov [#allocation8]   ;;  %s1503_s12 = sphi %s1575_s12, %s2105_s12   ;;  %s1499_s11 = sphi %s1573_s11, %s2109_s11   ;;  %s1495_s10 = sphi %s1571_s10, %s2108_s10   ;;  %s1491_s30 = sphi %s1569_s30, %s2107_s30  }
  0x11   : > { %2063 = sst [smem:[#allocation25_spill]] %s1503_s12  ;;  %s279_s14 = sshll.u32 %s1505_s13, 4  ;;  %s1595_s14 = int_to_ptr.vmem [resolvable:$true] %s279_s14 }
  0x12   : > { %s1590_s15 = sadd.s32 4294967295, %s1503_s12   ;;  %p943_p0 = scmp.ge.s32.totalorder %s1503_s12, 1 }
  0x13   : > { %2064 = sst [smem:[#allocation26_spill]] %s1590_s15  ;;  %p2039_p1 = scmp.eq.s32.totalorder %s1590_s15, 0 }
  0x14   : > { %p266_p2 = scmp.lt.s32.totalorder %s1503_s12, 3  ;;  %s1506_s17 = smov [#allocation11]  }
  0x15   : > { %s300_s18 = sshll.u32 %s1506_s17, 4  ;;  %s1507_s20 = smov [#allocation14]   ;;  %s1604_s18 = int_to_ptr.vmem [resolvable:$true] %s300_s18 }
  0x16   : > { %p1597_p3 = pnand %p943_p0, %p266_p2  ;;  %s324_s21 = sshll.u32 %s1507_s20, 4  ;;  %s1612_s21 = int_to_ptr.vmem [resolvable:$true] %s324_s21 }
  0x17   : > { %s2067_s3 = sld [smem:[#allocation32_spill]] }
  0x18   : > { %s2065_s16 = scalar_select %p1597_p3, 1, 0 }
  0x19   : > { %p1070_p5 = pneg %p1597_p3 }
  0x1b   : > { %p1608_p6 = pnand %p1070_p5, %p2039_p1 }
  0x1d   : > { %s2066_s19 = scalar_select %p1608_p6, 1, 0 }
  0x1e   : > { %s1163_s24 = scalar_lea.hbm %s2067_s3, 16  ;;  %p1622_p8 = pneg %p1608_p6 }
  0x1f   : > { %p1164_p7 = scmp.ne.s32.totalorder %s2067_s3, %s1163_s24  ;;  %p1170_p11 = scmp.lt.u32.totalorder %s1163_s24, %s2067_s3 }
  0x20   : > { %s2068_s27 = scalar_select %p1622_p8, 1, 0 }
  0x21   : > { %p1166_p9 = pnand %p1622_p8, %p1164_p7 }
  0x23   : > { %p1167_p10 = pneg %p1166_p9 }
  0x25   : > { %p1172_p12 = pnand %p1170_p11, %p1167_p10 }
  0x27   : > { %1175 = shalt.err (!%p1172_p12)
}
  0x28   : > { %s1176_s13 = scalar_lea.vmem %s1595_s14, 16  ;;  %s1183_s17 = scalar_lea.vmem %s1595_s14, 32 }
  0x29   : > { %p1177_p13 = scmp.ne.s32.totalorder %s1595_s14, %s1176_s13  ;;  %p1184_p5 = scmp.lt.s32.totalorder %s1595_s14, %s1595_s14 }
  0x2a   : > { %p1185_p7 = scmp.lt.s32.totalorder %s1183_s17, %s1176_s13 }
  0x2b   : > { %p1179_p0 = pnand %p1177_p13, %p1622_p8 }
  0x2c   : > { %p1186_p9 = por %p1185_p7, %p1184_p5 }
  0x2d   : > { %p1180_p2 = pneg %p1179_p0 }
  0x2f   : > { %p1187_p4 = pnand %p1186_p9, %p1180_p2 }
  0x31   : > { %1190 = shalt.err (!%p1187_p4)
}
  0x32   : > { %1073 = dma.hbm_to_vmem [thread:$0]  (!%p1608_p6), %s2067_s3, 16, %s1595_s14, [#allocation9]  }
  0x33   : > { %s2069_s5 = sld [smem:[#allocation33_spill]] }
  0x39   : > { %s1191_s25 = scalar_lea.hbm %s2069_s5, 512 }
  0x3a   : > { %p1192_p10 = scmp.ne.s32.totalorder %s2069_s5, %s1191_s25  ;;  %p1198_p4 = scmp.lt.u32.totalorder %s1191_s25, %s2069_s5 }
  0x3c   : > { %p1194_p11 = pnand %p1192_p10, %p1622_p8 }
  0x3e   : > { %p1195_p12 = pneg %p1194_p11 }
  0x40   : > { %p1200_p13 = pnand %p1198_p4, %p1195_p12 }
  0x42   : > { %1203 = shalt.err (!%p1200_p13)
}
  0x43   : > { %s1204_s14 = scalar_lea.vmem %s1604_s18, 512  ;;  %p1212_p7 = scmp.lt.s32.totalorder %s1604_s18, %s1604_s18 }
  0x44   : > { %p1205_p0 = scmp.ne.s32.totalorder %s1604_s18, %s1204_s14  ;;  %p1213_p9 = scmp.lt.s32.totalorder %s1204_s14, %s1204_s14 }
  0x46   : > { %p1207_p2 = pnand %p1205_p0, %p1622_p8  ;;  %p1214_p10 = por %p1213_p9, %p1212_p7 }
  0x48   : > { %p1208_p5 = pneg %p1207_p2 }
  0x4a   : > { %p1215_p11 = pnand %p1214_p10, %p1208_p5 }
  0x4c   : > { %1218 = shalt.err (!%p1215_p11)
}
  0x4d   : > { %s2031_s17 = smov 128   ;;  %s2033_s20 = smov 8  }
  0x4e   : > { %1079 = dma.hbm_to_vmem [thread:$0]  (!%p1608_p6), %s2069_s5, 512, %s1604_s18, [#allocation12], %s2031_s17, %s2031_s17, %s2033_s20  }
  0x4f   : > { %s2070_s7 = sld [smem:[#allocation34_spill]] }
  0x55   : > { %s1219_s26 = scalar_lea.hbm %s2070_s7, 512 }
  0x56   : > { %p1220_p12 = scmp.ne.s32.totalorder %s2070_s7, %s1219_s26  ;;  %p1226_p0 = scmp.lt.u32.totalorder %s1219_s26, %s2070_s7 }
  0x58   : > { %p1222_p4 = pnand %p1220_p12, %p1622_p8 }
  0x5a   : > { %p1223_p13 = pneg %p1222_p4 }
  0x5c   : > { %p1228_p2 = pnand %p1226_p0, %p1223_p13 }
  0x5e   : > { %1231 = shalt.err (!%p1228_p2)
}
  0x5f   : > { %s1232_s18 = scalar_lea.vmem %s1612_s21, 512  ;;  %p1240_p10 = scmp.lt.s32.totalorder %s1612_s21, %s1612_s21 }
  0x60   : > { %p1233_p5 = scmp.ne.s32.totalorder %s1612_s21, %s1232_s18  ;;  %p1241_p11 = scmp.lt.s32.totalorder %s1232_s18, %s1232_s18 }
  0x62   : > { %p1235_p7 = pnand %p1233_p5, %p1622_p8  ;;  %p1242_p12 = por %p1241_p11, %p1240_p10 }
  0x64   : > { %p1236_p9 = pneg %p1235_p7 }
  0x66   : > { %p1243_p4 = pnand %p1242_p12, %p1236_p9 }
  0x68   : > { %1246 = shalt.err (!%p1243_p4)
}
  0x69   : > { %1085 = dma.hbm_to_vmem [thread:$0]  (!%p1608_p6), %s2070_s7, 512, %s1612_s21, [#allocation15], %s2031_s17, %s2031_s17, %s2033_s20  }
  0x6a   : > { %s942_s24 = sadd.s32 4294967294, %s1503_s12   ;;  %s1698_s25 = sadd.s32 1, %s1503_s12  }
  0x6b   : > { %2071 = sst [smem:[#allocation27_spill]] %s1698_s25  ;;  %s38_s26 = sadd.s32 1, %s1499_s11 }
  0x6c   : > { %s35_s28 = ssub.s32 %s1503_s12, %s1698_s25  ;;  %p45_p13 = scmp.ne.s32.totalorder %s1499_s11, %s1495_s10 }
  0x6d   : > { %p36_p0 = scmp.eq.s32.totalorder %s35_s28, 0  ;;  %p46_p2 = scmp.eq.s32.totalorder %s1503_s12, 0 }
  0x6e   : > { %p51_p5 = scmp.ne.s32.totalorder %s1495_s10, %s1491_s30  ;;  %p253_p7 = scmp.eq.s32.totalorder %s1590_s15, 1 }
  0x6f   : > { %s1710_s29 = scalar_select %p36_p0, %s1499_s11, %s38_s26  }
  0x70   : > { %p47_p9 = por %p46_p2, %p45_p13  ;;  %p1714_p10 = por %p2039_p1, %p51_p5 }
  0x71   : > { %2072 = sst [smem:[#allocation28_spill]] %s1710_s29  ;;  %p1718_p11 = por %p253_p7, %p45_p13 }
  0x72   : > { %s2073_s21 = scalar_select %p1714_p10, 1, 0 }
  0x73   : > { %s2074_s13 = scalar_select %p1718_p11, 1, 0 }
  0x74   : > { %p259_p12 = scmp.eq.s32.totalorder %s942_s24, 1  ;;  %p1109_p4 = scmp.lt.s32.totalorder %s1503_s12, 2 }
  0x75   : > { %2075 = sst [smem:[#allocation29_spill]] %s2074_s13  ;;  %s2035_s14 = sand.u32 1, %s1499_s11  }
  0x76   : > { %p1724_p3 = por %p259_p12, %p51_p5  ;;  %s1730_s22 = sshll.u32 %s2035_s14, 4 }
  0x77   : > { %s1733_s23 = sshll.u32 %s1503_s12, 8  ;;  %p1735_p0 = pnand %p1109_p4, %p47_p9 }
  0x78   : > { %s2076_s18 = scalar_select %p1724_p3, 1, 0 }
  0x79   : > { %s2078_s26 = scalar_select %p1735_p0, 1, 0 }
  0x7a   : > { %2077 = sst [smem:[#allocation30_spill]] %s2076_s18  ;;  %s370_s28 = sand.u32 1, %s1503_s12  }
  0x7b   : > { %s2079_s1 = sld [smem:[#allocation31_spill]]  ;;  %s374_s14 = scalar_lea.vmem [#allocation5], %s1730_s22 }
  0x7c   : > { %s381_s3 = sshll.u32 %s374_s14, 4  ;;  %s1749_s5 = scalar_lea.sflag [#allocation6], %s370_s28  ;;  %s1747_s3 = int_to_ptr.vmem [resolvable:$true] %s381_s3 }
  0x7d   : > { %p1755_p2 = pneg %p1735_p0 }
  0x7f   : > { %s2080_s29 = scalar_select %p1755_p2, 1, 0 }
  0x81   : > { %s1744_s20 = scalar_lea.hbm %s2079_s1, %s1733_s23  ;;  %s1252_s25 = scalar_lea.hbm %s2079_s1, 512 }
  0x82   : > { %s1247_s7 = scalar_lea.hbm %s1744_s20, 256  ;;  %p1253_p9 = scmp.lt.u32.totalorder %s1744_s20, %s2079_s1 }
  0x83   : > { %p1248_p13 = scmp.ne.s32.totalorder %s1744_s20, %s1247_s7  ;;  %p1254_p12 = scmp.lt.u32.totalorder %s1252_s25, %s1247_s7 }
  0x84   : > { %p1256_p1 = scmp.lt.u32.totalorder %s1247_s7, %s1744_s20 }
  0x85   : > { %p1250_p5 = pnand %p1755_p2, %p1248_p13  ;;  %p1255_p4 = por %p1254_p12, %p1253_p9 }
  0x87   : > { %p1251_p7 = pneg %p1250_p5  ;;  %p1257_p3 = por %p1256_p1, %p1255_p4 }
  0x89   : > { %p1258_p11 = pnand %p1257_p3, %p1251_p7 }
  0x8b   : > { %1261 = shalt.err (!%p1258_p11)
}
  0x8c   : > { %s1262_s28 = scalar_lea.vmem %s1747_s3, 256  ;;  %s1510_s17 = smov [#allocation5]  }
  0x8d   : > { %p1263_p13 = scmp.ne.s32.totalorder %s1747_s3, %s1262_s28  ;;  %s1267_s24 = sshll.u32 %s1510_s17, 4  ;;  %s1268_s24 = int_to_ptr.vmem [resolvable:$false] %s1267_s24 }
  0x8e   : > { %s1269_s12 = scalar_lea.vmem %s1268_s24, 512  ;;  %p1270_p6 = scmp.lt.s32.totalorder %s1747_s3, %s1268_s24 }
  0x8f   : > { %p1265_p5 = pnand %p1263_p13, %p1755_p2  ;;  %p1271_p8 = scmp.lt.s32.totalorder %s1269_s12, %s1262_s28 }
  0x91   : > { %p1266_p10 = pneg %p1265_p5  ;;  %p1272_p9 = por %p1271_p8, %p1270_p6 }
  0x93   : > { %p1273_p12 = pnand %p1272_p9, %p1266_p10 }
  0x95   : > { %1276 = shalt.err (!%p1273_p12)
}
  0x96   : > { %s2081_s7 = smov 8   ;;  %s2082_s25 = smov 128  }
  0x97   : > { %1095 = dma.hbm_to_vmem [thread:$0]  (!%p1735_p0), %s1744_s20, 256, %s1747_s3, %s1749_s5, %s2082_s25, %s2082_s25, %s2081_s7  }
  0x98   : > { %s1511_s14 = smov [#allocation10]   ;;  %s1512_s17 = smov [#allocation13]  }
  0x99   : > { %s290_s1 = sshll.u32 %s1511_s14, 4  ;;  %s314_s18 = sshll.u32 %s1512_s17, 4  ;;  %s291_s1 = int_to_ptr.vmem [resolvable:$true] %s290_s1  ;;  %s315_s18 = int_to_ptr.vmem [resolvable:$true] %s314_s18 }
  0x9a   : > { %s1277_s12 = scalar_lea.hbm %s2024_s4, 16  ;;  %p2083_p3 = scmp.ne.s32.totalorder %s2068_s27, 0 }
  0x9b   : > { %p1278_p1 = scmp.ne.s32.totalorder %s2024_s4, %s1277_s12  ;;  %p1284_p10 = scmp.lt.u32.totalorder %s1277_s12, %s2024_s4 }
  0x9d   : > { %p1280_p6 = pnand %p1278_p1, %p2083_p3 }
  0x9f   : > { %p1281_p8 = pneg %p1280_p6 }
  0xa1   : > { %p1286_p11 = pnand %p1284_p10, %p1281_p8 }
  0xa3   : > { %1289 = shalt.err (!%p1286_p11)
}
  0xa4   : > { %s1290_s3 = scalar_lea.vmem %s291_s1, 16  ;;  %s1297_s20 = scalar_lea.vmem %s291_s1, 32 }
  0xa5   : > { %p1291_p7 = scmp.ne.s32.totalorder %s291_s1, %s1290_s3  ;;  %p1298_p5 = scmp.lt.s32.totalorder %s291_s1, %s291_s1 }
  0xa6   : > { %p1299_p9 = scmp.lt.s32.totalorder %s1297_s20, %s1290_s3 }
  0xa7   : > { %p1293_p4 = pnand %p1291_p7, %p2083_p3 }
  0xa8   : > { %p1300_p12 = por %p1299_p9, %p1298_p5 }
  0xa9   : > { %p1294_p13 = pneg %p1293_p4 }
  0xab   : > { %p1301_p0 = pnand %p1300_p12, %p1294_p13 }
  0xad   : > { %1304 = shalt.err (!%p1301_p0)
}
  0xae   : > { %p2084_p1 = scmp.ne.s32.totalorder %s2066_s19, 0  ;;  %s1305_s14 = scalar_lea.hbm %s2026_s6, 16 }
  0xaf   : > { %p1306_p6 = scmp.ne.s32.totalorder %s2026_s6, %s1305_s14  ;;  %p1312_p0 = scmp.lt.u32.totalorder %s1305_s14, %s2026_s6 }
  0xb0   : > { %1076 = dma.hbm_to_vmem [thread:$0]  (!%p2084_p1), %s2024_s4, 16, %s291_s1, [#allocation9]  }
  0xb1   : > { %p1308_p8 = pnand %p1306_p6, %p2083_p3 }
  0xb3   : > { %p1309_p10 = pneg %p1308_p8 }
  0xb5   : > { %p1314_p11 = pnand %p1312_p0, %p1309_p10 }
  0xb7   : > { %1317 = shalt.err (!%p1314_p11)
}
  0xb8   : > { %s1318_s3 = scalar_lea.vmem %s315_s18, 16  ;;  %s1325_s1 = scalar_lea.vmem %s315_s18, 32 }
  0xb9   : > { %p1319_p7 = scmp.ne.s32.totalorder %s315_s18, %s1318_s3  ;;  %p1326_p5 = scmp.lt.s32.totalorder %s315_s18, %s315_s18 }
  0xba   : > { %p1327_p9 = scmp.lt.s32.totalorder %s1325_s1, %s1318_s3 }
  0xbb   : > { %p1321_p4 = pnand %p1319_p7, %p2083_p3 }
  0xbc   : > { %p1328_p12 = por %p1327_p9, %p1326_p5 }
  0xbd   : > { %p1322_p13 = pneg %p1321_p4 }
  0xbf   : > { %p1329_p2 = pnand %p1328_p12, %p1322_p13 }
  0xc1   : > { %1332 = shalt.err (!%p1329_p2)
}
  0xc2   : > { %1082 = dma.hbm_to_vmem [thread:$0]  (!%p2084_p1), %s2026_s6, 16, %s315_s18, [#allocation12]  }
  0xc3   : > { %s1513_s30 = smov [#allocation16]   ;;  %s1333_s17 = scalar_lea.hbm %s2028_s8, 16 }
  0xc4   : > { %s338_s15 = sshll.u32 %s1513_s30, 4  ;;  %p1334_p6 = scmp.ne.s32.totalorder %s2028_s8, %s1333_s17  ;;  %s339_s15 = int_to_ptr.vmem [resolvable:$true] %s338_s15 }
  0xc5   : > { %p1340_p10 = scmp.lt.u32.totalorder %s1333_s17, %s2028_s8 }
  0xc6   : > { %p1336_p2 = pnand %p1334_p6, %p2083_p3 }
  0xc8   : > { %p1337_p8 = pneg %p1336_p2 }
  0xca   : > { %p1342_p0 = pnand %p1340_p10, %p1337_p8 }
  0xcc   : > { %1345 = shalt.err (!%p1342_p0)
}
  0xcd   : > { %s1346_s18 = scalar_lea.vmem %s339_s15, 16  ;;  %s1353_s1 = scalar_lea.vmem %s339_s15, 32 }
  0xce   : > { %p1347_p11 = scmp.ne.s32.totalorder %s339_s15, %s1346_s18  ;;  %p1354_p13 = scmp.lt.s32.totalorder %s339_s15, %s339_s15 }
  0xcf   : > { %p1355_p5 = scmp.lt.s32.totalorder %s1353_s1, %s1346_s18 }
  0xd0   : > { %p1349_p7 = pnand %p1347_p11, %p2083_p3 }
  0xd1   : > { %p1356_p9 = por %p1355_p5, %p1354_p13 }
  0xd2   : > { %p1350_p4 = pneg %p1349_p7 }
  0xd4   : > { %p1357_p12 = pnand %p1356_p9, %p1350_p4 }
  0xd6   : > { %1360 = shalt.err (!%p1357_p12)
}
  0xd7   : > { %1088 = dma.hbm_to_vmem [thread:$0]  (!%p2084_p1), %s2028_s8, 16, %s339_s15, [#allocation15]  }
  0xd8   : > { %s1840_s13 = scalar_lea.hbm %s2020_s0, %s1733_s23  ;;  %s353_s14 = scalar_lea.vmem [#allocation2], %s1730_s22 }
  0xd9   : > { %s360_s17 = sshll.u32 %s353_s14, 4  ;;  %s2085_s19 = sand.u32 1, %s1499_s11   ;;  %s1843_s17 = int_to_ptr.vmem [resolvable:$true] %s360_s17 }
  0xda   : > { %s1847_s24 = scalar_lea.sflag [#allocation3], %s2085_s19  ;;  %s1361_s28 = scalar_lea.hbm %s1840_s13, 256 }
  0xdb   : > { %p1362_p3 = scmp.ne.s32.totalorder %s1840_s13, %s1361_s28  ;;  %p2086_p6 = scmp.ne.s32.totalorder %s2080_s29, 0 }
  0xdc   : > { %s1366_s3 = scalar_lea.hbm %s2020_s0, 512  ;;  %p1367_p8 = scmp.lt.u32.totalorder %s1840_s13, %s2020_s0 }
  0xdd   : > { %p1364_p1 = pnand %p1362_p3, %p2086_p6  ;;  %p1368_p10 = scmp.lt.u32.totalorder %s1366_s3, %s1361_s28 }
  0xde   : > { %p1370_p11 = scmp.lt.u32.totalorder %s1361_s28, %s1840_s13 }
  0xdf   : > { %p1365_p2 = pneg %p1364_p1  ;;  %p1369_p0 = por %p1368_p10, %p1367_p8 }
  0xe1   : > { %p1371_p7 = por %p1370_p11, %p1369_p0 }
  0xe3   : > { %p1372_p4 = pnand %p1371_p7, %p1365_p2 }
  0xe5   : > { %1375 = shalt.err (!%p1372_p4)
}
  0xe6   : > { %s1376_s20 = scalar_lea.vmem %s1843_s17, 256  ;;  %s1514_s9 = smov [#allocation2]  }
  0xe7   : > { %p1377_p13 = scmp.ne.s32.totalorder %s1843_s17, %s1376_s20  ;;  %s1381_s30 = sshll.u32 %s1514_s9, 4  ;;  %s1382_s30 = int_to_ptr.vmem [resolvable:$false] %s1381_s30 }
  0xe8   : > { %s1383_s27 = scalar_lea.vmem %s1382_s30, 512  ;;  %p1384_p12 = scmp.lt.s32.totalorder %s1843_s17, %s1382_s30 }
  0xe9   : > { %p1379_p5 = pnand %p1377_p13, %p2086_p6  ;;  %p1385_p3 = scmp.lt.s32.totalorder %s1383_s27, %s1376_s20 }
  0xeb   : > { %p1380_p9 = pneg %p1379_p5  ;;  %p1386_p1 = por %p1385_p3, %p1384_p12 }
  0xed   : > { %p1387_p8 = pnand %p1386_p1, %p1380_p9 }
  0xef   : > { %1390 = shalt.err (!%p1387_p8)
}
  0xf0   : > { %p2087_p2 = scmp.ne.s32.totalorder %s2078_s26, 0  ;;  %s1878_s28 = scalar_lea.hbm %s2022_s2, %s1733_s23 }
  0xf1   : > { %s395_s15 = scalar_lea.vmem [#allocation7], %s1730_s22  ;;  %s1391_s3 = scalar_lea.hbm %s1878_s28, 256 }
  0xf2   : > { %1092 = dma.hbm_to_vmem [thread:$0]  (!%p2087_p2), %s1840_s13, 256, %s1843_s17, %s1847_s24, %s2082_s25, %s2082_s25, %s2081_s7  }
  0xf3   : > { %s402_s12 = sshll.u32 %s395_s15, 4  ;;  %p1392_p10 = scmp.ne.s32.totalorder %s1878_s28, %s1391_s3  ;;  %s1881_s12 = int_to_ptr.vmem [resolvable:$true] %s402_s12 }
  0xf4   : > { %s1396_s17 = scalar_lea.hbm %s2022_s2, 512  ;;  %p1397_p7 = scmp.lt.u32.totalorder %s1878_s28, %s2022_s2 }
  0xf5   : > { %p1394_p0 = pnand %p1392_p10, %p2086_p6  ;;  %p1398_p4 = scmp.lt.u32.totalorder %s1396_s17, %s1391_s3 }
  0xf6   : > { %p1400_p5 = scmp.lt.u32.totalorder %s1391_s3, %s1878_s28 }
  0xf7   : > { %p1395_p11 = pneg %p1394_p0  ;;  %p1399_p13 = por %p1398_p4, %p1397_p7 }
  0xf9   : > { %p1401_p9 = por %p1400_p5, %p1399_p13 }
  0xfb   : > { %p1402_p12 = pnand %p1401_p9, %p1395_p11 }
  0xfd   : > { %1405 = shalt.err (!%p1402_p12)
}
  0xfe   : > { %s1406_s22 = scalar_lea.vmem %s1881_s12, 256  ;;  %s1515_s1 = smov [#allocation7]  }
  0xff   : > { %p1407_p3 = scmp.ne.s32.totalorder %s1881_s12, %s1406_s22  ;;  %s1411_s20 = sshll.u32 %s1515_s1, 4  ;;  %s1412_s20 = int_to_ptr.vmem [resolvable:$false] %s1411_s20 }
 0x100   : > { %s1413_s9 = scalar_lea.vmem %s1412_s20, 512  ;;  %p1414_p10 = scmp.lt.s32.totalorder %s1881_s12, %s1412_s20 }
 0x101   : > { %p1409_p1 = pnand %p1407_p3, %p2086_p6  ;;  %p1415_p0 = scmp.lt.s32.totalorder %s1413_s9, %s1406_s22 }
 0x103   : > { %p1410_p8 = pneg %p1409_p1  ;;  %p1416_p7 = por %p1415_p0, %p1414_p10 }
 0x105   : > { %p1417_p4 = pnand %p1416_p7, %p1410_p8 }
 0x107   : > { %1420 = shalt.err (!%p1417_p4)
}
 0x108   : > { %1098 = dma.hbm_to_vmem [thread:$0]  (!%p2087_p2), %s1878_s28, 256, %s1881_s12, %s1749_s5, %s2082_s25, %s2082_s25, %s2081_s7  }
 0x109   : > { %p2088_p6 = scmp.ne.s32.totalorder %s2065_s16, 0 }
 0x10a   : > { %s1911_s29 = sand.u32 (!%p2088_p6), 1, %s1495_s10   ;;  %p2089_p11 = scmp.ne.s32.totalorder (!%p2088_p6), %s2073_s21, 0 }
 0x10b   : > { %414 = sbr.rel (%p2088_p6) target bundleno = 1061 (0x425), region = 56  ;;  %s1914_s30 = sshll.u32 (!%p2088_p6), %s1911_s29, 4 }
 0x10c   : > { %s417_s26 = scalar_lea.sflag (!%p2088_p6), [#allocation3], %s1911_s29  ;;  %s420_s27 = scalar_lea.vmem (!%p2088_p6), [#allocation2], %s1914_s30 }
 0x112   : > { %1466 = dma.done.wait (%p2089_p11), %s417_s26, 256  }
 0x113   : > { %1468 = vsyncadd (%p2089_p11), %s417_s26, 4294967040  ;;  %s2090_s5 = sld [smem:[#allocation26_spill]]  ;;  %s429_s25 = scalar_lea.vmem [#allocation5], %s1914_s30 }
 0x119   : > { %s425_s16 = sand.u32 1, %s2090_s5  }
 0x11a   : > { %s426_s7 = scalar_lea.sflag [#allocation6], %s425_s16 }
 0x11b   : > { %1470 = dma.done.wait (%p2089_p11), %s426_s7, 512  }
 0x11c   : > { %1472 = vsyncadd (%p2089_p11), %s426_s7, 4294966784  ;;  %s438_s14 = scalar_lea.vmem [#allocation7], %s1914_s30  ;;  %p2091_p2 = scmp.eq.s32.totalorder %s2090_s5, 0 }
 0x11e   : > { %1474 = dma.done.wait (%p2091_p2), [#allocation9], 32   ;;  %p2092_p13 = pmov %p2091_p2 }
 0x11f   : > { %p2093_p5 = pmov %p2091_p2 }
 0x120   : > { %1476 = vsyncadd (%p2092_p13), [#allocation9], 4294967264 }
 0x121   : > { %1478 = dma.done.wait (%p2093_p5), [#allocation12], 528   ;;  %p2094_p9 = pmov %p2091_p2 }
 0x122   : > { %p2095_p12 = pmov %p2091_p2 }
 0x123   : > { %1480 = vsyncadd (%p2094_p9), [#allocation12], 4294966768 }
 0x124   : > { %1482 = dma.done.wait (%p2095_p12), [#allocation15], 528   ;;  %p2096_p3 = pmov %p2091_p2 }
 0x125   : > { %vm515_vm0 = vcmask 261120   ;;  %v1941_v0 = vld [vmem:[%s438_s14] sm:$0xff]  ;;  %v1943_v1 = vld [vmem:[%s438_s14 + $0x8] sm:$0xff]  ;;  %s2097_s21 = sld [smem:[#allocation29_spill]]  ;;  %s987_s19 = sshll.u32 %s2090_s5, 8 }
 0x126   : > { %1484 = vsyncadd (%p2096_p3), [#allocation15], 4294966768  ;;  %v516_v2 = vsel %vm515_vm0, %v1941_v0, 0.0  ;;  %v519_v3 = vsel %vm515_vm0, %v1943_v1, 0.0  ;;  %v559_v14 = vld [vmem:[#allocation11] sm:$0xff]  ;;  %v560_v15 = vld [vmem:[#allocation11 + $0x8] sm:$0xff] }
 0x127   : > { %517 = vadd.xlane.f32.xlu0 %v516_v2  ;;  %v561_v16 = vld [vmem:[#allocation11 + $0x10] sm:$0xff]  ;;  %v1022_v17 = vpack.c.bf16 %v560_v15, %v559_v14  ;;  %v562_v18 = vld [vmem:[#allocation11 + $0x18] sm:$0xff]  ;;  %v659_v20 = vld [vmem:[#allocation14] sm:$0xff]  ;;  %s506_s28 = scalar_lea.vmem [#allocation17], %s1914_s30  ;;  %s2098_s18 = sld [smem:[#allocation35_spill]] }
 0x128   : > { %v1026_v19 = vpack.c.bf16 %v562_v18, %v561_v16  ;;  %v660_v21 = vld [vmem:[#allocation14 + $0x8] sm:$0xff]  ;;  %v971_v30 = vld [vmem:[#allocation8] ss:$0 sm:$0xff]  ;;  %v972_v32 = vld [vmem:[#allocation10] ss:$0 sm:$0xff]  ;;  %s769_s15 = sshll.u32 %s506_s28, 4  ;;  %s1973_s15 = int_to_ptr.vmem [resolvable:$true] %s769_s15 }
 0x129   : > { %1023 = vmatprep.subr.bf16.mxu0 %v1022_v17  ;;  %v1030_v22 = vpack.c.bf16 %v660_v21, %v659_v20  ;;  %v661_v39 = vld [vmem:[#allocation14 + $0x10] sm:$0xff]  ;;  %v662_v40 = vld [vmem:[#allocation14 + $0x18] sm:$0xff]  ;;  %v976_v55 = vld [vmem:[#allocation16] ss:$0 sm:$0xff]  ;;  %s756_s17 = scalar_lea.sflag [#allocation4], %s1911_s29  ;;  %s1421_s24 = scalar_lea.vmem %s1973_s15, 256 }
 0x12a   : > { %1025 = vmatpush3.bf16.msra.mxu0 %v1022_v17  ;;  %v1034_v41 = vpack.c.bf16 %v662_v40, %v661_v39  ;;  %v651_v42 = vld [vmem:[%s420_s27] sm:$0xff]  ;;  %v652_v45 = vld [vmem:[%s420_s27 + $0x8] sm:$0xff]  ;;  %p1422_p1 = scmp.ne.s32.totalorder %s1973_s15, %s1421_s24  ;;  %s1516_s23 = smov [#allocation17]  }
 0x12b   : > { %520 = vadd.xlane.f32.xlu0 %v519_v3  ;;  %1027 = vmatprep.subr.bf16.mxu0 %v1026_v19  ;;  %v653_v43 = vld [vmem:[%s429_s25] sm:$0xff]  ;;  %v654_v46 = vld [vmem:[%s429_s25 + $0x8] sm:$0xff]  ;;  %p2099_p8 = scmp.ne.s32.totalorder %s2097_s21, 0  ;;  %s1425_s22 = sshll.u32 %s1516_s23, 4  ;;  %s1426_s22 = int_to_ptr.vmem [resolvable:$false] %s1425_s22 }
 0x12c   : > { %1031 = vmatprep.subr.bf16.mxu1 %v1030_v22  ;;  %v973_v44 = vld [vmem:[#allocation13] ss:$0 sm:$0xff]  ;;  %v655_v48 = vadd.f32 %v653_v43, %v651_v42  ;;  %v656_v50 = vadd.f32 %v654_v46, %v652_v45  ;;  %s1427_s1 = scalar_lea.vmem %s1426_s22, 512  ;;  %p1428_p7 = scmp.lt.s32.totalorder %s1973_s15, %s1426_s22 }
 0x12d   : > { %1033 = vmatpush3.bf16.msra.mxu1 %v1030_v22  ;;  %s1971_s13 = scalar_lea.hbm %s2098_s18, %s987_s19  ;;  %p1423_p10 = pnand %p1422_p1, %p2099_p8 }
 0x12e   : > { %1029 = vmatpush3.bf16.msra.mxu0 %v1026_v19  ;;  %1035 = vmatprep.subr.bf16.mxu1 %v1034_v41  ;;  %p1429_p4 = scmp.lt.s32.totalorder %s1427_s1, %s1421_s24 }
 0x12f   : > { %p1424_p0 = pneg %p1423_p10 }
 0x130   : > { %p1430_p6 = por %p1429_p4, %p1428_p7 }
 0x131   : > { %1037 = vmatpush3.bf16.msra.mxu1 %v1034_v41 }
 0x132   : > { %p1431_p11 = pnand %p1430_p6, %p1424_p0 }
 0x1b4   : > { %v518_v4 = vpop.xlane.xlu0 %517 }
 0x1b5   : > { %v523_v5 = vmul.f32 0.03125, %v518_v4 }
 0x1b7   : > { %v525_v6 = vsub.f32 %v1941_v0, %v523_v5 }
 0x1b8   : > { %v521_v7 = vpop.xlane.xlu0 %520 }
 0x1b9   : > { %v524_v8 = vmul.f32 0.03125, %v521_v7  ;;  %v527_v9 = vmul.f32 %v525_v6, %v525_v6 }
 0x1bb   : > { %v526_v10 = vsub.f32 %v1943_v1, %v524_v8  ;;  %v529_v11 = vsel %vm515_vm0, %v527_v9, 0.0 }
 0x1bc   : > { %530 = vadd.xlane.f32.xlu1 %v529_v11 }
 0x1bd   : > { %v528_v12 = vmul.f32 %v526_v10, %v526_v10 }
 0x1bf   : > { %v532_v13 = vsel %vm515_vm0, %v528_v12, 0.0 }
 0x1c0   : > { %533 = vadd.xlane.f32.xlu1 %v532_v13 }
 0x249   : > { %v531_v23 = vpop.xlane.xlu1 %530 }
 0x24a   : > { %v535_v24 = vmul.f32 0.03125, %v531_v23 }
 0x24c   : > { %v537_v25 = vadd.f32 1e-05, %v535_v24 }
 0x24d   : > { %v534_v26 = vpop.xlane.xlu1 %533 }
 0x24e   : > { %1159 = vrsqrt.f32 %v537_v25  ;;  %v536_v27 = vmul.f32 0.03125, %v534_v26 }
 0x250   : > { %v538_v28 = vadd.f32 1e-05, %v536_v27 }
 0x252   : > { %1161 = vrsqrt.f32 %v538_v28 }
 0x258   : > { %v1160_v29 = vpop.eup %1159 }
 0x259   : > { %v541_v31 = vmul.f32 %v1160_v29, %v525_v6 }
 0x25b   : > { %v549_v33 = vmul.f32 %v971_v30, %v541_v31 }
 0x25c   : > { %v1162_v34 = vpop.eup %1161 }
 0x25d   : > { %v542_v35 = vmul.f32 %v1162_v34, %v526_v10  ;;  %v557_v36 = vadd.f32 %v972_v32, %v549_v33 }
 0x25f   : > { %v550_v37 = vmul.f32 %v971_v30, %v542_v35  ;;  %1008 = vmatprep.mubr.msk.f32.mxu0 %vm515_vm0, %v557_v36 }
 0x261   : > { %v558_v38 = vadd.f32 %v972_v32, %v550_v37 }
 0x263   : > { %1009 = vmatmul.mubr.msk.f32.vlgmr.msra.gmra.mrb[0].mxu0 %vm515_vm0, %v558_v38 }
 0x336   : > { %v1010_v47 = vpop.f32.mrb[0].mxu0 }
 0x337   : > { %v648_v49 = vadd.f32 %v1010_v47, %v973_v44  ;;  %v642_v51 = vpop.f32.mrb[1].mxu0 }
 0x338   : > { %v643_v52 = vadd.f32 %v973_v44, %v642_v51 }
 0x339   : > { %v658_v54 = vadd.f32 %v656_v50, %v648_v49 }
 0x33a   : > { %v657_v53 = vadd.f32 %v655_v48, %v643_v52 }
 0x33c   : > { %1019 = vmatprep.mubr.msk.f32.mxu1 %vm515_vm0, %v657_v53 }
 0x33d   : > { %1020 = vmatmul.mubr.msk.f32.vlgmr.msra.gmra.mrb[0].mxu1 %vm515_vm0, %v658_v54 }
 0x410   : > { %v1021_v56 = vpop.f32.mrb[0].mxu1 }
 0x411   : > { %v748_v57 = vadd.f32 %v1021_v56, %v976_v55  ;;  %v742_v58 = vpop.f32.mrb[1].mxu1 }
 0x412   : > { %v743_v59 = vadd.f32 %v976_v55, %v742_v58 }
 0x413   : > { %v752_v60 = vadd.f32 %v748_v57, %v1943_v1 }
 0x414   : > { %v751_v61 = vadd.f32 %v743_v59, %v1941_v0 }
 0x415   : > { %754 = vst.msk [vmem:[%s506_s28 + $0x8] sm:$0xff] %vm515_vm0, %v752_v60 }
 0x416   : > { %753 = vst.msk [vmem:[%s506_s28] sm:$0xff] %vm515_vm0, %v751_v61 }
 0x417   : > { %1434 = shalt.err (!%p1431_p11)
}
 0x418   : > { %s1435_s20 = scalar_lea.hbm %s1971_s13, 256  ;;  %s1439_s26 = scalar_lea.hbm %s2098_s18, 512 }
 0x419   : > { %p1436_p2 = scmp.ne.s32.totalorder %s1971_s13, %s1435_s20  ;;  %p1440_p9 = scmp.lt.u32.totalorder %s1971_s13, %s2098_s18 }
 0x41a   : > { %p1441_p12 = scmp.lt.u32.totalorder %s1439_s26, %s1435_s20  ;;  %p1443_p1 = scmp.lt.u32.totalorder %s1435_s20, %s1971_s13 }
 0x41b   : > { %p1437_p13 = pnand %p1436_p2, %p2099_p8 }
 0x41c   : > { %p1442_p3 = por %p1441_p12, %p1440_p9 }
 0x41d   : > { %p1438_p5 = pneg %p1437_p13 }
 0x41e   : > { %p1444_p10 = por %p1443_p1, %p1442_p3 }
 0x420   : > { %p1445_p0 = pnand %p1444_p10, %p1438_p5 }
 0x422   : > { %1448 = shalt.err (!%p1445_p0)
}
 0x423   : > { %s1517_s16 = smov 128   ;;  %s1518_s7 = smov 8  }
 0x424   : > { %1068 = dma.vmem_to_hbm [thread:$0]  (%p2099_p8), %s1973_s15, 256, %s1971_s13, %s756_s17, %s1517_s16, %s1517_s16, %s1518_s7  }
 0x425 PF: > { %s2100_s25 = sld [smem:[#allocation24_spill]]  ;;  %s2101_s14 = sld [smem:[#allocation30_spill]] }
 0x426   : > { %s2102_s19 = sld [smem:[#allocation25_spill]] }
 0x42b   : > { %s784_s28 = sand.u32 1, %s2100_s25   ;;  %p2103_p7 = scmp.ne.s32.totalorder %s2101_s14, 0 }
 0x42c   : > { %p2104_p4 = scmp.ge.s32.totalorder %s2102_s19, 2  ;;  %s785_s12 = scalar_lea.sflag [#allocation4], %s784_s28 }
 0x42e   : > { %p1100_p6 = pnand %p2104_p4, %p2103_p7 }
 0x430   : > { %1486 = dma.done.wait (!%p1100_p6), %s785_s12, 256  }
 0x431   : > { %1488 = vsyncadd (!%p1100_p6), %s785_s12, 4294967040  ;;  %s2105_s12 = sld [smem:[#allocation27_spill]]  ;;  %s2106_s3 = sld [smem:[#allocation28_spill]] }
 0x432   : > { %s2107_s30 = smov %s1495_s10  ;;  %s2108_s10 = smov %s1499_s11 }
 0x437   : > { %p28_p11 = scmp.ge.s32.totalorder %s2105_s12, 4   ;;  %s2109_s11 = smov %s2106_s3 }
 0x439   :  { %30 = sbr.rel (!%p28_p11) target bundleno = 16 (0x10), region = 149 }
 0x440   :  { %790 = vsyncpa [#allocation3], 1 }
 0x441   :  { %792 = vsyncpa [#allocation3 + $0x1], 1 }
 0x442   :  { %793 = vsyncpa [#allocation6], 1 }
 0x443   :  { %795 = vsyncpa [#allocation6 + $0x1], 1 }
 0x444   :  { %796 = vsyncpa [#allocation9], 1 }
 0x445   :  { %797 = vsyncpa [#allocation12], 1 }
 0x446   :  { %798 = vsyncpa [#allocation15], 1 }
 0x447   :  { %799 = vsyncpa [#allocation4], 1 }
 0x448   :  { %801 = vsyncpa [#allocation4 + $0x1], 1 }

// kernel: _lambda_.23
= control target key start
LH: loop header
LB: loop body
LE: loop exit
PB: predicated region body
PF: predicated region fallthrough
CT: control target
= control target key end

     0   :  { %10 = vsyncpa [#allocation3], 0  ;;  %s1250_s0 = inlined_call_operand.hbm [shape: f32[2,16,32], index: 0, kind: input, shape index: {}]   ;;  %s1251_s1 = inlined_call_operand.hbm [shape: f32[1,32], index: 1, kind: input, shape index: {}]   ;;  %s1252_s2 = inlined_call_operand.hbm [shape: f32[1,32], index: 2, kind: input, shape index: {}]   ;;  %s1253_s3 = inlined_call_operand.hbm [shape: f32[32,10], index: 3, kind: input, shape index: {}]   ;;  %s1254_s4 = inlined_call_operand.hbm [shape: f32[1,10], index: 4, kind: input, shape index: {}]   ;;  %s1255_s5 = inlined_call_operand.hbm [shape: f32[2,1,10], index: 5, kind: output, shape index: {}]  }
   0x1   :  { %12 = vsyncpa [#allocation3 + $0x1], 0 }
   0x2   :  { %13 = vsyncpa [#allocation6], 0 }
   0x3   :  { %14 = vsyncpa [#allocation9], 0 }
   0x4   :  { %15 = vsyncpa [#allocation4], 0 }
   0x5   :  { %17 = vsyncpa [#allocation4 + $0x1], 0  ;;  %s965_s18 = smov 0   ;;  %s967_s19 = smov 0  }
   0x6   :  { %s969_s20 = smov 0   ;;  %s971_s21 = smov 0  }
   0x7 LB: > { %s986_s22 = sadd.s32 4294967295, %s922_s21   ;;  %s561_s23 = sadd.s32 4294967294, %s922_s21   ;;  %s922_s21 = sphi %s971_s21, %s1278_s21   ;;  %s918_s20 = sphi %s969_s20, %s1277_s20   ;;  %s914_s19 = sphi %s967_s19, %s1276_s19   ;;  %s910_s18 = sphi %s965_s18, %s1275_s18  }
   0x8   : > { %p43_p0 = scmp.ne.s32.totalorder %s914_s19, %s910_s18  ;;  %p1256_p1 = scmp.eq.s32.totalorder %s986_s22, 0 }
   0x9   : > { %p157_p3 = scmp.eq.s32.totalorder %s561_s23, 1  ;;  %p562_p5 = scmp.ge.s32.totalorder %s922_s21, 1 }
   0xa   : > { %p995_p4 = por %p1256_p1, %p43_p0  ;;  %p164_p7 = scmp.lt.s32.totalorder %s922_s21, 3 }
   0xb   : > { %p1000_p6 = por %p157_p3, %p43_p0  ;;  %s924_s27 = smov [#allocation5]  }
   0xc   : > { %s1259_s24 = scalar_select %p995_p4, 1, 0 }
   0xd   : > { %s1260_s25 = scalar_select %p1000_p6, 1, 0 }
   0xe   : > { %p1005_p8 = pnand %p562_p5, %p164_p7  ;;  %s177_s28 = sshll.u32 %s924_s27, 4  ;;  %s178_s28 = int_to_ptr.vmem [resolvable:$true] %s177_s28 }
   0xf   : > { %s925_s29 = smov [#allocation8]   ;;  %s926_s7 = smov [#allocation7]  }
  0x10   : > { %s1261_s26 = scalar_select %p1005_p8, 1, 0 }
  0x11   : > { %p626_p10 = pneg %p1005_p8  ;;  %s198_s30 = sshll.u32 %s925_s29, 4  ;;  %s1018_s30 = int_to_ptr.vmem [resolvable:$true] %s198_s30 }
  0x12   : > { %s1020_s8 = sshll.u32 %s926_s7, 4  ;;  %s706_s11 = scalar_lea.hbm %s1251_s1, 16  ;;  %s189_s8 = int_to_ptr.vmem [resolvable:$true] %s1020_s8 }
  0x13   : > { %p1014_p11 = pnand %p626_p10, %p1256_p1  ;;  %p707_p12 = scmp.ne.s32.totalorder %s1251_s1, %s706_s11 }
  0x14   : > { %p713_p5 = scmp.lt.u32.totalorder %s706_s11, %s1251_s1 }
  0x15   : > { %p1030_p13 = pneg %p1014_p11 }
  0x17   : > { %p709_p0 = pnand %p1030_p13, %p707_p12 }
  0x19   : > { %p710_p3 = pneg %p709_p0 }
  0x1b   : > { %p715_p7 = pnand %p713_p5, %p710_p3 }
  0x1d   : > { %718 = shalt.err (!%p715_p7)
}
  0x1e   : > { %s719_s17 = scalar_lea.vmem %s178_s28, 16  ;;  %s726_s23 = scalar_lea.vmem %s178_s28, 32 }
  0x1f   : > { %p720_p10 = scmp.ne.s32.totalorder %s178_s28, %s719_s17  ;;  %p727_p2 = scmp.lt.s32.totalorder %s178_s28, %s178_s28 }
  0x20   : > { %p728_p6 = scmp.lt.s32.totalorder %s726_s23, %s719_s17 }
  0x21   : > { %p722_p9 = pnand %p720_p10, %p1030_p13 }
  0x22   : > { %p729_p4 = por %p728_p6, %p727_p2 }
  0x23   : > { %p723_p1 = pneg %p722_p9 }
  0x25   : > { %p730_p8 = pnand %p729_p4, %p723_p1 }
  0x27   : > { %733 = shalt.err (!%p730_p8)
}
  0x28   : > { %629 = dma.hbm_to_vmem [thread:$0]  (!%p1014_p11), %s1251_s1, 16, %s178_s28, [#allocation6]  }
  0x29   : > { %s734_s10 = scalar_lea.hbm %s1253_s3, 512 }
  0x2a   : > { %p735_p9 = scmp.ne.s32.totalorder %s1253_s3, %s734_s10  ;;  %p741_p1 = scmp.lt.u32.totalorder %s734_s10, %s1253_s3 }
  0x2c   : > { %p737_p12 = pnand %p735_p9, %p1030_p13 }
  0x2e   : > { %p738_p2 = pneg %p737_p12 }
  0x30   : > { %p743_p4 = pnand %p741_p1, %p738_p2 }
  0x32   : > { %746 = shalt.err (!%p743_p4)
}
  0x33   : > { %s747_s28 = scalar_lea.vmem %s1018_s30, 512  ;;  %p755_p3 = scmp.lt.s32.totalorder %s1018_s30, %s1018_s30 }
  0x34   : > { %p748_p6 = scmp.ne.s32.totalorder %s1018_s30, %s747_s28  ;;  %p756_p5 = scmp.lt.s32.totalorder %s747_s28, %s747_s28 }
  0x36   : > { %p750_p8 = pnand %p748_p6, %p1030_p13  ;;  %p757_p7 = por %p756_p5, %p755_p3 }
  0x38   : > { %p751_p0 = pneg %p750_p8 }
  0x3a   : > { %p758_p10 = pnand %p757_p7, %p751_p0 }
  0x3c   : > { %761 = shalt.err (!%p758_p10)
}
  0x3d   : > { %s927_s16 = smov 128   ;;  %s928_s17 = smov 8  }
  0x3e   : > { %635 = dma.hbm_to_vmem [thread:$0]  (!%p1014_p11), %s1253_s3, 512, %s1018_s30, [#allocation9], %s927_s16, %s927_s16, %s928_s17  }
  0x3f   : > { %s762_s9 = scalar_lea.hbm %s1252_s2, 16 }
  0x40   : > { %p763_p9 = scmp.ne.s32.totalorder %s1252_s2, %s762_s9  ;;  %p769_p1 = scmp.lt.u32.totalorder %s762_s9, %s1252_s2 }
  0x42   : > { %p765_p12 = pnand %p763_p9, %p1030_p13 }
  0x44   : > { %p766_p2 = pneg %p765_p12 }
  0x46   : > { %p771_p4 = pnand %p769_p1, %p766_p2 }
  0x48   : > { %774 = shalt.err (!%p771_p4)
}
  0x49   : > { %s775_s15 = scalar_lea.vmem %s189_s8, 16  ;;  %s782_s30 = scalar_lea.vmem %s189_s8, 32 }
  0x4a   : > { %p776_p6 = scmp.ne.s32.totalorder %s189_s8, %s775_s15  ;;  %p783_p3 = scmp.lt.s32.totalorder %s189_s8, %s189_s8 }
  0x4b   : > { %p784_p5 = scmp.lt.s32.totalorder %s782_s30, %s775_s15 }
  0x4c   : > { %p778_p8 = pnand %p776_p6, %p1030_p13 }
  0x4d   : > { %p785_p7 = por %p784_p5, %p783_p3 }
  0x4e   : > { %p779_p0 = pneg %p778_p8 }
  0x50   : > { %p786_p10 = pnand %p785_p7, %p779_p0 }
  0x52   : > { %789 = shalt.err (!%p786_p10)
}
  0x53   : > { %632 = dma.hbm_to_vmem [thread:$0]  (!%p1014_p11), %s1252_s2, 16, %s189_s8, [#allocation6]  }
  0x54   : > { %s929_s27 = smov [#allocation10]   ;;  %s790_s10 = scalar_lea.hbm %s1254_s4, 16 }
  0x55   : > { %s212_s29 = sshll.u32 %s929_s27, 4  ;;  %p791_p9 = scmp.ne.s32.totalorder %s1254_s4, %s790_s10  ;;  %s213_s29 = int_to_ptr.vmem [resolvable:$true] %s212_s29 }
  0x56   : > { %p797_p1 = scmp.lt.u32.totalorder %s790_s10, %s1254_s4 }
  0x57   : > { %p793_p12 = pnand %p791_p9, %p1030_p13 }
  0x59   : > { %p794_p2 = pneg %p793_p12 }
  0x5b   : > { %p799_p4 = pnand %p797_p1, %p794_p2 }
  0x5d   : > { %802 = shalt.err (!%p799_p4)
}
  0x5e   : > { %s803_s8 = scalar_lea.vmem %s213_s29, 16  ;;  %s810_s30 = scalar_lea.vmem %s213_s29, 32 }
  0x5f   : > { %p804_p6 = scmp.ne.s32.totalorder %s213_s29, %s803_s8  ;;  %p811_p3 = scmp.lt.s32.totalorder %s213_s29, %s213_s29 }
  0x60   : > { %p812_p5 = scmp.lt.s32.totalorder %s810_s30, %s803_s8 }
  0x61   : > { %p806_p8 = pnand %p804_p6, %p1030_p13 }
  0x62   : > { %p813_p7 = por %p812_p5, %p811_p3 }
  0x63   : > { %p807_p0 = pneg %p806_p8 }
  0x65   : > { %p814_p10 = pnand %p813_p7, %p807_p0 }
  0x67   : > { %817 = shalt.err (!%p814_p10)
}
  0x68   : > { %638 = dma.hbm_to_vmem [thread:$0]  (!%p1014_p11), %s1254_s4, 16, %s213_s29, [#allocation9]  }
  0x69   : > { %s1110_s14 = sadd.s32 1, %s922_s21   ;;  %s30_s27 = sadd.s32 1, %s918_s20 }
  0x6a   : > { %s27_s6 = ssub.s32 %s922_s21, %s1110_s14  ;;  %p37_p13 = scmp.ne.s32.totalorder %s918_s20, %s914_s19 }
  0x6b   : > { %p28_p9 = scmp.eq.s32.totalorder %s27_s6, 0  ;;  %p38_p12 = scmp.eq.s32.totalorder %s922_s21, 0 }
  0x6c   : > { %p1264_p2 = scmp.eq.s32.totalorder %s986_s22, 1  ;;  %p651_p4 = scmp.lt.s32.totalorder %s922_s21, 2 }
  0x6d   : > { %s1126_s9 = scalar_select %p28_p9, %s918_s20, %s30_s27  }
  0x6e   : > { %p1120_p1 = por %p1264_p2, %p37_p13  ;;  %p39_p6 = por %p38_p12, %p37_p13 }
  0x6f   : > { %s223_s10 = sand.u32 1, %s918_s20   ;;  %s583_s29 = sshll.u32 %s922_s21, 8 }
  0x70   : > { %s568_s11 = sshll.u32 %s223_s10, 4  ;;  %s1133_s15 = scalar_lea.hbm %s1250_s0, %s583_s29 }
  0x71   : > { %s227_s8 = scalar_lea.vmem [#allocation2], %s568_s11  ;;  %p1137_p11 = pnand %p651_p4, %p39_p6 }
  0x72   : > { %s234_s30 = sshll.u32 %s227_s8, 4  ;;  %s1141_s23 = scalar_lea.sflag [#allocation3], %s223_s10  ;;  %s1135_s30 = int_to_ptr.vmem [resolvable:$true] %s234_s30 }
  0x73   : > { %s818_s27 = scalar_lea.hbm %s1133_s15, 256  ;;  %p820_p0 = pneg %p1137_p11 }
  0x74   : > { %p819_p8 = scmp.ne.s32.totalorder %s1133_s15, %s818_s27  ;;  %s823_s29 = scalar_lea.hbm %s1250_s0, 512 }
  0x75   : > { %p824_p7 = scmp.lt.u32.totalorder %s1133_s15, %s1250_s0  ;;  %p825_p10 = scmp.lt.u32.totalorder %s823_s29, %s818_s27 }
  0x76   : > { %p821_p3 = pnand %p820_p0, %p819_p8  ;;  %p827_p9 = scmp.lt.u32.totalorder %s818_s27, %s1133_s15 }
  0x77   : > { %p826_p13 = por %p825_p10, %p824_p7 }
  0x78   : > { %p822_p5 = pneg %p821_p3 }
  0x79   : > { %p828_p12 = por %p827_p9, %p826_p13 }
  0x7b   : > { %p829_p2 = pnand %p828_p12, %p822_p5 }
  0x7d   : > { %832 = shalt.err (!%p829_p2)
}
  0x7e   : > { %s833_s10 = scalar_lea.vmem %s1135_s30, 256  ;;  %s930_s8 = smov [#allocation2]  }
  0x7f   : > { %p834_p4 = scmp.ne.s32.totalorder %s1135_s30, %s833_s10  ;;  %s838_s6 = sshll.u32 %s930_s8, 4  ;;  %s839_s6 = int_to_ptr.vmem [resolvable:$false] %s838_s6 }
  0x80   : > { %s840_s11 = scalar_lea.vmem %s839_s6, 512  ;;  %p841_p3 = scmp.lt.s32.totalorder %s1135_s30, %s839_s6 }
  0x81   : > { %p836_p6 = pnand %p834_p4, %p820_p0  ;;  %p842_p7 = scmp.lt.s32.totalorder %s840_s11, %s833_s10 }
  0x83   : > { %p837_p8 = pneg %p836_p6  ;;  %p843_p10 = por %p842_p7, %p841_p3 }
  0x85   : > { %p844_p13 = pnand %p843_p10, %p837_p8 }
  0x87   : > { %847 = shalt.err (!%p844_p13)
}
  0x88   : > { %642 = dma.hbm_to_vmem [thread:$0]  (!%p1137_p11), %s1133_s15, 256, %s1135_s30, %s1141_s23, %s927_s16, %s927_s16, %s928_s17  }
  0x89   : > { %p1267_p0 = scmp.ne.s32.totalorder %s1261_s26, 0 }
  0x8a   : > { %s1175_s27 = sand.u32 (!%p1267_p0), 1, %s914_s19   ;;  %p1268_p5 = scmp.ne.s32.totalorder (!%p1267_p0), %s1259_s24, 0 }
  0x8b   : > { %246 = sbr.rel (%p1267_p0) target bundleno = 1030 (0x406), region = 40  ;;  %s572_s29 = sshll.u32 (!%p1267_p0), %s1175_s27, 4 }
  0x8c   : > { %s249_s12 = scalar_lea.sflag (!%p1267_p0), [#allocation3], %s1175_s27  ;;  %s252_s13 = scalar_lea.vmem (!%p1267_p0), [#allocation2], %s572_s29 }
  0x92   : > { %893 = dma.done.wait (%p1268_p5), %s249_s12, 256  }
  0x93   : > { %895 = vsyncadd (%p1268_p5), %s249_s12, 4294967040  ;;  %p1269_p9 = scmp.eq.s32.totalorder %s986_s22, 0 }
  0x95   : > { %897 = dma.done.wait (%p1269_p9), [#allocation6], 32   ;;  %p1270_p11 = pmov %p1269_p9 }
  0x96   : > { %p1271_p12 = pmov %p1269_p9 }
  0x97   : > { %899 = vsyncadd (%p1270_p11), [#allocation6], 4294967264 }
  0x98   : > { %901 = dma.done.wait (%p1271_p12), [#allocation9], 528   ;;  %p1272_p2 = pmov %p1269_p9 }
  0x99   : > { %vm298_vm0 = vcmask 261120   ;;  %v294_v0 = vld [vmem:[%s252_s13] sm:$0xff]  ;;  %v295_v1 = vld [vmem:[%s252_s13 + $0x8] sm:$0xff]  ;;  %v931_v17 = vmov 0.0|0.0   ;;  %vm932_vm1 = vmmov 0   ;;  %v933_v20 = vmov 0.0  }
  0x9a   : > { %903 = vsyncadd (%p1272_p2), [#allocation9], 4294966768  ;;  %v299_v2 = vsel %vm298_vm0, %v294_v0, 0.0  ;;  %v302_v3 = vsel %vm298_vm0, %v295_v1, 0.0  ;;  %v353_v14 = vld [vmem:[#allocation8] sm:$0xff]  ;;  %v354_v15 = vld [vmem:[#allocation8 + $0x8] sm:$0xff]  ;;  %600 = vmatprep.subr.bf16.mxu0 %v931_v17  ;;  %597 = vmatprep.mubr.msk.f32.mxu0 %vm932_vm1, %v933_v20 }
  0x9b   : > { %300 = vadd.xlane.f32.xlu0 %v299_v2  ;;  %v355_v16 = vld [vmem:[#allocation8 + $0x10] sm:$0xff]  ;;  %v601_v18 = vpack.c.bf16 %v354_v15, %v353_v14  ;;  %v356_v19 = vld [vmem:[#allocation8 + $0x18] sm:$0xff]  ;;  %v357_v48 = vld [vmem:[#allocation10] sm:$0x1]  ;;  %vm431_vm2 = vcmask 73728   ;;  %s580_s24 = sshll.u32 %s986_s22, 4 }
  0x9c   : > { %v604_v21 = vpack.c.bf16 %v356_v19, %v355_v16  ;;  %v577_v29 = vld [vmem:[#allocation5] ss:$0 sm:$0xff]  ;;  %v578_v33 = vld [vmem:[#allocation7] ss:$0 sm:$0xff]  ;;  %s293_s26 = scalar_lea.vmem [#allocation11], %s1175_s27  ;;  %s1205_s30 = scalar_lea.hbm %s1255_s5, %s580_s24 }
  0x9d   : > { %602 = vmatpush3.bf16.msra.mxu0 %v601_v18  ;;  %s457_s16 = sshll.u32 %s293_s26, 4  ;;  %s445_s28 = scalar_lea.sflag [#allocation4], %s1175_s27  ;;  %s1207_s16 = int_to_ptr.vmem [resolvable:$true] %s457_s16 }
  0x9e   : > { %603 = vmatprep.subr.bf16.mxu0 %v931_v17  ;;  %s848_s23 = scalar_lea.vmem %s1207_s16, 16  ;;  %s934_s22 = smov [#allocation11]  }
  0x9f   : > { %303 = vadd.xlane.f32.xlu0 %v302_v3  ;;  %p849_p4 = scmp.ne.s32.totalorder %s1207_s16, %s848_s23  ;;  %s852_s10 = sshll.u32 %s934_s22, 4  ;;  %s853_s10 = int_to_ptr.vmem [resolvable:$false] %s852_s10 }
  0xa0   : > { %s854_s8 = scalar_lea.vmem %s853_s10, 32  ;;  %p855_p3 = scmp.lt.s32.totalorder %s1207_s16, %s853_s10 }
  0xa1   : > { %605 = vmatpush3.bf16.msra.mxu0 %v604_v21  ;;  %p850_p6 = pnand %p849_p4, %p1120_p1  ;;  %p856_p7 = scmp.lt.s32.totalorder %s854_s8, %s848_s23 }
  0xa3   : > { %p851_p8 = pneg %p850_p6  ;;  %p857_p10 = por %p856_p7, %p855_p3 }
  0xa5   : > { %p858_p13 = pnand %p857_p10, %p851_p8 }
 0x128   : > { %v301_v4 = vpop.xlane.xlu0 %300 }
 0x129   : > { %v306_v5 = vmul.f32 0.03125, %v301_v4 }
 0x12b   : > { %v308_v6 = vsub.f32 %v294_v0, %v306_v5 }
 0x12c   : > { %v304_v7 = vpop.xlane.xlu0 %303 }
 0x12d   : > { %v307_v8 = vmul.f32 0.03125, %v304_v7  ;;  %v310_v9 = vmul.f32 %v308_v6, %v308_v6 }
 0x12f   : > { %v309_v10 = vsub.f32 %v295_v1, %v307_v8  ;;  %v312_v11 = vsel %vm298_vm0, %v310_v9, 0.0 }
 0x130   : > { %313 = vadd.xlane.f32.xlu1 %v312_v11 }
 0x131   : > { %v311_v12 = vmul.f32 %v309_v10, %v309_v10 }
 0x133   : > { %v315_v13 = vsel %vm298_vm0, %v311_v12, 0.0 }
 0x134   : > { %316 = vadd.xlane.f32.xlu1 %v315_v13 }
 0x1bd   : > { %v314_v22 = vpop.xlane.xlu1 %313 }
 0x1be   : > { %v318_v23 = vmul.f32 0.03125, %v314_v22 }
 0x1c0   : > { %v320_v24 = vadd.f32 1e-05, %v318_v23 }
 0x1c1   : > { %v317_v25 = vpop.xlane.xlu1 %316 }
 0x1c2   : > { %698 = vrsqrt.f32 %v320_v24  ;;  %v319_v26 = vmul.f32 0.03125, %v317_v25 }
 0x1c4   : > { %v321_v27 = vadd.f32 1e-05, %v319_v26 }
 0x1c6   : > { %700 = vrsqrt.f32 %v321_v27 }
 0x1cc   : > { %v699_v28 = vpop.eup %698 }
 0x1cd   : > { %v324_v30 = vmul.f32 %v699_v28, %v308_v6 }
 0x1cf   : > { %v332_v31 = vmul.f32 %v577_v29, %v324_v30 }
 0x1d0   : > { %v701_v32 = vpop.eup %700 }
 0x1d1   : > { %v325_v34 = vmul.f32 %v701_v32, %v309_v10  ;;  %v340_v35 = vadd.f32 %v578_v33, %v332_v31 }
 0x1d3   : > { %v333_v36 = vmul.f32 %v577_v29, %v325_v34  ;;  %v342_v38 = vsel %vm298_vm0, %v340_v35, 0.0 }
 0x1d5   : > { %v341_v37 = vadd.f32 %v578_v33, %v333_v36 }
 0x1d7   : > { %v343_v39 = vsel %vm298_vm0, %v341_v37, 0.0 }
 0x1d8   : > { %v344_v40 = vadd.f32 %v343_v39, %v342_v38 }
 0x1da   : > { %v345_v41 = vrot.slane %v344_v40, 4 }
 0x1dc   : > { %v346_v42 = vadd.f32 %v345_v41, %v344_v40 }
 0x1de   : > { %v347_v43 = vrot.slane %v346_v42, 2 }
 0x1e0   : > { %v348_v44 = vadd.f32 %v347_v43, %v346_v42 }
 0x1e2   : > { %v349_v45 = vrot.slane %v348_v44, 1 }
 0x1e4   : > { %v350_v46 = vadd.f32 %v349_v45, %v348_v44 }
 0x1e6   : > { %v352_v47 = vmul.f32 0.0625, %v350_v46 }
 0x1e8   : > { %598 = vmatmul.mubr.msk.f32.vlgmr.msra.gmra.mrb[0].mxu0 %vm298_vm0, %v352_v47 }
 0x2bb   : > { %v427_v49 = vpop.f32.mrb[0].mxu0 }
 0x2bc   : > { %v428_v50 = vadd.f32 %v427_v49, %v357_v48  ;;  %v599_v51 = vpop.f32.mrb[1].mxu0 }
 0x2be   : > { %v432_v52 = vsel %vm431_vm2, %v428_v50, -inf }
 0x2bf   : > { %433 = vmax.xlane.f32.xlu0 %v432_v52 }
 0x34c   : > { %v434_v53 = vpop.xlane.xlu0 %433 }
 0x34d   : > { %v435_v54 = vsub.f32 %v428_v50, %v434_v53 }
 0x34f   : > { %v436_v55 = vmul.f32 1.442695, %v435_v54 }
 0x351   : > { %702 = vpow2.f32 %v436_v55 }
 0x35b   : > { %v703_v56 = vpop.eup %702 }
 0x35c   : > { %v438_v57 = vsel %vm431_vm2, %v703_v56, 0.0 }
 0x35d   : > { %439 = vadd.xlane.f32.xlu1 %v438_v57 }
 0x3ea   : > { %v440_v58 = vpop.xlane.xlu1 %439 }
 0x3eb   : > { %704 = vrcp.f32 %v440_v58 }
 0x3f5   : > { %v705_v59 = vpop.eup %704 }
 0x3f6   : > { %v442_v60 = vmul.f32 %v705_v59, %v703_v56 }
 0x3f8   : > { %443 = vst.msk [vmem:[%s293_s26] sm:$0x1] %vm431_vm2, %v442_v60 }
 0x3f9   : > { %861 = shalt.err (!%p858_p13)
}
 0x3fa   : > { %s862_s6 = scalar_lea.hbm %s1205_s30, 16  ;;  %s866_s29 = scalar_lea.hbm %s1255_s5, 32 }
 0x3fb   : > { %p863_p0 = scmp.ne.s32.totalorder %s1205_s30, %s862_s6  ;;  %p867_p11 = scmp.lt.u32.totalorder %s1205_s30, %s1255_s5 }
 0x3fc   : > { %p868_p12 = scmp.lt.u32.totalorder %s866_s29, %s862_s6  ;;  %p870_p4 = scmp.lt.u32.totalorder %s862_s6, %s1205_s30 }
 0x3fd   : > { %p864_p5 = pnand %p863_p0, %p1120_p1 }
 0x3fe   : > { %p869_p2 = por %p868_p12, %p867_p11 }
 0x3ff   : > { %p865_p9 = pneg %p864_p5 }
 0x400   : > { %p871_p6 = por %p870_p4, %p869_p2 }
 0x402   : > { %p872_p8 = pnand %p871_p6, %p865_p9 }
 0x404   : > { %875 = shalt.err (!%p872_p8)
}
 0x405   : > { %624 = dma.vmem_to_hbm [thread:$0]  (%p1120_p1), %s1207_s16, 16, %s1205_s30, %s445_s28  }
 0x406 PF: > { %s469_s24 = sand.u32 1, %s910_s18   ;;  %p1273_p3 = scmp.ne.s32.totalorder %s1260_s25, 0 }
 0x407   : > { %p1274_p7 = scmp.ge.s32.totalorder %s922_s21, 2  ;;  %s470_s26 = scalar_lea.sflag [#allocation4], %s469_s24 }
 0x409   : > { %p644_p10 = pnand %p1274_p7, %p1273_p3 }
 0x40b   : > { %905 = dma.done.wait (!%p644_p10), %s470_s26, 16  }
 0x40c   : > { %907 = vsyncadd (!%p644_p10), %s470_s26, 4294967280  ;;  %p20_p13 = scmp.ge.s32.totalorder %s1110_s14, 4   ;;  %s1275_s18 = smov %s914_s19 }
 0x40d   : > { %s1276_s19 = smov %s918_s20  ;;  %s1277_s20 = smov %s1126_s9 }
 0x40e   : > { %s1278_s21 = smov %s1110_s14  ;;  %22 = sbr.rel (!%p20_p13) target bundleno = 7 (0x7), region = 101 }
 0x415   :  { %474 = vsyncpa [#allocation3], 1 }
 0x416   :  { %476 = vsyncpa [#allocation3 + $0x1], 1 }
 0x417   :  { %477 = vsyncpa [#allocation6], 1 }
 0x418   :  { %478 = vsyncpa [#allocation9], 1 }
 0x419   :  { %479 = vsyncpa [#allocation4], 1 }
 0x41a   :  { %481 = vsyncpa [#allocation4 + $0x1], 1 }

// kernel: _lambda_.17
= control target key start
LH: loop header
LB: loop body
LE: loop exit
PB: predicated region body
PF: predicated region fallthrough
CT: control target
= control target key end

     0   :  { %12 = vsyncpa [#allocation3], 0  ;;  %s1724_s0 = inlined_call_operand.hbm [shape: f32[32,32], index: 0, kind: input, shape index: {}, may-alias: {0,7}]   ;;  %s1725_s1 = inlined_call_operand.hbm [shape: f32[1,32], index: 1, kind: input, shape index: {}]   ;;  %s1726_s2 = inlined_call_operand.hbm [shape: f32[1,32], index: 2, kind: input, shape index: {}]   ;;  %s1727_s3 = inlined_call_operand.hbm [shape: f32[32,128], index: 3, kind: input, shape index: {}]   ;;  %s1728_s4 = inlined_call_operand.hbm [shape: f32[1,128], index: 4, kind: input, shape index: {}]   ;;  %s1729_s5 = inlined_call_operand.hbm [shape: f32[128,32], index: 5, kind: input, shape index: {}]   ;;  %s1730_s6 = inlined_call_operand.hbm [shape: f32[1,32], index: 6, kind: input, shape index: {}]   ;;  %s1731_s7 = inlined_call_operand.hbm [shape: f32[32,32], index: 7, kind: output, shape index: {}, may-alias: {0,7}]  }
   0x1   :  { %14 = vsyncpa [#allocation3 + $0x1], 0 }
   0x2   :  { %15 = vsyncpa [#allocation6], 0 }
   0x3   :  { %16 = vsyncpa [#allocation9], 0 }
   0x4   :  { %17 = vsyncpa [#allocation12], 0 }
   0x5   :  { %18 = vsyncpa [#allocation4], 0 }
   0x6   :  { %20 = vsyncpa [#allocation4 + $0x1], 0  ;;  %s1367_s24 = smov 0   ;;  %s1369_s25 = smov 0  }
   0x7   :  { %s1371_s26 = smov 0   ;;  %s1373_s27 = smov 0  }
   0x8 LB: > { %s1315_s28 = smov [#allocation5]   ;;  %s1388_s30 = sadd.s32 4294967295, %s1313_s27   ;;  %s1313_s27 = sphi %s1373_s27, %s1759_s27   ;;  %s1309_s26 = sphi %s1371_s26, %s1758_s26   ;;  %s1305_s25 = sphi %s1369_s25, %s1757_s25   ;;  %s1301_s24 = sphi %s1367_s24, %s1756_s24  }
   0x9   : > { %s222_s29 = sshll.u32 %s1315_s28, 4  ;;  %p775_p0 = scmp.ge.s32.totalorder %s1313_s27, 1  ;;  %s1393_s29 = int_to_ptr.vmem [resolvable:$true] %s222_s29 }
   0xa   : > { %p1732_p1 = scmp.eq.s32.totalorder %s1388_s30, 0  ;;  %p209_p2 = scmp.lt.s32.totalorder %s1313_s27, 3 }
   0xb   : > { %s1316_s9 = smov [#allocation8]   ;;  %s1317_s12 = smov [#allocation11]  }
   0xc   : > { %p1395_p3 = pnand %p775_p0, %p209_p2  ;;  %s243_s10 = sshll.u32 %s1316_s9, 4  ;;  %s1402_s10 = int_to_ptr.vmem [resolvable:$true] %s243_s10 }
   0xd   : > { %s267_s13 = sshll.u32 %s1317_s12, 4  ;;  %s1037_s16 = scalar_lea.hbm %s1725_s1, 16  ;;  %s1410_s13 = int_to_ptr.vmem [resolvable:$true] %s267_s13 }
   0xe   : > { %s1736_s8 = scalar_select %p1395_p3, 1, 0 }
   0xf   : > { %p946_p5 = pneg %p1395_p3  ;;  %p1038_p7 = scmp.ne.s32.totalorder %s1725_s1, %s1037_s16 }
  0x10   : > { %p1044_p11 = scmp.lt.u32.totalorder %s1037_s16, %s1725_s1 }
  0x11   : > { %p1406_p6 = pnand %p946_p5, %p1732_p1 }
  0x13   : > { %p1420_p8 = pneg %p1406_p6 }
  0x15   : > { %p1040_p9 = pnand %p1420_p8, %p1038_p7 }
  0x17   : > { %p1041_p10 = pneg %p1040_p9 }
  0x19   : > { %p1046_p12 = pnand %p1044_p11, %p1041_p10 }
  0x1b   : > { %1049 = shalt.err (!%p1046_p12)
}
  0x1c   : > { %s1050_s22 = scalar_lea.vmem %s1393_s29, 16  ;;  %s1057_s23 = scalar_lea.vmem %s1393_s29, 32 }
  0x1d   : > { %p1051_p13 = scmp.ne.s32.totalorder %s1393_s29, %s1050_s22  ;;  %p1058_p5 = scmp.lt.s32.totalorder %s1393_s29, %s1393_s29 }
  0x1e   : > { %p1059_p7 = scmp.lt.s32.totalorder %s1057_s23, %s1050_s22 }
  0x1f   : > { %p1053_p0 = pnand %p1051_p13, %p1420_p8 }
  0x20   : > { %p1060_p9 = por %p1059_p7, %p1058_p5 }
  0x21   : > { %p1054_p2 = pneg %p1053_p0 }
  0x23   : > { %p1061_p4 = pnand %p1060_p9, %p1054_p2 }
  0x25   : > { %1064 = shalt.err (!%p1061_p4)
}
  0x26   : > { %949 = dma.hbm_to_vmem [thread:$0]  (!%p1406_p6), %s1725_s1, 16, %s1393_s29, [#allocation6]  }
  0x27   : > { %s1065_s15 = scalar_lea.hbm %s1727_s3, 512 }
  0x28   : > { %p1066_p10 = scmp.ne.s32.totalorder %s1727_s3, %s1065_s15  ;;  %p1072_p4 = scmp.lt.u32.totalorder %s1065_s15, %s1727_s3 }
  0x2a   : > { %p1068_p11 = pnand %p1066_p10, %p1420_p8 }
  0x2c   : > { %p1069_p12 = pneg %p1068_p11 }
  0x2e   : > { %p1074_p13 = pnand %p1072_p4, %p1069_p12 }
  0x30   : > { %1077 = shalt.err (!%p1074_p13)
}
  0x31   : > { %s1078_s29 = scalar_lea.vmem %s1402_s10, 512  ;;  %p1086_p7 = scmp.lt.s32.totalorder %s1402_s10, %s1402_s10 }
  0x32   : > { %p1079_p0 = scmp.ne.s32.totalorder %s1402_s10, %s1078_s29  ;;  %p1087_p9 = scmp.lt.s32.totalorder %s1078_s29, %s1078_s29 }
  0x34   : > { %p1081_p2 = pnand %p1079_p0, %p1420_p8  ;;  %p1088_p10 = por %p1087_p9, %p1086_p7 }
  0x36   : > { %p1082_p5 = pneg %p1081_p2 }
  0x38   : > { %p1089_p11 = pnand %p1088_p10, %p1082_p5 }
  0x3a   : > { %1092 = shalt.err (!%p1089_p11)
}
  0x3b   : > { %s1734_s21 = smov 128   ;;  %s1319_s22 = smov 8  }
  0x3c   : > { %955 = dma.hbm_to_vmem [thread:$0]  (!%p1406_p6), %s1727_s3, 512, %s1402_s10, [#allocation9], %s1734_s21, %s1734_s21, %s1319_s22  }
  0x3d   : > { %s1093_s14 = scalar_lea.hbm %s1729_s5, 2048 }
  0x3e   : > { %p1094_p12 = scmp.ne.s32.totalorder %s1729_s5, %s1093_s14  ;;  %p1100_p0 = scmp.lt.u32.totalorder %s1093_s14, %s1729_s5 }
  0x40   : > { %p1096_p4 = pnand %p1094_p12, %p1420_p8 }
  0x42   : > { %p1097_p13 = pneg %p1096_p4 }
  0x44   : > { %p1102_p2 = pnand %p1100_p0, %p1097_p13 }
  0x46   : > { %1105 = shalt.err (!%p1102_p2)
}
  0x47   : > { %s1106_s10 = scalar_lea.vmem %s1410_s13, 2048  ;;  %p1114_p10 = scmp.lt.s32.totalorder %s1410_s13, %s1410_s13 }
  0x48   : > { %p1107_p5 = scmp.ne.s32.totalorder %s1410_s13, %s1106_s10  ;;  %p1115_p11 = scmp.lt.s32.totalorder %s1106_s10, %s1106_s10 }
  0x4a   : > { %p1109_p7 = pnand %p1107_p5, %p1420_p8  ;;  %p1116_p12 = por %p1115_p11, %p1114_p10 }
  0x4c   : > { %p1110_p9 = pneg %p1109_p7 }
  0x4e   : > { %p1117_p4 = pnand %p1116_p12, %p1110_p9 }
  0x50   : > { %1120 = shalt.err (!%p1117_p4)
}
  0x51   : > { %961 = dma.hbm_to_vmem [thread:$0]  (!%p1406_p6), %s1729_s5, 2048, %s1410_s13, [#allocation12], %s1734_s21, %s1734_s21, %s1319_s22  }
  0x52   : > { %s1320_s23 = smov [#allocation7]   ;;  %s1321_s9 = smov [#allocation10]  }
  0x53   : > { %s233_s28 = sshll.u32 %s1320_s23, 4  ;;  %s257_s12 = sshll.u32 %s1321_s9, 4  ;;  %s234_s28 = int_to_ptr.vmem [resolvable:$true] %s233_s28  ;;  %s258_s12 = int_to_ptr.vmem [resolvable:$true] %s257_s12 }
  0x54   : > { %s1121_s16 = scalar_lea.hbm %s1726_s2, 16 }
  0x55   : > { %p1122_p13 = scmp.ne.s32.totalorder %s1726_s2, %s1121_s16  ;;  %p1128_p5 = scmp.lt.u32.totalorder %s1121_s16, %s1726_s2 }
  0x57   : > { %p1124_p0 = pnand %p1122_p13, %p1420_p8 }
  0x59   : > { %p1125_p2 = pneg %p1124_p0 }
  0x5b   : > { %p1130_p7 = pnand %p1128_p5, %p1125_p2 }
  0x5d   : > { %1133 = shalt.err (!%p1130_p7)
}
  0x5e   : > { %s1134_s13 = scalar_lea.vmem %s234_s28, 16  ;;  %s1141_s29 = scalar_lea.vmem %s234_s28, 32 }
  0x5f   : > { %p1135_p9 = scmp.ne.s32.totalorder %s234_s28, %s1134_s13  ;;  %p1142_p12 = scmp.lt.s32.totalorder %s234_s28, %s234_s28 }
  0x60   : > { %p1143_p4 = scmp.lt.s32.totalorder %s1141_s29, %s1134_s13 }
  0x61   : > { %p1137_p10 = pnand %p1135_p9, %p1420_p8 }
  0x62   : > { %p1144_p1 = por %p1143_p4, %p1142_p12 }
  0x63   : > { %p1138_p11 = pneg %p1137_p10 }
  0x65   : > { %p1145_p3 = pnand %p1144_p1, %p1138_p11 }
  0x67   : > { %1148 = shalt.err (!%p1145_p3)
}
  0x68   : > { %952 = dma.hbm_to_vmem [thread:$0]  (!%p1406_p6), %s1726_s2, 16, %s234_s28, [#allocation6]  }
  0x69   : > { %s1149_s16 = scalar_lea.hbm %s1728_s4, 16 }
  0x6a   : > { %p1150_p13 = scmp.ne.s32.totalorder %s1728_s4, %s1149_s16  ;;  %p1156_p3 = scmp.lt.u32.totalorder %s1149_s16, %s1728_s4 }
  0x6c   : > { %p1152_p0 = pnand %p1150_p13, %p1420_p8 }
  0x6e   : > { %p1153_p1 = pneg %p1152_p0 }
  0x70   : > { %p1158_p2 = pnand %p1156_p3, %p1153_p1 }
  0x72   : > { %1161 = shalt.err (!%p1158_p2)
}
  0x73   : > { %s1162_s13 = scalar_lea.vmem %s258_s12, 16  ;;  %s1169_s28 = scalar_lea.vmem %s258_s12, 32 }
  0x74   : > { %p1163_p5 = scmp.ne.s32.totalorder %s258_s12, %s1162_s13  ;;  %p1170_p10 = scmp.lt.s32.totalorder %s258_s12, %s258_s12 }
  0x75   : > { %p1171_p11 = scmp.lt.s32.totalorder %s1169_s28, %s1162_s13 }
  0x76   : > { %p1165_p7 = pnand %p1163_p5, %p1420_p8 }
  0x77   : > { %p1172_p12 = por %p1171_p11, %p1170_p10 }
  0x78   : > { %p1166_p9 = pneg %p1165_p7 }
  0x7a   : > { %p1173_p4 = pnand %p1172_p12, %p1166_p9 }
  0x7c   : > { %1176 = shalt.err (!%p1173_p4)
}
  0x7d   : > { %958 = dma.hbm_to_vmem [thread:$0]  (!%p1406_p6), %s1728_s4, 16, %s258_s12, [#allocation9]  }
  0x7e   : > { %s1322_s9 = smov [#allocation13]   ;;  %s1177_s17 = scalar_lea.hbm %s1730_s6, 16 }
  0x7f   : > { %s281_s14 = sshll.u32 %s1322_s9, 4  ;;  %p1178_p13 = scmp.ne.s32.totalorder %s1730_s6, %s1177_s17  ;;  %s282_s14 = int_to_ptr.vmem [resolvable:$true] %s281_s14 }
  0x80   : > { %p1184_p3 = scmp.lt.u32.totalorder %s1177_s17, %s1730_s6 }
  0x81   : > { %p1180_p0 = pnand %p1178_p13, %p1420_p8 }
  0x83   : > { %p1181_p1 = pneg %p1180_p0 }
  0x85   : > { %p1186_p2 = pnand %p1184_p3, %p1181_p1 }
  0x87   : > { %1189 = shalt.err (!%p1186_p2)
}
  0x88   : > { %s1190_s12 = scalar_lea.vmem %s282_s14, 16  ;;  %s1197_s28 = scalar_lea.vmem %s282_s14, 32 }
  0x89   : > { %p1191_p5 = scmp.ne.s32.totalorder %s282_s14, %s1190_s12  ;;  %p1198_p10 = scmp.lt.s32.totalorder %s282_s14, %s282_s14 }
  0x8a   : > { %p1199_p11 = scmp.lt.s32.totalorder %s1197_s28, %s1190_s12 }
  0x8b   : > { %p1193_p7 = pnand %p1191_p5, %p1420_p8 }
  0x8c   : > { %p1200_p12 = por %p1199_p11, %p1198_p10 }
  0x8d   : > { %p1194_p9 = pneg %p1193_p7 }
  0x8f   : > { %p1201_p4 = pnand %p1200_p12, %p1194_p9 }
  0x91   : > { %1204 = shalt.err (!%p1201_p4)
}
  0x92   : > { %964 = dma.hbm_to_vmem [thread:$0]  (!%p1406_p6), %s1730_s6, 16, %s282_s14, [#allocation12]  }
  0x93   : > { %s774_s19 = sadd.s32 4294967294, %s1313_s27   ;;  %s1550_s11 = sadd.s32 1, %s1313_s27  }
  0x94   : > { %s30_s9 = ssub.s32 %s1313_s27, %s1550_s11  ;;  %s33_s15 = sadd.s32 1, %s1309_s26 }
  0x95   : > { %p31_p8 = scmp.eq.s32.totalorder %s30_s9, 0  ;;  %p40_p13 = scmp.ne.s32.totalorder %s1309_s26, %s1305_s25 }
  0x96   : > { %p41_p0 = scmp.eq.s32.totalorder %s1313_s27, 0  ;;  %p46_p1 = scmp.ne.s32.totalorder %s1305_s25, %s1301_s24 }
  0x97   : > { %s1561_s16 = scalar_select %p31_p8, %s1309_s26, %s33_s15  }
  0x98   : > { %p1563_p3 = por %p41_p0, %p40_p13  ;;  %p1740_p2 = scmp.eq.s32.totalorder %s1388_s30, 0 }
  0x99   : > { %p196_p5 = scmp.eq.s32.totalorder %s1388_s30, 1  ;;  %p202_p7 = scmp.eq.s32.totalorder %s774_s19, 1 }
  0x9a   : > { %p1569_p6 = por %p1740_p2, %p46_p1  ;;  %p979_p9 = scmp.lt.s32.totalorder %s1313_s27, 2 }
  0x9b   : > { %s292_s18 = sand.u32 1, %s1309_s26   ;;  %p1576_p10 = por %p196_p5, %p40_p13 }
  0x9c   : > { %p1580_p11 = por %p202_p7, %p46_p1  ;;  %s783_s13 = sshll.u32 %s292_s18, 4 }
  0x9d   : > { %s1742_s10 = scalar_select %p1576_p10, 1, 0 }
  0x9e   : > { %s1743_s20 = scalar_select %p1580_p11, 1, 0 }
  0x9f   : > { %s806_s12 = sshll.u32 %s1313_s27, 8  ;;  %s296_s19 = scalar_lea.vmem [#allocation2], %s783_s13 }
  0xa0   : > { %s1588_s23 = scalar_lea.hbm %s1724_s0, %s806_s12  ;;  %s303_s9 = sshll.u32 %s296_s19, 4  ;;  %s1590_s9 = int_to_ptr.vmem [resolvable:$true] %s303_s9 }
  0xa1   : > { %p1594_p12 = pnand %p979_p9, %p1563_p3  ;;  %s1598_s21 = scalar_lea.sflag [#allocation3], %s292_s18 }
  0xa2   : > { %s1205_s28 = scalar_lea.hbm %s1588_s23, 256  ;;  %s1210_s17 = scalar_lea.hbm %s1724_s0, 512 }
  0xa3   : > { %p1206_p4 = scmp.ne.s32.totalorder %s1588_s23, %s1205_s28  ;;  %p1207_p8 = pneg %p1594_p12 }
  0xa4   : > { %p1211_p1 = scmp.lt.u32.totalorder %s1588_s23, %s1724_s0  ;;  %p1212_p3 = scmp.lt.u32.totalorder %s1210_s17, %s1205_s28 }
  0xa5   : > { %p1208_p13 = pnand %p1207_p8, %p1206_p4  ;;  %p1214_p5 = scmp.lt.u32.totalorder %s1205_s28, %s1588_s23 }
  0xa6   : > { %p1213_p2 = por %p1212_p3, %p1211_p1 }
  0xa7   : > { %p1209_p0 = pneg %p1208_p13 }
  0xa8   : > { %p1215_p7 = por %p1214_p5, %p1213_p2 }
  0xaa   : > { %p1216_p9 = pnand %p1215_p7, %p1209_p0 }
  0xac   : > { %1219 = shalt.err (!%p1216_p9)
}
  0xad   : > { %s1220_s18 = scalar_lea.vmem %s1590_s9, 256  ;;  %s1323_s13 = smov [#allocation2]  }
  0xae   : > { %p1221_p4 = scmp.ne.s32.totalorder %s1590_s9, %s1220_s18  ;;  %s1225_s12 = sshll.u32 %s1323_s13, 4  ;;  %s1226_s12 = int_to_ptr.vmem [resolvable:$false] %s1225_s12 }
  0xaf   : > { %s1227_s29 = scalar_lea.vmem %s1226_s12, 512  ;;  %p1228_p10 = scmp.lt.s32.totalorder %s1590_s9, %s1226_s12 }
  0xb0   : > { %p1223_p13 = pnand %p1221_p4, %p1207_p8  ;;  %p1229_p1 = scmp.lt.s32.totalorder %s1227_s29, %s1220_s18 }
  0xb2   : > { %p1224_p11 = pneg %p1223_p13  ;;  %p1230_p3 = por %p1229_p1, %p1228_p10 }
  0xb4   : > { %p1231_p2 = pnand %p1230_p3, %p1224_p11 }
  0xb6   : > { %1234 = shalt.err (!%p1231_p2)
}
  0xb7   : > { %s1745_s28 = smov 128   ;;  %p1746_p8 = scmp.ne.s32.totalorder %s1736_s8, 0 }
  0xb8   : > { %968 = dma.hbm_to_vmem [thread:$0]  (!%p1594_p12), %s1588_s23, 256, %s1590_s9, %s1598_s21, %s1745_s28, %s1745_s28, %s1319_s22  }
  0xb9   : > { %315 = sbr.rel (%p1746_p8) target bundleno = 986 (0x3da), region = 48  ;;  %s1632_s17 = sand.u32 (!%p1746_p8), 1, %s1305_s25  }
  0xba   : > { %s787_s19 = sshll.u32 (!%p1746_p8), %s1632_s17, 4  ;;  %s318_s18 = scalar_lea.sflag (!%p1746_p8), [#allocation3], %s1632_s17 }
  0xbb   : > { %s321_s15 = scalar_lea.vmem (!%p1746_p8), [#allocation2], %s787_s19 }
  0xc0   : > { %1280 = dma.done.wait (%p1569_p6), %s318_s18, 256  }
  0xc1   : > { %1282 = vsyncadd (%p1569_p6), %s318_s18, 4294967040  ;;  %p1747_p10 = scmp.eq.s32.totalorder %s1388_s30, 0 }
  0xc3   : > { %1284 = dma.done.wait (%p1747_p10), [#allocation6], 32   ;;  %p1748_p11 = pmov %p1747_p10 }
  0xc4   : > { %p1749_p12 = pmov %p1747_p10 }
  0xc5   : > { %1286 = vsyncadd (%p1748_p11), [#allocation6], 4294967264 }
  0xc6   : > { %1288 = dma.done.wait (%p1749_p12), [#allocation9], 528   ;;  %p1750_p0 = pmov %p1747_p10 }
  0xc8   : > { %1290 = vsyncadd (%p1750_p0), [#allocation9], 4294966768  ;;  %p1751_p5 = pmov %p1750_p0 }
  0xc9   : > { %p1752_p7 = pmov %p1750_p0 }
  0xca   : > { %1292 = dma.done.wait (%p1751_p5), [#allocation12], 2064  }
  0xcb   : > { %1294 = vsyncadd (%p1752_p7), [#allocation12], 4294965232  ;;  %vm382_vm0 = vcmask 261120   ;;  %v1654_v0 = vld [vmem:[%s321_s15] sm:$0xff]  ;;  %v1656_v1 = vld [vmem:[%s321_s15 + $0x8] sm:$0xff]  ;;  %s807_s8 = sshll.u32 %s1388_s30, 8 }
  0xcc   : > { %v383_v2 = vsel %vm382_vm0, %v1654_v0, 0.0  ;;  %v386_v3 = vsel %vm382_vm0, %v1656_v1, 0.0  ;;  %v426_v14 = vld [vmem:[#allocation8] sm:$0xff]  ;;  %v427_v15 = vld [vmem:[#allocation8 + $0x8] sm:$0xff]  ;;  %v428_v16 = vld [vmem:[#allocation8 + $0x10] sm:$0xff]  ;;  %s375_s21 = scalar_lea.vmem [#allocation14], %s787_s19  ;;  %s1675_s9 = scalar_lea.hbm %s1731_s7, %s807_s8 }
  0xcd   : > { %384 = vadd.xlane.f32.xlu0 %v383_v2  ;;  %v878_v17 = vpack.c.bf16 %v427_v15, %v426_v14  ;;  %v429_v18 = vld [vmem:[#allocation8 + $0x18] sm:$0xff]  ;;  %v528_v20 = vld [vmem:[#allocation11] sm:$0xff]  ;;  %v529_v21 = vld [vmem:[#allocation11 + $0x8] sm:$0xff]  ;;  %s644_s22 = sshll.u32 %s375_s21, 4  ;;  %s631_s30 = scalar_lea.sflag [#allocation4], %s1632_s17  ;;  %s1677_s22 = int_to_ptr.vmem [resolvable:$true] %s644_s22 }
  0xce   : > { %v882_v19 = vpack.c.bf16 %v429_v18, %v428_v16  ;;  %v530_v22 = vld [vmem:[#allocation11 + $0x10] sm:$0xff]  ;;  %v886_v23 = vpack.c.bf16 %v529_v21, %v528_v20  ;;  %v531_v24 = vld [vmem:[#allocation11 + $0x18] sm:$0xff]  ;;  %v532_v26 = vld [vmem:[#allocation11 + $0x20] sm:$0xff]  ;;  %s1235_s13 = scalar_lea.vmem %s1677_s22, 256  ;;  %p1753_p9 = scmp.ne.s32.totalorder %s1742_s10, 0 }
  0xcf   : > { %879 = vmatprep.subr.bf16.mxu0 %v878_v17  ;;  %v890_v25 = vpack.c.bf16 %v531_v24, %v530_v22  ;;  %v533_v27 = vld [vmem:[#allocation11 + $0x28] sm:$0xff]  ;;  %v795_v36 = vld [vmem:[#allocation5] ss:$0 sm:$0xff]  ;;  %v796_v38 = vld [vmem:[#allocation7] ss:$0 sm:$0xff]  ;;  %p1236_p6 = scmp.ne.s32.totalorder %s1677_s22, %s1235_s13  ;;  %s1324_s12 = smov [#allocation14]  }
  0xd0   : > { %881 = vmatpush3.bf16.msra.mxu0 %v878_v17  ;;  %887 = vmatprep.subr.bf16.mxu1 %v886_v23  ;;  %v894_v28 = vpack.c.bf16 %v533_v27, %v532_v26  ;;  %v534_v45 = vld [vmem:[#allocation11 + $0x30] sm:$0xff]  ;;  %v535_v46 = vld [vmem:[#allocation11 + $0x38] sm:$0xff]  ;;  %v536_v48 = vld [vmem:[#allocation11 + $0x40] sm:$0xff]  ;;  %s1239_s29 = sshll.u32 %s1324_s12, 4  ;;  %s1240_s29 = int_to_ptr.vmem [resolvable:$false] %s1239_s29 }
  0xd1   : > { %387 = vadd.xlane.f32.xlu0 %v386_v3  ;;  %883 = vmatprep.subr.bf16.mxu0 %v882_v19  ;;  %v898_v47 = vpack.c.bf16 %v535_v46, %v534_v45  ;;  %v537_v49 = vld [vmem:[#allocation11 + $0x48] sm:$0xff]  ;;  %v538_v51 = vld [vmem:[#allocation11 + $0x50] sm:$0xff]  ;;  %v539_v52 = vld [vmem:[#allocation11 + $0x58] sm:$0xff]  ;;  %p1237_p4 = pnand %p1236_p6, %p1753_p9  ;;  %s1241_s28 = scalar_lea.vmem %s1240_s29, 512 }
  0xd2   : > { %889 = vmatpush3.bf16.msra.mxu1 %v886_v23  ;;  %v902_v50 = vpack.c.bf16 %v537_v49, %v536_v48  ;;  %v906_v53 = vpack.c.bf16 %v539_v52, %v538_v51  ;;  %v540_v54 = vld [vmem:[#allocation11 + $0x60] sm:$0xff]  ;;  %v541_v55 = vld [vmem:[#allocation11 + $0x68] sm:$0xff]  ;;  %v542_v57 = vld [vmem:[#allocation11 + $0x70] sm:$0xff]  ;;  %p1242_p1 = scmp.lt.s32.totalorder %s1677_s22, %s1240_s29  ;;  %p1243_p3 = scmp.lt.s32.totalorder %s1241_s28, %s1235_s13 }
  0xd3   : > { %891 = vmatprep.subr.bf16.mxu1 %v890_v25  ;;  %v910_v56 = vpack.c.bf16 %v541_v55, %v540_v54  ;;  %v543_v58 = vld [vmem:[#allocation11 + $0x78] sm:$0xff]  ;;  %p1238_p13 = pneg %p1237_p4 }
  0xd4   : > { %885 = vmatpush3.bf16.msra.mxu0 %v882_v19  ;;  %v914_v59 = vpack.c.bf16 %v543_v58, %v542_v57  ;;  %v797_v60 = vld [vmem:[#allocation10] ss:$0 sm:$0xff]  ;;  %p1244_p2 = por %p1243_p3, %p1242_p1 }
  0xd6   : > { %893 = vmatpush3.bf16.msra.mxu1 %v890_v25  ;;  %p1245_p8 = pnand %p1244_p2, %p1238_p13 }
  0xd7   : > { %895 = vmatprep.subr.bf16.mxu1 %v894_v28 }
  0xda   : > { %897 = vmatpush3.bf16.msra.mxu1 %v894_v28 }
  0xdb   : > { %899 = vmatprep.subr.bf16.mxu1 %v898_v47 }
  0xde   : > { %901 = vmatpush3.bf16.msra.mxu1 %v898_v47 }
  0xdf   : > { %903 = vmatprep.subr.bf16.mxu1 %v902_v50 }
  0xe2   : > { %905 = vmatpush3.bf16.msra.mxu1 %v902_v50 }
  0xe3   : > { %907 = vmatprep.subr.bf16.mxu1 %v906_v53 }
  0xe6   : > { %909 = vmatpush3.bf16.msra.mxu1 %v906_v53 }
  0xe7   : > { %911 = vmatprep.subr.bf16.mxu1 %v910_v56 }
  0xea   : > { %913 = vmatpush3.bf16.msra.mxu1 %v910_v56 }
  0xeb   : > { %915 = vmatprep.subr.bf16.mxu1 %v914_v59 }
  0xee   : > { %917 = vmatpush3.bf16.msra.mxu1 %v914_v59 }
 0x15a   : > { %v385_v4 = vpop.xlane.xlu0 %384 }
 0x15b   : > { %v390_v5 = vmul.f32 0.03125, %v385_v4 }
 0x15d   : > { %v392_v6 = vsub.f32 %v1654_v0, %v390_v5 }
 0x15e   : > { %v388_v7 = vpop.xlane.xlu0 %387 }
 0x15f   : > { %v391_v8 = vmul.f32 0.03125, %v388_v7  ;;  %v394_v9 = vmul.f32 %v392_v6, %v392_v6 }
 0x161   : > { %v393_v10 = vsub.f32 %v1656_v1, %v391_v8  ;;  %v396_v11 = vsel %vm382_vm0, %v394_v9, 0.0 }
 0x162   : > { %397 = vadd.xlane.f32.xlu1 %v396_v11 }
 0x163   : > { %v395_v12 = vmul.f32 %v393_v10, %v393_v10 }
 0x165   : > { %v399_v13 = vsel %vm382_vm0, %v395_v12, 0.0 }
 0x166   : > { %400 = vadd.xlane.f32.xlu1 %v399_v13  ;;  %v800_v13 = vld [vmem:[#allocation13] ss:$0 sm:$0xff] }
 0x1ef   : > { %v398_v29 = vpop.xlane.xlu1 %397 }
 0x1f0   : > { %v402_v30 = vmul.f32 0.03125, %v398_v29 }
 0x1f2   : > { %v404_v31 = vadd.f32 1e-05, %v402_v30 }
 0x1f3   : > { %v401_v32 = vpop.xlane.xlu1 %400 }
 0x1f4   : > { %1029 = vrsqrt.f32 %v404_v31  ;;  %v403_v33 = vmul.f32 0.03125, %v401_v32 }
 0x1f6   : > { %v405_v34 = vadd.f32 1e-05, %v403_v33 }
 0x1f8   : > { %1031 = vrsqrt.f32 %v405_v34 }
 0x1fe   : > { %v1030_v35 = vpop.eup %1029 }
 0x1ff   : > { %v408_v37 = vmul.f32 %v1030_v35, %v392_v6 }
 0x201   : > { %v416_v39 = vmul.f32 %v795_v36, %v408_v37 }
 0x202   : > { %v1032_v40 = vpop.eup %1031 }
 0x203   : > { %v409_v41 = vmul.f32 %v1032_v40, %v393_v10  ;;  %v424_v42 = vadd.f32 %v796_v38, %v416_v39 }
 0x205   : > { %v417_v43 = vmul.f32 %v795_v36, %v409_v41  ;;  %840 = vmatprep.mubr.msk.f32.mxu0 %vm382_vm0, %v424_v42 }
 0x207   : > { %v425_v44 = vadd.f32 %v796_v38, %v417_v43 }
 0x209   : > { %841 = vmatmul.mubr.msk.f32.vlgmr.msra.gmra.mrb[0].mxu0 %vm382_vm0, %v425_v44 }
 0x2dc   : > { %v842_v61 = vpop.f32.mrb[0].mxu0 }
 0x2dd   : > { %v515_v62 = vadd.f32 %v842_v61, %v797_v60  ;;  %v509_v63 = vpop.f32.mrb[1].mxu0 }
 0x2de   : > { %v510_v2 = vadd.f32 %v797_v60, %v509_v63 }
 0x2df   : > { %v521_v3 = vmul.f32 0.70710677, %v515_v62  ;;  %v519_v10 = vmul.f32 0.5, %v515_v62 }
 0x2e0   : > { %v520_v4 = vmul.f32 0.70710677, %v510_v2  ;;  %v518_v8 = vmul.f32 0.5, %v510_v2 }
 0x2e1   : > { %1033 = verf.f32 %v521_v3 }
 0x2e2   : > { %1035 = verf.f32 %v520_v4 }
 0x2eb   : > { %v1034_v5 = vpop.eup %1033 }
 0x2ec   : > { %v1036_v6 = vpop.eup %1035  ;;  %v525_v7 = vadd.f32 1.0, %v1034_v5 }
 0x2ed   : > { %v524_v9 = vadd.f32 1.0, %v1036_v6 }
 0x2ee   : > { %v527_v12 = vmul.f32 %v525_v7, %v519_v10 }
 0x2ef   : > { %v526_v11 = vmul.f32 %v524_v9, %v518_v8 }
 0x2f1   : > { %875 = vmatprep.mubr.f32.mxu1 %v526_v11 }
 0x2f2   : > { %876 = vmatmul.mubr.f32.vlgmr.msra.gmra.mrb[0].mxu1 %v527_v12 }
 0x3c5   : > { %v877_v14 = vpop.f32.mrb[0].mxu1 }
 0x3c6   : > { %v623_v15 = vadd.f32 %v877_v14, %v800_v13  ;;  %v617_v16 = vpop.f32.mrb[1].mxu1 }
 0x3c7   : > { %v618_v17 = vadd.f32 %v800_v13, %v617_v16 }
 0x3c8   : > { %v627_v18 = vadd.f32 %v623_v15, %v1656_v1 }
 0x3c9   : > { %v626_v19 = vadd.f32 %v618_v17, %v1654_v0 }
 0x3ca   : > { %629 = vst.msk [vmem:[%s375_s21 + $0x8] sm:$0xff] %vm382_vm0, %v627_v18 }
 0x3cb   : > { %628 = vst.msk [vmem:[%s375_s21] sm:$0xff] %vm382_vm0, %v626_v19 }
 0x3cc   : > { %1248 = shalt.err (!%p1245_p8)
}
 0x3cd   : > { %s1249_s19 = scalar_lea.hbm %s1675_s9, 256  ;;  %s1253_s8 = scalar_lea.hbm %s1731_s7, 512 }
 0x3ce   : > { %p1250_p10 = scmp.ne.s32.totalorder %s1675_s9, %s1249_s19  ;;  %p1254_p0 = scmp.lt.u32.totalorder %s1675_s9, %s1731_s7 }
 0x3cf   : > { %p1255_p5 = scmp.lt.u32.totalorder %s1253_s8, %s1249_s19  ;;  %p1257_p6 = scmp.lt.u32.totalorder %s1249_s19, %s1675_s9 }
 0x3d0   : > { %p1251_p11 = pnand %p1250_p10, %p1753_p9 }
 0x3d1   : > { %p1256_p7 = por %p1255_p5, %p1254_p0 }
 0x3d2   : > { %p1252_p12 = pneg %p1251_p11 }
 0x3d3   : > { %p1258_p4 = por %p1257_p6, %p1256_p7 }
 0x3d5   : > { %p1259_p13 = pnand %p1258_p4, %p1252_p12 }
 0x3d7   : > { %1262 = shalt.err (!%p1259_p13)
}
 0x3d8   : > { %s1325_s23 = smov 128   ;;  %s1326_s13 = smov 8  }
 0x3d9   : > { %944 = dma.vmem_to_hbm [thread:$0]  (%p1753_p9), %s1677_s22, 256, %s1675_s9, %s631_s30, %s1325_s23, %s1325_s23, %s1326_s13  }
 0x3da PF: > { %s659_s12 = sand.u32 1, %s1301_s24   ;;  %p1754_p1 = scmp.ne.s32.totalorder %s1743_s20, 0 }
 0x3db   : > { %p1755_p3 = scmp.ge.s32.totalorder %s1313_s27, 2  ;;  %s660_s29 = scalar_lea.sflag [#allocation4], %s659_s12 }
 0x3dd   : > { %p970_p2 = pnand %p1755_p3, %p1754_p1 }
 0x3df   : > { %1296 = dma.done.wait (!%p970_p2), %s660_s29, 256  }
 0x3e0   : > { %1298 = vsyncadd (!%p970_p2), %s660_s29, 4294967040  ;;  %p23_p8 = scmp.ge.s32.totalorder %s1550_s11, 4   ;;  %s1756_s24 = smov %s1305_s25 }
 0x3e1   : > { %s1757_s25 = smov %s1309_s26  ;;  %s1758_s26 = smov %s1561_s16 }
 0x3e2   : > { %s1759_s27 = smov %s1550_s11  ;;  %25 = sbr.rel (!%p23_p8) target bundleno = 8 (0x8), region = 117 }
 0x3e9   :  { %665 = vsyncpa [#allocation3], 1 }
 0x3ea   :  { %667 = vsyncpa [#allocation3 + $0x1], 1 }
 0x3eb   :  { %668 = vsyncpa [#allocation6], 1 }
 0x3ec   :  { %669 = vsyncpa [#allocation9], 1 }
 0x3ed   :  { %670 = vsyncpa [#allocation12], 1 }
 0x3ee   :  { %671 = vsyncpa [#allocation4], 1 }
 0x3ef   :  { %673 = vsyncpa [#allocation4 + $0x1], 1 }

</bundles_post_ra>
